<compile_context>
chip_gen: v7x
topology: tpu7x:2x2x1
jax: 0.10.0
libtpu: 0.0.40
codegen_flags: <defaults>
</compile_context>

<pallas_src>
import jax
import jax.numpy as jnp
from jax.experimental import pallas as pl
from jax.experimental.pallas import tpu as pltpu


_MIB = 1024 * 1024
_VMEM_BUDGET = 24 * _MIB          # total double-buffered in+out tiles per call
_TILE_BYTES_CAP = 4 * _MIB        # per-tensor tile cap
_MIN_TILE_BYTES = 128 * 1024      # per-tensor tile floor
_MAX_TENSORS_PER_CALL = 16        # 4 * floor * 16 = 8 MiB <= budget (v7x safe)
_BYPASS_BYTES = 1 * _MIB          # small-tensor bypass threshold
_SPLIT_BYTES = 2 * _MIB           # force >= 2 grid steps above this (v7x megacore)
_LANE_WIDTHS = (2048, 1024, 512, 256, 128)


def _sublane(dtype) -> int:
    """Native sublane packing: (8,128) f32, (16,128) bf16/f16, (32,128) int8/fp8."""
    itemsize = jnp.dtype(dtype).itemsize
    if itemsize == 1:
        return 32
    if itemsize == 2:
        return 16
    return 8


def _lane_dense_view(shape, dtype):
    """Pick a 2-D (rows, cols) view of the flattened tensor.

    Prefers a lane-dense (multiple-of-128) last dim with sublane-aligned rows.
    Never introduces padding.  When the element count is not a multiple of 128
    (no lane-dense view exists without padding), picks the widest trailing-dims
    product that still leaves >= one sublane group of rows, so writeback uses
    as few masked edge stores as possible and avoids sublane-padding blowup.
    """
    dims = [int(d) for d in shape]
    n = 1
    for d in dims:
        n *= d
    sub = _sublane(dtype)

    if n % 128 == 0:
        widest = None
        for c in _LANE_WIDTHS:
            if n % c == 0:
                if widest is None:
                    widest = c
                if (n // c) >= sub:          # prefer sublane-aligned row count
                    return (n // c, c)
        return (n // widest, widest)

    # No lane-dense view possible without padding: maximize the trailing width
    # while keeping at least `sub` rows (avoids (1, n) sublane-padding waste).
    best = None
    trailing = 1
    for d in reversed(dims):
        trailing *= d
        if trailing > 1 and (n // trailing) >= sub:
            best = (n // trailing, trailing)
    if best is not None:
        return best
    if len(dims) >= 2 and dims[-1] > 0:
        return (n // dims[-1], dims[-1])
    return (1, n)


def _identity_copy_kernel(*refs):
    # refs = (x_0, ..., x_{n-1}, o_0, ..., o_{n-1}); straight per-tile copies.
    n = len(refs) // 2
    for x_ref, o_ref in zip(refs[:n], refs[n:]):
        o_ref[...] = x_ref[...]


def _identity_group(xs):
    """One pallas_call streaming a group of same-(view, dtype) tensors through
    VMEM with large lane-dense tiles (1 HBM read + 1 HBM write per byte)."""
    R, C = xs[0].shape
    dtype = xs[0].dtype
    n_t = len(xs)
    itemsize = jnp.dtype(dtype).itemsize
    row_bytes = C * itemsize
    total_bytes = R * row_bytes
    sub = _sublane(dtype)

    # Tile sizing: big tiles, but keep the total double-buffered working set
    # (2 in + 2 out buffers per tensor) within the explicit VMEM budget so the
    # kernel is safe on v7x (64 MiB physical) as well as v5e/v6e (128 MiB).
    tile_bytes = min(_TILE_BYTES_CAP,
                     max(_VMEM_BUDGET // (4 * n_t), _MIN_TILE_BYTES))
    tr = max(tile_bytes // row_bytes, 1)
    tr = max((tr // sub) * sub, sub)       # sublane-aligned tile rows
    if tr >= R:
        tr = R                             # full-extent block: always legal
        # Megacore: guarantee >= 2 grid steps for big tensors so both v7x
        # TensorCores get work on the "parallel" axis.
        if total_bytes >= _SPLIT_BYTES and R > 2 * sub:
            half = (-(-((R + 1) // 2) // sub)) * sub
            if half < R:
                tr = half

    grid = (pl.cdiv(R, tr),)               # partial last block handled by Pallas
    block = pl.BlockSpec((tr, C), lambda i: (i, 0))

    # Scoped-VMEM request derived from the actual working set (+ slack).
    working_set = 4 * n_t * tr * C * itemsize
    vmem_limit = int(min(max(working_set + 4 * _MIB, 16 * _MIB), 48 * _MIB))

    out = pl.pallas_call(
        _identity_copy_kernel,
        out_shape=[jax.ShapeDtypeStruct((R, C), dtype) for _ in xs],
        grid=grid,
        in_specs=[block] * n_t,
        out_specs=[block] * n_t,
        compiler_params=pltpu.CompilerParams(
            dimension_semantics=("parallel",),
            vmem_limit_bytes=vmem_limit,
        ),
    )(*xs)
    if not isinstance(out, (list, tuple)):
        out = [out]
    return list(out)


def _any_identity_impl(*args):
    """Kernel path for the (already filtered) large tensors."""
    arrays = [jnp.asarray(a) for a in args]
    results = [None] * len(arrays)

    # Group same-(view, dtype) tensors so each group is one pallas_call,
    # split into chunks so the per-call VMEM working set stays bounded.
    groups = {}
    for idx, a in enumerate(arrays):
        view = _lane_dense_view(a.shape, a.dtype)
        groups.setdefault((view, jnp.dtype(a.dtype).name), []).append(idx)

    for (view, _name), idxs in groups.items():
        for start in range(0, len(idxs), _MAX_TENSORS_PER_CALL):
            chunk = idxs[start:start + _MAX_TENSORS_PER_CALL]
            xs = [arrays[i].reshape(view) for i in chunk]   # bitcast views, no copy
            outs = _identity_group(xs)
            for i, o in zip(chunk, outs):
                results[i] = o.reshape(arrays[i].shape)

    return tuple(results)


# jit so the lane-dense reshapes / output reshapes fuse into one XLA computation.
_any_identity_jit = jax.jit(_any_identity_impl)


def any_identity_forward(*args):
    """Forward of AnyIdentity: returns its inputs (as a tuple).

    Small / empty tensors are returned directly (true identity, zero copies,
    same array objects -- closest to the PyTorch contract).  Larger tensors are
    routed through the Pallas identity kernel (fresh outputs, equal values).
    """
    # AnyIdentity has no parameters (empty __init__), so there is no init step.
    if not args:
        return ()
    arrays = [jnp.asarray(a) for a in args]
    results = list(arrays)

    kernel_idx = [
        i for i, a in enumerate(arrays)
        if a.size > 0 and a.size * jnp.dtype(a.dtype).itemsize >= _BYPASS_BYTES
    ]
    if kernel_idx:
        outs = _any_identity_jit(*[arrays[i] for i in kernel_idx])
        for i, o in zip(kernel_idx, outs):
            results[i] = o
    return tuple(results)


if __name__ == "__main__":
    key = jax.random.PRNGKey(0)
    k1, k2, k3, k4, k5 = jax.random.split(key, 5)

    # Small backbone-style feature maps (bypass path: pure identity).
    x = jax.random.normal(k1, (2, 4, 16, 16), dtype=jnp.float32)
    y = jax.random.normal(k2, (2, 4, 16, 16), dtype=jnp.float32)
    # Larger feature maps that exercise the Pallas copy kernel.
    z = jax.random.normal(k3, (2, 16, 128, 128), dtype=jnp.float32)   # lane-dense view, 2 grid steps
    w = jax.random.normal(k4, (2, 3, 300, 300), dtype=jnp.float32)    # non-mult-of-128 fallback view
    v = jax.random.normal(k5, (2, 32, 128, 128), dtype=jnp.bfloat16)  # bf16 group

    ins = (x, y, z, w, v)
    outs = any_identity_forward(*ins)
    outs = jax.block_until_ready(outs)

    assert isinstance(outs, tuple) and len(outs) == len(ins)
    for a, o in zip(ins, outs):
        assert o.shape == a.shape, (o.shape, a.shape)
        assert o.dtype == a.dtype, (o.dtype, a.dtype)
        assert jnp.array_equal(o, a)

    print("KERNEL_OK")
</pallas_src>

<mosaic_0001>
module attributes {stable_mosaic.version = 11 : i64} {
  func.func @_identity_copy_kernel(%arg0: i32, %arg1: memref<904x300xf32, #tpu.memory_space<vmem>>, %arg2: memref<904x300xf32, #tpu.memory_space<vmem>>) attributes {dimension_semantics = [#tpu.dimension_semantics<parallel>], iteration_bounds = array<i64: 2>, scalar_prefetch = 0 : i64, scratch_operands = 0 : i64, tpu.core_type = #tpu.core_type<tc>, window_params = [{transform_indices = @transform_0, window_bounds = array<i64: 904, 300>}, {transform_indices = @transform_1, window_bounds = array<i64: 904, 300>}]} {
    %c0 = arith.constant 0 : index
    %c0_0 = arith.constant 0 : index
    %0 = vector.load %arg1[%c0, %c0_0] : memref<904x300xf32, #tpu.memory_space<vmem>>, vector<904x300xf32>
    %c0_1 = arith.constant 0 : index
    %c0_2 = arith.constant 0 : index
    %1 = vector.load %arg2[%c0_1, %c0_2] : memref<904x300xf32, #tpu.memory_space<vmem>>, vector<904x300xf32>
    tpu.vector_store %arg2[%c0_1, %c0_2], %0 {strides = array<i32>} : memref<904x300xf32, #tpu.memory_space<vmem>>, vector<904x300xf32>,
    return
  }
  func.func @transform_0(%arg0: i32) -> (i32, i32) {
    %c0_i32 = arith.constant 0 : i32
    %c0_i32_0 = arith.constant 0 : i32
    return %arg0, %c0_i32 : i32, i32
  }
  func.func @transform_1(%arg0: i32) -> (i32, i32) {
    %c0_i32 = arith.constant 0 : i32
    %c0_i32_0 = arith.constant 0 : i32
    return %arg0, %c0_i32 : i32, i32
  }
}

module attributes {stable_mosaic.version = 11 : i64} {
  func.func @_identity_copy_kernel(%arg0: i32, %arg1: memref<256x2048xbf16, #tpu.memory_space<vmem>>, %arg2: memref<256x2048xbf16, #tpu.memory_space<vmem>>) attributes {dimension_semantics = [#tpu.dimension_semantics<parallel>], iteration_bounds = array<i64: 2>, scalar_prefetch = 0 : i64, scratch_operands = 0 : i64, tpu.core_type = #tpu.core_type<tc>, window_params = [{transform_indices = @transform_0, window_bounds = array<i64: 256, 2048>}, {transform_indices = @transform_1, window_bounds = array<i64: 256, 2048>}]} {
    %c0 = arith.constant 0 : index
    %c0_0 = arith.constant 0 : index
    %0 = vector.load %arg1[%c0, %c0_0] : memref<256x2048xbf16, #tpu.memory_space<vmem>>, vector<256x2048xbf16>
    %c0_1 = arith.constant 0 : index
    %c0_2 = arith.constant 0 : index
    %1 = vector.load %arg2[%c0_1, %c0_2] : memref<256x2048xbf16, #tpu.memory_space<vmem>>, vector<256x2048xbf16>
    tpu.vector_store %arg2[%c0_1, %c0_2], %0 {strides = array<i32>} : memref<256x2048xbf16, #tpu.memory_space<vmem>>, vector<256x2048xbf16>,
    return
  }
  func.func @transform_0(%arg0: i32) -> (i32, i32) {
    %c0_i32 = arith.constant 0 : i32
    %c0_i32_0 = arith.constant 0 : i32
    return %arg0, %c0_i32 : i32, i32
  }
  func.func @transform_1(%arg0: i32) -> (i32, i32) {
    %c0_i32 = arith.constant 0 : i32
    %c0_i32_0 = arith.constant 0 : i32
    return %arg0, %c0_i32 : i32, i32
  }
}

module attributes {stable_mosaic.version = 11 : i64} {
  func.func @_identity_copy_kernel(%arg0: i32, %arg1: memref<128x2048xf32, #tpu.memory_space<vmem>>, %arg2: memref<128x2048xf32, #tpu.memory_space<vmem>>) attributes {dimension_semantics = [#tpu.dimension_semantics<parallel>], iteration_bounds = array<i64: 2>, scalar_prefetch = 0 : i64, scratch_operands = 0 : i64, tpu.core_type = #tpu.core_type<tc>, window_params = [{transform_indices = @transform_0, window_bounds = array<i64: 128, 2048>}, {transform_indices = @transform_1, window_bounds = array<i64: 128, 2048>}]} {
    %c0 = arith.constant 0 : index
    %c0_0 = arith.constant 0 : index
    %0 = vector.load %arg1[%c0, %c0_0] : memref<128x2048xf32, #tpu.memory_space<vmem>>, vector<128x2048xf32>
    %c0_1 = arith.constant 0 : index
    %c0_2 = arith.constant 0 : index
    %1 = vector.load %arg2[%c0_1, %c0_2] : memref<128x2048xf32, #tpu.memory_space<vmem>>, vector<128x2048xf32>
    tpu.vector_store %arg2[%c0_1, %c0_2], %0 {strides = array<i32>} : memref<128x2048xf32, #tpu.memory_space<vmem>>, vector<128x2048xf32>,
    return
  }
  func.func @transform_0(%arg0: i32) -> (i32, i32) {
    %c0_i32 = arith.constant 0 : i32
    %c0_i32_0 = arith.constant 0 : i32
    return %arg0, %c0_i32 : i32, i32
  }
  func.func @transform_1(%arg0: i32) -> (i32, i32) {
    %c0_i32 = arith.constant 0 : i32
    %c0_i32_0 = arith.constant 0 : i32
    return %arg0, %c0_i32 : i32, i32
  }
}

</mosaic_0001>

<bundles_post_ra>
// kernel: _any_identity_impl.4
= control target key start
LH: loop header
LB: loop body
LE: loop exit
PB: predicated region body
PF: predicated region fallthrough
CT: control target
= control target key end

     0   :  { %s1328_s6 = smov 0   ;;  %s1330_s7 = smov 0   ;;  %s2380_s0 = inlined_call_operand.vmem [shape: f32[1800,300], index: 0, kind: input, shape index: {}]   ;;  %s2381_s1 = inlined_call_operand.vmem [shape: f32[1800,300], index: 1, kind: output, shape index: {}]  }
   0x1   :  { %s1332_s8 = smov 0  }
   0x2 LB: > { %s1339_s9 = sadd.s32 4294967295, %s1284_s8   ;;  %s1341_s10 = sadd.s32 1, %s1284_s8   ;;  %s1284_s8 = sphi %s1332_s8, %s2391_s8   ;;  %s1280_s7 = sphi %s1330_s7, %s2390_s7   ;;  %s1276_s6 = sphi %s1328_s6, %s2389_s6  }
   0x3   : > { %s41_s11 = ssub.s32 %s1284_s8, %s1341_s10  ;;  %s44_s12 = sadd.s32 1, %s1280_s7 }
   0x4   : > { %p42_p0 = scmp.eq.s32.totalorder %s41_s11, 0  ;;  %p54_p1 = scmp.ne.s32.totalorder %s1280_s7, %s1276_s6 }
   0x5   : > { %p55_p2 = scmp.eq.s32.totalorder %s1339_s9, 1  ;;  %p1120_p3 = scmp.ge.s32.totalorder %s1284_s8, 1 }
   0x6   : > { %s1348_s13 = scalar_select %p42_p0, %s1280_s7, %s44_s12  }
   0x7   : > { %p1350_p4 = por %p55_p2, %p54_p1  ;;  %p99_p5 = scmp.lt.s32.totalorder %s1284_s8, 3 }
   0x9   : > { %p100_p6 = pnand %p1120_p3, %p99_p5 }
   0xa   : > { %s121_s15 = sand.u32 (!%p100_p6), 1, %s1276_s6   ;;  %s1355_s16 = smul.u32 (!%p100_p6), 113, %s1339_s9  ;;  %vm488_vm0 = vcmask (!%p100_p6), 359424  }
   0xb   : > { %103 = sbr.rel (%p100_p6) target bundleno = 280 (0x118), region = 24 }
   0xc   : > { %p130_p7 = scmp.lt.s32.totalorder (!%p100_p6), %s1355_s16, 224  ;;  %s1133_s17 = smul.u32 (!%p100_p6), 2712, %s121_s15 }
   0xe   : > { %s1367_s23 = scalar_lea.vmem (!%p100_p6), [#allocation2], %s1133_s17  }
  0x12   : > { %s131_s18 = scalar_select %p130_p7, %s1355_s16, 224 }
  0x13   : > { %s834_s24 = ssub.s32 (%p1350_p4), 225, %s1355_s16  ;;  %s1136_s25 = smul.u32 (%p1350_p4), 2712, %s1339_s9 }
  0x14   : > { %s1134_s19 = smul.u32 24, %s131_s18  ;;  %p835_p8 = scmp.lt.s32.totalorder (%p1350_p4), %s834_s24, 113 }
  0x15   : > { %s2164_s28 = scalar_lea.vmem (%p1350_p4), %s2381_s1, %s1136_s25  }
  0x16   : > { %s1362_s22 = scalar_lea.vmem %s2380_s0, %s1134_s19 }
  0x17   : > { %v147_v0 = vld [vmem:[%s1362_s22] sm:$0xff]  ;;  %v148_v1 = vld [vmem:[%s1362_s22 + $0x8] sm:$0xff]  ;;  %v149_v2 = vld [vmem:[%s1362_s22 + $0x10] sm:$0xff] }
  0x18   : > { %486 = vst [vmem:[%s1367_s23] sm:$0xff] %v147_v0  ;;  %487 = vst [vmem:[%s1367_s23 + $0x8] sm:$0xff] %v148_v1  ;;  %v150_v3 = vld [vmem:[%s1362_s22 + $0x18] sm:$0xff]  ;;  %v151_v4 = vld [vmem:[%s1362_s22 + $0x20] sm:$0xff] }
  0x19   : > { %489 = vst.msk [vmem:[%s1367_s23 + $0x10] sm:$0xff] %vm488_vm0, %v149_v2  ;;  %v152_v5 = vld [vmem:[%s1362_s22 + $0x28] sm:$0xff]  ;;  %490 = vst [vmem:[%s1367_s23 + $0x18] sm:$0xff] %v150_v3  ;;  %v153_v6 = vld [vmem:[%s1362_s22 + $0x30] sm:$0xff] }
  0x1a   : > { %491 = vst [vmem:[%s1367_s23 + $0x20] sm:$0xff] %v151_v4  ;;  %492 = vst.msk [vmem:[%s1367_s23 + $0x28] sm:$0xff] %vm488_vm0, %v152_v5  ;;  %v154_v7 = vld [vmem:[%s1362_s22 + $0x38] sm:$0xff]  ;;  %v155_v8 = vld [vmem:[%s1362_s22 + $0x40] sm:$0xff] }
  0x1b   : > { %493 = vst [vmem:[%s1367_s23 + $0x30] sm:$0xff] %v153_v6  ;;  %494 = vst [vmem:[%s1367_s23 + $0x38] sm:$0xff] %v154_v7  ;;  %v156_v9 = vld [vmem:[%s1362_s22 + $0x48] sm:$0xff]  ;;  %v157_v10 = vld [vmem:[%s1362_s22 + $0x50] sm:$0xff] }
  0x1c   : > { %495 = vst.msk [vmem:[%s1367_s23 + $0x40] sm:$0xff] %vm488_vm0, %v155_v8  ;;  %v158_v11 = vld [vmem:[%s1362_s22 + $0x58] sm:$0xff]  ;;  %496 = vst [vmem:[%s1367_s23 + $0x48] sm:$0xff] %v156_v9  ;;  %v159_v12 = vld [vmem:[%s1362_s22 + $0x60] sm:$0xff] }
  0x1d   : > { %497 = vst [vmem:[%s1367_s23 + $0x50] sm:$0xff] %v157_v10  ;;  %498 = vst.msk [vmem:[%s1367_s23 + $0x58] sm:$0xff] %vm488_vm0, %v158_v11  ;;  %v160_v13 = vld [vmem:[%s1362_s22 + $0x68] sm:$0xff]  ;;  %v161_v14 = vld [vmem:[%s1362_s22 + $0x70] sm:$0xff] }
  0x1e   : > { %499 = vst [vmem:[%s1367_s23 + $0x60] sm:$0xff] %v159_v12  ;;  %500 = vst [vmem:[%s1367_s23 + $0x68] sm:$0xff] %v160_v13  ;;  %v162_v15 = vld [vmem:[%s1362_s22 + $0x78] sm:$0xff]  ;;  %v163_v16 = vld [vmem:[%s1362_s22 + $0x80] sm:$0xff] }
  0x1f   : > { %501 = vst.msk [vmem:[%s1367_s23 + $0x70] sm:$0xff] %vm488_vm0, %v161_v14  ;;  %v164_v17 = vld [vmem:[%s1362_s22 + $0x88] sm:$0xff]  ;;  %502 = vst [vmem:[%s1367_s23 + $0x78] sm:$0xff] %v162_v15  ;;  %v165_v18 = vld [vmem:[%s1362_s22 + $0x90] sm:$0xff] }
  0x20   : > { %503 = vst [vmem:[%s1367_s23 + $0x80] sm:$0xff] %v163_v16  ;;  %504 = vst.msk [vmem:[%s1367_s23 + $0x88] sm:$0xff] %vm488_vm0, %v164_v17  ;;  %v166_v19 = vld [vmem:[%s1362_s22 + $0x98] sm:$0xff]  ;;  %v167_v20 = vld [vmem:[%s1362_s22 + $0xa0] sm:$0xff] }
  0x21   : > { %505 = vst [vmem:[%s1367_s23 + $0x90] sm:$0xff] %v165_v18  ;;  %506 = vst [vmem:[%s1367_s23 + $0x98] sm:$0xff] %v166_v19  ;;  %v168_v21 = vld [vmem:[%s1362_s22 + $0xa8] sm:$0xff]  ;;  %v169_v22 = vld [vmem:[%s1362_s22 + $0xb0] sm:$0xff] }
  0x22   : > { %507 = vst.msk [vmem:[%s1367_s23 + $0xa0] sm:$0xff] %vm488_vm0, %v167_v20  ;;  %v170_v23 = vld [vmem:[%s1362_s22 + $0xb8] sm:$0xff]  ;;  %508 = vst [vmem:[%s1367_s23 + $0xa8] sm:$0xff] %v168_v21  ;;  %v171_v24 = vld [vmem:[%s1362_s22 + $0xc0] sm:$0xff] }
  0x23   : > { %509 = vst [vmem:[%s1367_s23 + $0xb0] sm:$0xff] %v169_v22  ;;  %510 = vst.msk [vmem:[%s1367_s23 + $0xb8] sm:$0xff] %vm488_vm0, %v170_v23  ;;  %v172_v25 = vld [vmem:[%s1362_s22 + $0xc8] sm:$0xff]  ;;  %v173_v26 = vld [vmem:[%s1362_s22 + $0xd0] sm:$0xff] }
  0x24   : > { %511 = vst [vmem:[%s1367_s23 + $0xc0] sm:$0xff] %v171_v24  ;;  %512 = vst [vmem:[%s1367_s23 + $0xc8] sm:$0xff] %v172_v25  ;;  %v174_v27 = vld [vmem:[%s1362_s22 + $0xd8] sm:$0xff]  ;;  %v175_v28 = vld [vmem:[%s1362_s22 + $0xe0] sm:$0xff] }
  0x25   : > { %513 = vst.msk [vmem:[%s1367_s23 + $0xd0] sm:$0xff] %vm488_vm0, %v173_v26  ;;  %v176_v29 = vld [vmem:[%s1362_s22 + $0xe8] sm:$0xff]  ;;  %514 = vst [vmem:[%s1367_s23 + $0xd8] sm:$0xff] %v174_v27  ;;  %v177_v30 = vld [vmem:[%s1362_s22 + $0xf0] sm:$0xff] }
  0x26   : > { %515 = vst [vmem:[%s1367_s23 + $0xe0] sm:$0xff] %v175_v28  ;;  %516 = vst.msk [vmem:[%s1367_s23 + $0xe8] sm:$0xff] %vm488_vm0, %v176_v29  ;;  %v178_v31 = vld [vmem:[%s1362_s22 + $0xf8] sm:$0xff]  ;;  %v179_v32 = vld [vmem:[%s1362_s22 + $0x100] sm:$0xff] }
  0x27   : > { %517 = vst [vmem:[%s1367_s23 + $0xf0] sm:$0xff] %v177_v30  ;;  %518 = vst [vmem:[%s1367_s23 + $0xf8] sm:$0xff] %v178_v31  ;;  %v180_v33 = vld [vmem:[%s1362_s22 + $0x108] sm:$0xff]  ;;  %v181_v34 = vld [vmem:[%s1362_s22 + $0x110] sm:$0xff] }
  0x28   : > { %519 = vst.msk [vmem:[%s1367_s23 + $0x100] sm:$0xff] %vm488_vm0, %v179_v32  ;;  %v182_v35 = vld [vmem:[%s1362_s22 + $0x118] sm:$0xff]  ;;  %520 = vst [vmem:[%s1367_s23 + $0x108] sm:$0xff] %v180_v33  ;;  %v183_v36 = vld [vmem:[%s1362_s22 + $0x120] sm:$0xff] }
  0x29   : > { %521 = vst [vmem:[%s1367_s23 + $0x110] sm:$0xff] %v181_v34  ;;  %522 = vst.msk [vmem:[%s1367_s23 + $0x118] sm:$0xff] %vm488_vm0, %v182_v35  ;;  %v184_v37 = vld [vmem:[%s1362_s22 + $0x128] sm:$0xff]  ;;  %v185_v38 = vld [vmem:[%s1362_s22 + $0x130] sm:$0xff] }
  0x2a   : > { %523 = vst [vmem:[%s1367_s23 + $0x120] sm:$0xff] %v183_v36  ;;  %524 = vst [vmem:[%s1367_s23 + $0x128] sm:$0xff] %v184_v37  ;;  %v186_v39 = vld [vmem:[%s1362_s22 + $0x138] sm:$0xff]  ;;  %v187_v40 = vld [vmem:[%s1362_s22 + $0x140] sm:$0xff] }
  0x2b   : > { %525 = vst.msk [vmem:[%s1367_s23 + $0x130] sm:$0xff] %vm488_vm0, %v185_v38  ;;  %v188_v41 = vld [vmem:[%s1362_s22 + $0x148] sm:$0xff]  ;;  %526 = vst [vmem:[%s1367_s23 + $0x138] sm:$0xff] %v186_v39  ;;  %v189_v42 = vld [vmem:[%s1362_s22 + $0x150] sm:$0xff] }
  0x2c   : > { %527 = vst [vmem:[%s1367_s23 + $0x140] sm:$0xff] %v187_v40  ;;  %528 = vst.msk [vmem:[%s1367_s23 + $0x148] sm:$0xff] %vm488_vm0, %v188_v41  ;;  %v190_v43 = vld [vmem:[%s1362_s22 + $0x158] sm:$0xff]  ;;  %v191_v44 = vld [vmem:[%s1362_s22 + $0x160] sm:$0xff] }
  0x2d   : > { %529 = vst [vmem:[%s1367_s23 + $0x150] sm:$0xff] %v189_v42  ;;  %530 = vst [vmem:[%s1367_s23 + $0x158] sm:$0xff] %v190_v43  ;;  %v192_v45 = vld [vmem:[%s1362_s22 + $0x168] sm:$0xff]  ;;  %v193_v46 = vld [vmem:[%s1362_s22 + $0x170] sm:$0xff] }
  0x2e   : > { %531 = vst.msk [vmem:[%s1367_s23 + $0x160] sm:$0xff] %vm488_vm0, %v191_v44  ;;  %v194_v47 = vld [vmem:[%s1362_s22 + $0x178] sm:$0xff]  ;;  %532 = vst [vmem:[%s1367_s23 + $0x168] sm:$0xff] %v192_v45  ;;  %v195_v48 = vld [vmem:[%s1362_s22 + $0x180] sm:$0xff] }
  0x2f   : > { %533 = vst [vmem:[%s1367_s23 + $0x170] sm:$0xff] %v193_v46  ;;  %534 = vst.msk [vmem:[%s1367_s23 + $0x178] sm:$0xff] %vm488_vm0, %v194_v47  ;;  %v196_v49 = vld [vmem:[%s1362_s22 + $0x188] sm:$0xff]  ;;  %v197_v50 = vld [vmem:[%s1362_s22 + $0x190] sm:$0xff] }
  0x30   : > { %535 = vst [vmem:[%s1367_s23 + $0x180] sm:$0xff] %v195_v48  ;;  %536 = vst [vmem:[%s1367_s23 + $0x188] sm:$0xff] %v196_v49  ;;  %v198_v51 = vld [vmem:[%s1362_s22 + $0x198] sm:$0xff]  ;;  %v199_v52 = vld [vmem:[%s1362_s22 + $0x1a0] sm:$0xff] }
  0x31   : > { %537 = vst.msk [vmem:[%s1367_s23 + $0x190] sm:$0xff] %vm488_vm0, %v197_v50  ;;  %v200_v53 = vld [vmem:[%s1362_s22 + $0x1a8] sm:$0xff]  ;;  %538 = vst [vmem:[%s1367_s23 + $0x198] sm:$0xff] %v198_v51  ;;  %v201_v54 = vld [vmem:[%s1362_s22 + $0x1b0] sm:$0xff] }
  0x32   : > { %539 = vst [vmem:[%s1367_s23 + $0x1a0] sm:$0xff] %v199_v52  ;;  %540 = vst.msk [vmem:[%s1367_s23 + $0x1a8] sm:$0xff] %vm488_vm0, %v200_v53  ;;  %v202_v55 = vld [vmem:[%s1362_s22 + $0x1b8] sm:$0xff]  ;;  %v203_v56 = vld [vmem:[%s1362_s22 + $0x1c0] sm:$0xff] }
  0x33   : > { %541 = vst [vmem:[%s1367_s23 + $0x1b0] sm:$0xff] %v201_v54  ;;  %542 = vst [vmem:[%s1367_s23 + $0x1b8] sm:$0xff] %v202_v55  ;;  %v204_v57 = vld [vmem:[%s1362_s22 + $0x1c8] sm:$0xff]  ;;  %v205_v58 = vld [vmem:[%s1362_s22 + $0x1d0] sm:$0xff] }
  0x34   : > { %543 = vst.msk [vmem:[%s1367_s23 + $0x1c0] sm:$0xff] %vm488_vm0, %v203_v56  ;;  %v206_v59 = vld [vmem:[%s1362_s22 + $0x1d8] sm:$0xff]  ;;  %544 = vst [vmem:[%s1367_s23 + $0x1c8] sm:$0xff] %v204_v57  ;;  %v207_v60 = vld [vmem:[%s1362_s22 + $0x1e0] sm:$0xff] }
  0x35   : > { %545 = vst [vmem:[%s1367_s23 + $0x1d0] sm:$0xff] %v205_v58  ;;  %546 = vst.msk [vmem:[%s1367_s23 + $0x1d8] sm:$0xff] %vm488_vm0, %v206_v59  ;;  %v208_v61 = vld [vmem:[%s1362_s22 + $0x1e8] sm:$0xff]  ;;  %v209_v62 = vld [vmem:[%s1362_s22 + $0x1f0] sm:$0xff] }
  0x36   : > { %547 = vst [vmem:[%s1367_s23 + $0x1e0] sm:$0xff] %v207_v60  ;;  %548 = vst [vmem:[%s1367_s23 + $0x1e8] sm:$0xff] %v208_v61  ;;  %v210_v63 = vld [vmem:[%s1362_s22 + $0x1f8] sm:$0xff]  ;;  %v211_v0 = vld [vmem:[%s1362_s22 + $0x200] sm:$0xff] }
  0x37   : > { %549 = vst.msk [vmem:[%s1367_s23 + $0x1f0] sm:$0xff] %vm488_vm0, %v209_v62  ;;  %v212_v1 = vld [vmem:[%s1362_s22 + $0x208] sm:$0xff]  ;;  %550 = vst [vmem:[%s1367_s23 + $0x1f8] sm:$0xff] %v210_v63  ;;  %v213_v2 = vld [vmem:[%s1362_s22 + $0x210] sm:$0xff] }
  0x38   : > { %551 = vst [vmem:[%s1367_s23 + $0x200] sm:$0xff] %v211_v0  ;;  %552 = vst.msk [vmem:[%s1367_s23 + $0x208] sm:$0xff] %vm488_vm0, %v212_v1  ;;  %v214_v3 = vld [vmem:[%s1362_s22 + $0x218] sm:$0xff]  ;;  %v215_v4 = vld [vmem:[%s1362_s22 + $0x220] sm:$0xff] }
  0x39   : > { %553 = vst [vmem:[%s1367_s23 + $0x210] sm:$0xff] %v213_v2  ;;  %554 = vst [vmem:[%s1367_s23 + $0x218] sm:$0xff] %v214_v3  ;;  %v216_v5 = vld [vmem:[%s1362_s22 + $0x228] sm:$0xff]  ;;  %v217_v6 = vld [vmem:[%s1362_s22 + $0x230] sm:$0xff] }
  0x3a   : > { %555 = vst.msk [vmem:[%s1367_s23 + $0x220] sm:$0xff] %vm488_vm0, %v215_v4  ;;  %v218_v7 = vld [vmem:[%s1362_s22 + $0x238] sm:$0xff]  ;;  %556 = vst [vmem:[%s1367_s23 + $0x228] sm:$0xff] %v216_v5  ;;  %v219_v8 = vld [vmem:[%s1362_s22 + $0x240] sm:$0xff] }
  0x3b   : > { %557 = vst [vmem:[%s1367_s23 + $0x230] sm:$0xff] %v217_v6  ;;  %558 = vst.msk [vmem:[%s1367_s23 + $0x238] sm:$0xff] %vm488_vm0, %v218_v7  ;;  %v220_v9 = vld [vmem:[%s1362_s22 + $0x248] sm:$0xff]  ;;  %v221_v10 = vld [vmem:[%s1362_s22 + $0x250] sm:$0xff] }
  0x3c   : > { %559 = vst [vmem:[%s1367_s23 + $0x240] sm:$0xff] %v219_v8  ;;  %560 = vst [vmem:[%s1367_s23 + $0x248] sm:$0xff] %v220_v9  ;;  %v222_v11 = vld [vmem:[%s1362_s22 + $0x258] sm:$0xff]  ;;  %v223_v12 = vld [vmem:[%s1362_s22 + $0x260] sm:$0xff] }
  0x3d   : > { %561 = vst.msk [vmem:[%s1367_s23 + $0x250] sm:$0xff] %vm488_vm0, %v221_v10  ;;  %v224_v13 = vld [vmem:[%s1362_s22 + $0x268] sm:$0xff]  ;;  %562 = vst [vmem:[%s1367_s23 + $0x258] sm:$0xff] %v222_v11  ;;  %v225_v14 = vld [vmem:[%s1362_s22 + $0x270] sm:$0xff] }
  0x3e   : > { %563 = vst [vmem:[%s1367_s23 + $0x260] sm:$0xff] %v223_v12  ;;  %564 = vst.msk [vmem:[%s1367_s23 + $0x268] sm:$0xff] %vm488_vm0, %v224_v13  ;;  %v226_v15 = vld [vmem:[%s1362_s22 + $0x278] sm:$0xff]  ;;  %v227_v16 = vld [vmem:[%s1362_s22 + $0x280] sm:$0xff] }
  0x3f   : > { %565 = vst [vmem:[%s1367_s23 + $0x270] sm:$0xff] %v225_v14  ;;  %566 = vst [vmem:[%s1367_s23 + $0x278] sm:$0xff] %v226_v15  ;;  %v228_v17 = vld [vmem:[%s1362_s22 + $0x288] sm:$0xff]  ;;  %v229_v18 = vld [vmem:[%s1362_s22 + $0x290] sm:$0xff] }
  0x40   : > { %567 = vst.msk [vmem:[%s1367_s23 + $0x280] sm:$0xff] %vm488_vm0, %v227_v16  ;;  %v230_v19 = vld [vmem:[%s1362_s22 + $0x298] sm:$0xff]  ;;  %568 = vst [vmem:[%s1367_s23 + $0x288] sm:$0xff] %v228_v17  ;;  %v231_v20 = vld [vmem:[%s1362_s22 + $0x2a0] sm:$0xff] }
  0x41   : > { %569 = vst [vmem:[%s1367_s23 + $0x290] sm:$0xff] %v229_v18  ;;  %570 = vst.msk [vmem:[%s1367_s23 + $0x298] sm:$0xff] %vm488_vm0, %v230_v19  ;;  %v232_v21 = vld [vmem:[%s1362_s22 + $0x2a8] sm:$0xff]  ;;  %v233_v22 = vld [vmem:[%s1362_s22 + $0x2b0] sm:$0xff] }
  0x42   : > { %571 = vst [vmem:[%s1367_s23 + $0x2a0] sm:$0xff] %v231_v20  ;;  %572 = vst [vmem:[%s1367_s23 + $0x2a8] sm:$0xff] %v232_v21  ;;  %v234_v23 = vld [vmem:[%s1362_s22 + $0x2b8] sm:$0xff]  ;;  %v235_v24 = vld [vmem:[%s1362_s22 + $0x2c0] sm:$0xff] }
  0x43   : > { %573 = vst.msk [vmem:[%s1367_s23 + $0x2b0] sm:$0xff] %vm488_vm0, %v233_v22  ;;  %v236_v25 = vld [vmem:[%s1362_s22 + $0x2c8] sm:$0xff]  ;;  %574 = vst [vmem:[%s1367_s23 + $0x2b8] sm:$0xff] %v234_v23  ;;  %v237_v26 = vld [vmem:[%s1362_s22 + $0x2d0] sm:$0xff] }
  0x44   : > { %575 = vst [vmem:[%s1367_s23 + $0x2c0] sm:$0xff] %v235_v24  ;;  %576 = vst.msk [vmem:[%s1367_s23 + $0x2c8] sm:$0xff] %vm488_vm0, %v236_v25  ;;  %v238_v27 = vld [vmem:[%s1362_s22 + $0x2d8] sm:$0xff]  ;;  %v239_v28 = vld [vmem:[%s1362_s22 + $0x2e0] sm:$0xff] }
  0x45   : > { %577 = vst [vmem:[%s1367_s23 + $0x2d0] sm:$0xff] %v237_v26  ;;  %578 = vst [vmem:[%s1367_s23 + $0x2d8] sm:$0xff] %v238_v27  ;;  %v240_v29 = vld [vmem:[%s1362_s22 + $0x2e8] sm:$0xff]  ;;  %v241_v30 = vld [vmem:[%s1362_s22 + $0x2f0] sm:$0xff] }
  0x46   : > { %579 = vst.msk [vmem:[%s1367_s23 + $0x2e0] sm:$0xff] %vm488_vm0, %v239_v28  ;;  %v242_v31 = vld [vmem:[%s1362_s22 + $0x2f8] sm:$0xff]  ;;  %580 = vst [vmem:[%s1367_s23 + $0x2e8] sm:$0xff] %v240_v29  ;;  %v243_v32 = vld [vmem:[%s1362_s22 + $0x300] sm:$0xff] }
  0x47   : > { %581 = vst [vmem:[%s1367_s23 + $0x2f0] sm:$0xff] %v241_v30  ;;  %582 = vst.msk [vmem:[%s1367_s23 + $0x2f8] sm:$0xff] %vm488_vm0, %v242_v31  ;;  %v244_v33 = vld [vmem:[%s1362_s22 + $0x308] sm:$0xff]  ;;  %v245_v34 = vld [vmem:[%s1362_s22 + $0x310] sm:$0xff] }
  0x48   : > { %583 = vst [vmem:[%s1367_s23 + $0x300] sm:$0xff] %v243_v32  ;;  %584 = vst [vmem:[%s1367_s23 + $0x308] sm:$0xff] %v244_v33  ;;  %v246_v35 = vld [vmem:[%s1362_s22 + $0x318] sm:$0xff]  ;;  %v247_v36 = vld [vmem:[%s1362_s22 + $0x320] sm:$0xff] }
  0x49   : > { %585 = vst.msk [vmem:[%s1367_s23 + $0x310] sm:$0xff] %vm488_vm0, %v245_v34  ;;  %v248_v37 = vld [vmem:[%s1362_s22 + $0x328] sm:$0xff]  ;;  %586 = vst [vmem:[%s1367_s23 + $0x318] sm:$0xff] %v246_v35  ;;  %v249_v38 = vld [vmem:[%s1362_s22 + $0x330] sm:$0xff] }
  0x4a   : > { %587 = vst [vmem:[%s1367_s23 + $0x320] sm:$0xff] %v247_v36  ;;  %588 = vst.msk [vmem:[%s1367_s23 + $0x328] sm:$0xff] %vm488_vm0, %v248_v37  ;;  %v250_v39 = vld [vmem:[%s1362_s22 + $0x338] sm:$0xff]  ;;  %v251_v40 = vld [vmem:[%s1362_s22 + $0x340] sm:$0xff] }
  0x4b   : > { %589 = vst [vmem:[%s1367_s23 + $0x330] sm:$0xff] %v249_v38  ;;  %590 = vst [vmem:[%s1367_s23 + $0x338] sm:$0xff] %v250_v39  ;;  %v252_v41 = vld [vmem:[%s1362_s22 + $0x348] sm:$0xff]  ;;  %v253_v42 = vld [vmem:[%s1362_s22 + $0x350] sm:$0xff] }
  0x4c   : > { %591 = vst.msk [vmem:[%s1367_s23 + $0x340] sm:$0xff] %vm488_vm0, %v251_v40  ;;  %v254_v43 = vld [vmem:[%s1362_s22 + $0x358] sm:$0xff]  ;;  %592 = vst [vmem:[%s1367_s23 + $0x348] sm:$0xff] %v252_v41  ;;  %v255_v44 = vld [vmem:[%s1362_s22 + $0x360] sm:$0xff] }
  0x4d   : > { %593 = vst [vmem:[%s1367_s23 + $0x350] sm:$0xff] %v253_v42  ;;  %594 = vst.msk [vmem:[%s1367_s23 + $0x358] sm:$0xff] %vm488_vm0, %v254_v43  ;;  %v256_v45 = vld [vmem:[%s1362_s22 + $0x368] sm:$0xff]  ;;  %v257_v46 = vld [vmem:[%s1362_s22 + $0x370] sm:$0xff] }
  0x4e   : > { %595 = vst [vmem:[%s1367_s23 + $0x360] sm:$0xff] %v255_v44  ;;  %596 = vst [vmem:[%s1367_s23 + $0x368] sm:$0xff] %v256_v45  ;;  %v258_v47 = vld [vmem:[%s1362_s22 + $0x378] sm:$0xff]  ;;  %v259_v48 = vld [vmem:[%s1362_s22 + $0x380] sm:$0xff] }
  0x4f   : > { %597 = vst.msk [vmem:[%s1367_s23 + $0x370] sm:$0xff] %vm488_vm0, %v257_v46  ;;  %v260_v49 = vld [vmem:[%s1362_s22 + $0x388] sm:$0xff]  ;;  %598 = vst [vmem:[%s1367_s23 + $0x378] sm:$0xff] %v258_v47  ;;  %v261_v50 = vld [vmem:[%s1362_s22 + $0x390] sm:$0xff] }
  0x50   : > { %599 = vst [vmem:[%s1367_s23 + $0x380] sm:$0xff] %v259_v48  ;;  %600 = vst.msk [vmem:[%s1367_s23 + $0x388] sm:$0xff] %vm488_vm0, %v260_v49  ;;  %v262_v51 = vld [vmem:[%s1362_s22 + $0x398] sm:$0xff]  ;;  %v263_v52 = vld [vmem:[%s1362_s22 + $0x3a0] sm:$0xff] }
  0x51   : > { %601 = vst [vmem:[%s1367_s23 + $0x390] sm:$0xff] %v261_v50  ;;  %602 = vst [vmem:[%s1367_s23 + $0x398] sm:$0xff] %v262_v51  ;;  %v264_v53 = vld [vmem:[%s1362_s22 + $0x3a8] sm:$0xff]  ;;  %v265_v54 = vld [vmem:[%s1362_s22 + $0x3b0] sm:$0xff] }
  0x52   : > { %603 = vst.msk [vmem:[%s1367_s23 + $0x3a0] sm:$0xff] %vm488_vm0, %v263_v52  ;;  %v266_v55 = vld [vmem:[%s1362_s22 + $0x3b8] sm:$0xff]  ;;  %604 = vst [vmem:[%s1367_s23 + $0x3a8] sm:$0xff] %v264_v53  ;;  %v267_v56 = vld [vmem:[%s1362_s22 + $0x3c0] sm:$0xff] }
  0x53   : > { %605 = vst [vmem:[%s1367_s23 + $0x3b0] sm:$0xff] %v265_v54  ;;  %606 = vst.msk [vmem:[%s1367_s23 + $0x3b8] sm:$0xff] %vm488_vm0, %v266_v55  ;;  %v268_v57 = vld [vmem:[%s1362_s22 + $0x3c8] sm:$0xff]  ;;  %v269_v58 = vld [vmem:[%s1362_s22 + $0x3d0] sm:$0xff] }
  0x54   : > { %607 = vst [vmem:[%s1367_s23 + $0x3c0] sm:$0xff] %v267_v56  ;;  %608 = vst [vmem:[%s1367_s23 + $0x3c8] sm:$0xff] %v268_v57  ;;  %v270_v59 = vld [vmem:[%s1362_s22 + $0x3d8] sm:$0xff]  ;;  %v271_v60 = vld [vmem:[%s1362_s22 + $0x3e0] sm:$0xff] }
  0x55   : > { %609 = vst.msk [vmem:[%s1367_s23 + $0x3d0] sm:$0xff] %vm488_vm0, %v269_v58  ;;  %v272_v61 = vld [vmem:[%s1362_s22 + $0x3e8] sm:$0xff]  ;;  %610 = vst [vmem:[%s1367_s23 + $0x3d8] sm:$0xff] %v270_v59  ;;  %v273_v62 = vld [vmem:[%s1362_s22 + $0x3f0] sm:$0xff] }
  0x56   : > { %611 = vst [vmem:[%s1367_s23 + $0x3e0] sm:$0xff] %v271_v60  ;;  %612 = vst.msk [vmem:[%s1367_s23 + $0x3e8] sm:$0xff] %vm488_vm0, %v272_v61  ;;  %v274_v63 = vld [vmem:[%s1362_s22 + $0x3f8] sm:$0xff]  ;;  %v275_v0 = vld [vmem:[%s1362_s22 + $0x400] sm:$0xff] }
  0x57   : > { %613 = vst [vmem:[%s1367_s23 + $0x3f0] sm:$0xff] %v273_v62  ;;  %614 = vst [vmem:[%s1367_s23 + $0x3f8] sm:$0xff] %v274_v63  ;;  %v276_v1 = vld [vmem:[%s1362_s22 + $0x408] sm:$0xff]  ;;  %v277_v2 = vld [vmem:[%s1362_s22 + $0x410] sm:$0xff] }
  0x58   : > { %615 = vst.msk [vmem:[%s1367_s23 + $0x400] sm:$0xff] %vm488_vm0, %v275_v0  ;;  %v278_v3 = vld [vmem:[%s1362_s22 + $0x418] sm:$0xff]  ;;  %616 = vst [vmem:[%s1367_s23 + $0x408] sm:$0xff] %v276_v1  ;;  %v279_v4 = vld [vmem:[%s1362_s22 + $0x420] sm:$0xff] }
  0x59   : > { %617 = vst [vmem:[%s1367_s23 + $0x410] sm:$0xff] %v277_v2  ;;  %618 = vst.msk [vmem:[%s1367_s23 + $0x418] sm:$0xff] %vm488_vm0, %v278_v3  ;;  %v280_v5 = vld [vmem:[%s1362_s22 + $0x428] sm:$0xff]  ;;  %v281_v6 = vld [vmem:[%s1362_s22 + $0x430] sm:$0xff] }
  0x5a   : > { %619 = vst [vmem:[%s1367_s23 + $0x420] sm:$0xff] %v279_v4  ;;  %620 = vst [vmem:[%s1367_s23 + $0x428] sm:$0xff] %v280_v5  ;;  %v282_v7 = vld [vmem:[%s1362_s22 + $0x438] sm:$0xff]  ;;  %v283_v8 = vld [vmem:[%s1362_s22 + $0x440] sm:$0xff] }
  0x5b   : > { %621 = vst.msk [vmem:[%s1367_s23 + $0x430] sm:$0xff] %vm488_vm0, %v281_v6  ;;  %v284_v9 = vld [vmem:[%s1362_s22 + $0x448] sm:$0xff]  ;;  %622 = vst [vmem:[%s1367_s23 + $0x438] sm:$0xff] %v282_v7  ;;  %v285_v10 = vld [vmem:[%s1362_s22 + $0x450] sm:$0xff] }
  0x5c   : > { %623 = vst [vmem:[%s1367_s23 + $0x440] sm:$0xff] %v283_v8  ;;  %624 = vst.msk [vmem:[%s1367_s23 + $0x448] sm:$0xff] %vm488_vm0, %v284_v9  ;;  %v286_v11 = vld [vmem:[%s1362_s22 + $0x458] sm:$0xff]  ;;  %v287_v12 = vld [vmem:[%s1362_s22 + $0x460] sm:$0xff] }
  0x5d   : > { %625 = vst [vmem:[%s1367_s23 + $0x450] sm:$0xff] %v285_v10  ;;  %626 = vst [vmem:[%s1367_s23 + $0x458] sm:$0xff] %v286_v11  ;;  %v288_v13 = vld [vmem:[%s1362_s22 + $0x468] sm:$0xff]  ;;  %v289_v14 = vld [vmem:[%s1362_s22 + $0x470] sm:$0xff] }
  0x5e   : > { %627 = vst.msk [vmem:[%s1367_s23 + $0x460] sm:$0xff] %vm488_vm0, %v287_v12  ;;  %v290_v15 = vld [vmem:[%s1362_s22 + $0x478] sm:$0xff]  ;;  %628 = vst [vmem:[%s1367_s23 + $0x468] sm:$0xff] %v288_v13  ;;  %v291_v16 = vld [vmem:[%s1362_s22 + $0x480] sm:$0xff] }
  0x5f   : > { %629 = vst [vmem:[%s1367_s23 + $0x470] sm:$0xff] %v289_v14  ;;  %630 = vst.msk [vmem:[%s1367_s23 + $0x478] sm:$0xff] %vm488_vm0, %v290_v15  ;;  %v292_v17 = vld [vmem:[%s1362_s22 + $0x488] sm:$0xff]  ;;  %v293_v18 = vld [vmem:[%s1362_s22 + $0x490] sm:$0xff] }
  0x60   : > { %631 = vst [vmem:[%s1367_s23 + $0x480] sm:$0xff] %v291_v16  ;;  %632 = vst [vmem:[%s1367_s23 + $0x488] sm:$0xff] %v292_v17  ;;  %v294_v19 = vld [vmem:[%s1362_s22 + $0x498] sm:$0xff]  ;;  %v295_v20 = vld [vmem:[%s1362_s22 + $0x4a0] sm:$0xff] }
  0x61   : > { %633 = vst.msk [vmem:[%s1367_s23 + $0x490] sm:$0xff] %vm488_vm0, %v293_v18  ;;  %v296_v21 = vld [vmem:[%s1362_s22 + $0x4a8] sm:$0xff]  ;;  %634 = vst [vmem:[%s1367_s23 + $0x498] sm:$0xff] %v294_v19  ;;  %v297_v22 = vld [vmem:[%s1362_s22 + $0x4b0] sm:$0xff] }
  0x62   : > { %635 = vst [vmem:[%s1367_s23 + $0x4a0] sm:$0xff] %v295_v20  ;;  %636 = vst.msk [vmem:[%s1367_s23 + $0x4a8] sm:$0xff] %vm488_vm0, %v296_v21  ;;  %v298_v23 = vld [vmem:[%s1362_s22 + $0x4b8] sm:$0xff]  ;;  %v299_v24 = vld [vmem:[%s1362_s22 + $0x4c0] sm:$0xff] }
  0x63   : > { %637 = vst [vmem:[%s1367_s23 + $0x4b0] sm:$0xff] %v297_v22  ;;  %638 = vst [vmem:[%s1367_s23 + $0x4b8] sm:$0xff] %v298_v23  ;;  %v300_v25 = vld [vmem:[%s1362_s22 + $0x4c8] sm:$0xff]  ;;  %v301_v26 = vld [vmem:[%s1362_s22 + $0x4d0] sm:$0xff] }
  0x64   : > { %639 = vst.msk [vmem:[%s1367_s23 + $0x4c0] sm:$0xff] %vm488_vm0, %v299_v24  ;;  %v302_v27 = vld [vmem:[%s1362_s22 + $0x4d8] sm:$0xff]  ;;  %640 = vst [vmem:[%s1367_s23 + $0x4c8] sm:$0xff] %v300_v25  ;;  %v303_v28 = vld [vmem:[%s1362_s22 + $0x4e0] sm:$0xff] }
  0x65   : > { %641 = vst [vmem:[%s1367_s23 + $0x4d0] sm:$0xff] %v301_v26  ;;  %642 = vst.msk [vmem:[%s1367_s23 + $0x4d8] sm:$0xff] %vm488_vm0, %v302_v27  ;;  %v304_v29 = vld [vmem:[%s1362_s22 + $0x4e8] sm:$0xff]  ;;  %v305_v30 = vld [vmem:[%s1362_s22 + $0x4f0] sm:$0xff] }
  0x66   : > { %643 = vst [vmem:[%s1367_s23 + $0x4e0] sm:$0xff] %v303_v28  ;;  %644 = vst [vmem:[%s1367_s23 + $0x4e8] sm:$0xff] %v304_v29  ;;  %v306_v31 = vld [vmem:[%s1362_s22 + $0x4f8] sm:$0xff]  ;;  %v307_v32 = vld [vmem:[%s1362_s22 + $0x500] sm:$0xff] }
  0x67   : > { %645 = vst.msk [vmem:[%s1367_s23 + $0x4f0] sm:$0xff] %vm488_vm0, %v305_v30  ;;  %v308_v33 = vld [vmem:[%s1362_s22 + $0x508] sm:$0xff]  ;;  %646 = vst [vmem:[%s1367_s23 + $0x4f8] sm:$0xff] %v306_v31  ;;  %v309_v34 = vld [vmem:[%s1362_s22 + $0x510] sm:$0xff] }
  0x68   : > { %647 = vst [vmem:[%s1367_s23 + $0x500] sm:$0xff] %v307_v32  ;;  %648 = vst.msk [vmem:[%s1367_s23 + $0x508] sm:$0xff] %vm488_vm0, %v308_v33  ;;  %v310_v35 = vld [vmem:[%s1362_s22 + $0x518] sm:$0xff]  ;;  %v311_v36 = vld [vmem:[%s1362_s22 + $0x520] sm:$0xff] }
  0x69   : > { %649 = vst [vmem:[%s1367_s23 + $0x510] sm:$0xff] %v309_v34  ;;  %650 = vst [vmem:[%s1367_s23 + $0x518] sm:$0xff] %v310_v35  ;;  %v312_v37 = vld [vmem:[%s1362_s22 + $0x528] sm:$0xff]  ;;  %v313_v38 = vld [vmem:[%s1362_s22 + $0x530] sm:$0xff] }
  0x6a   : > { %651 = vst.msk [vmem:[%s1367_s23 + $0x520] sm:$0xff] %vm488_vm0, %v311_v36  ;;  %v314_v39 = vld [vmem:[%s1362_s22 + $0x538] sm:$0xff]  ;;  %652 = vst [vmem:[%s1367_s23 + $0x528] sm:$0xff] %v312_v37  ;;  %v315_v40 = vld [vmem:[%s1362_s22 + $0x540] sm:$0xff] }
  0x6b   : > { %653 = vst [vmem:[%s1367_s23 + $0x530] sm:$0xff] %v313_v38  ;;  %654 = vst.msk [vmem:[%s1367_s23 + $0x538] sm:$0xff] %vm488_vm0, %v314_v39  ;;  %v316_v41 = vld [vmem:[%s1362_s22 + $0x548] sm:$0xff]  ;;  %v317_v42 = vld [vmem:[%s1362_s22 + $0x550] sm:$0xff] }
  0x6c   : > { %655 = vst [vmem:[%s1367_s23 + $0x540] sm:$0xff] %v315_v40  ;;  %656 = vst [vmem:[%s1367_s23 + $0x548] sm:$0xff] %v316_v41  ;;  %v318_v43 = vld [vmem:[%s1362_s22 + $0x558] sm:$0xff]  ;;  %v319_v44 = vld [vmem:[%s1362_s22 + $0x560] sm:$0xff] }
  0x6d   : > { %657 = vst.msk [vmem:[%s1367_s23 + $0x550] sm:$0xff] %vm488_vm0, %v317_v42  ;;  %v320_v45 = vld [vmem:[%s1362_s22 + $0x568] sm:$0xff]  ;;  %658 = vst [vmem:[%s1367_s23 + $0x558] sm:$0xff] %v318_v43  ;;  %v321_v46 = vld [vmem:[%s1362_s22 + $0x570] sm:$0xff] }
  0x6e   : > { %659 = vst [vmem:[%s1367_s23 + $0x560] sm:$0xff] %v319_v44  ;;  %660 = vst.msk [vmem:[%s1367_s23 + $0x568] sm:$0xff] %vm488_vm0, %v320_v45  ;;  %v322_v47 = vld [vmem:[%s1362_s22 + $0x578] sm:$0xff]  ;;  %v323_v48 = vld [vmem:[%s1362_s22 + $0x580] sm:$0xff] }
  0x6f   : > { %661 = vst [vmem:[%s1367_s23 + $0x570] sm:$0xff] %v321_v46  ;;  %662 = vst [vmem:[%s1367_s23 + $0x578] sm:$0xff] %v322_v47  ;;  %v324_v49 = vld [vmem:[%s1362_s22 + $0x588] sm:$0xff]  ;;  %v325_v50 = vld [vmem:[%s1362_s22 + $0x590] sm:$0xff] }
  0x70   : > { %663 = vst.msk [vmem:[%s1367_s23 + $0x580] sm:$0xff] %vm488_vm0, %v323_v48  ;;  %v326_v51 = vld [vmem:[%s1362_s22 + $0x598] sm:$0xff]  ;;  %664 = vst [vmem:[%s1367_s23 + $0x588] sm:$0xff] %v324_v49  ;;  %v327_v52 = vld [vmem:[%s1362_s22 + $0x5a0] sm:$0xff] }
  0x71   : > { %665 = vst [vmem:[%s1367_s23 + $0x590] sm:$0xff] %v325_v50  ;;  %666 = vst.msk [vmem:[%s1367_s23 + $0x598] sm:$0xff] %vm488_vm0, %v326_v51  ;;  %v328_v53 = vld [vmem:[%s1362_s22 + $0x5a8] sm:$0xff]  ;;  %v329_v54 = vld [vmem:[%s1362_s22 + $0x5b0] sm:$0xff] }
  0x72   : > { %667 = vst [vmem:[%s1367_s23 + $0x5a0] sm:$0xff] %v327_v52  ;;  %668 = vst [vmem:[%s1367_s23 + $0x5a8] sm:$0xff] %v328_v53  ;;  %v330_v55 = vld [vmem:[%s1362_s22 + $0x5b8] sm:$0xff]  ;;  %v331_v56 = vld [vmem:[%s1362_s22 + $0x5c0] sm:$0xff] }
  0x73   : > { %669 = vst.msk [vmem:[%s1367_s23 + $0x5b0] sm:$0xff] %vm488_vm0, %v329_v54  ;;  %v332_v57 = vld [vmem:[%s1362_s22 + $0x5c8] sm:$0xff]  ;;  %670 = vst [vmem:[%s1367_s23 + $0x5b8] sm:$0xff] %v330_v55  ;;  %v333_v58 = vld [vmem:[%s1362_s22 + $0x5d0] sm:$0xff] }
  0x74   : > { %671 = vst [vmem:[%s1367_s23 + $0x5c0] sm:$0xff] %v331_v56  ;;  %672 = vst.msk [vmem:[%s1367_s23 + $0x5c8] sm:$0xff] %vm488_vm0, %v332_v57  ;;  %v334_v59 = vld [vmem:[%s1362_s22 + $0x5d8] sm:$0xff]  ;;  %v335_v60 = vld [vmem:[%s1362_s22 + $0x5e0] sm:$0xff] }
  0x75   : > { %673 = vst [vmem:[%s1367_s23 + $0x5d0] sm:$0xff] %v333_v58  ;;  %674 = vst [vmem:[%s1367_s23 + $0x5d8] sm:$0xff] %v334_v59  ;;  %v336_v61 = vld [vmem:[%s1362_s22 + $0x5e8] sm:$0xff]  ;;  %v337_v62 = vld [vmem:[%s1362_s22 + $0x5f0] sm:$0xff] }
  0x76   : > { %675 = vst.msk [vmem:[%s1367_s23 + $0x5e0] sm:$0xff] %vm488_vm0, %v335_v60  ;;  %v338_v63 = vld [vmem:[%s1362_s22 + $0x5f8] sm:$0xff]  ;;  %676 = vst [vmem:[%s1367_s23 + $0x5e8] sm:$0xff] %v336_v61  ;;  %v339_v0 = vld [vmem:[%s1362_s22 + $0x600] sm:$0xff] }
  0x77   : > { %677 = vst [vmem:[%s1367_s23 + $0x5f0] sm:$0xff] %v337_v62  ;;  %678 = vst.msk [vmem:[%s1367_s23 + $0x5f8] sm:$0xff] %vm488_vm0, %v338_v63  ;;  %v340_v1 = vld [vmem:[%s1362_s22 + $0x608] sm:$0xff]  ;;  %v341_v2 = vld [vmem:[%s1362_s22 + $0x610] sm:$0xff] }
  0x78   : > { %679 = vst [vmem:[%s1367_s23 + $0x600] sm:$0xff] %v339_v0  ;;  %680 = vst [vmem:[%s1367_s23 + $0x608] sm:$0xff] %v340_v1  ;;  %v342_v3 = vld [vmem:[%s1362_s22 + $0x618] sm:$0xff]  ;;  %v343_v4 = vld [vmem:[%s1362_s22 + $0x620] sm:$0xff] }
  0x79   : > { %681 = vst.msk [vmem:[%s1367_s23 + $0x610] sm:$0xff] %vm488_vm0, %v341_v2  ;;  %v344_v5 = vld [vmem:[%s1362_s22 + $0x628] sm:$0xff]  ;;  %682 = vst [vmem:[%s1367_s23 + $0x618] sm:$0xff] %v342_v3  ;;  %v345_v6 = vld [vmem:[%s1362_s22 + $0x630] sm:$0xff] }
  0x7a   : > { %683 = vst [vmem:[%s1367_s23 + $0x620] sm:$0xff] %v343_v4  ;;  %684 = vst.msk [vmem:[%s1367_s23 + $0x628] sm:$0xff] %vm488_vm0, %v344_v5  ;;  %v346_v7 = vld [vmem:[%s1362_s22 + $0x638] sm:$0xff]  ;;  %v347_v8 = vld [vmem:[%s1362_s22 + $0x640] sm:$0xff] }
  0x7b   : > { %685 = vst [vmem:[%s1367_s23 + $0x630] sm:$0xff] %v345_v6  ;;  %686 = vst [vmem:[%s1367_s23 + $0x638] sm:$0xff] %v346_v7  ;;  %v348_v9 = vld [vmem:[%s1362_s22 + $0x648] sm:$0xff]  ;;  %v349_v10 = vld [vmem:[%s1362_s22 + $0x650] sm:$0xff] }
  0x7c   : > { %687 = vst.msk [vmem:[%s1367_s23 + $0x640] sm:$0xff] %vm488_vm0, %v347_v8  ;;  %v350_v11 = vld [vmem:[%s1362_s22 + $0x658] sm:$0xff]  ;;  %688 = vst [vmem:[%s1367_s23 + $0x648] sm:$0xff] %v348_v9  ;;  %v351_v12 = vld [vmem:[%s1362_s22 + $0x660] sm:$0xff] }
  0x7d   : > { %689 = vst [vmem:[%s1367_s23 + $0x650] sm:$0xff] %v349_v10  ;;  %690 = vst.msk [vmem:[%s1367_s23 + $0x658] sm:$0xff] %vm488_vm0, %v350_v11  ;;  %v352_v13 = vld [vmem:[%s1362_s22 + $0x668] sm:$0xff]  ;;  %v353_v14 = vld [vmem:[%s1362_s22 + $0x670] sm:$0xff] }
  0x7e   : > { %691 = vst [vmem:[%s1367_s23 + $0x660] sm:$0xff] %v351_v12  ;;  %692 = vst [vmem:[%s1367_s23 + $0x668] sm:$0xff] %v352_v13  ;;  %v354_v15 = vld [vmem:[%s1362_s22 + $0x678] sm:$0xff]  ;;  %v355_v16 = vld [vmem:[%s1362_s22 + $0x680] sm:$0xff] }
  0x7f   : > { %693 = vst.msk [vmem:[%s1367_s23 + $0x670] sm:$0xff] %vm488_vm0, %v353_v14  ;;  %v356_v17 = vld [vmem:[%s1362_s22 + $0x688] sm:$0xff]  ;;  %694 = vst [vmem:[%s1367_s23 + $0x678] sm:$0xff] %v354_v15  ;;  %v357_v18 = vld [vmem:[%s1362_s22 + $0x690] sm:$0xff] }
  0x80   : > { %695 = vst [vmem:[%s1367_s23 + $0x680] sm:$0xff] %v355_v16  ;;  %696 = vst.msk [vmem:[%s1367_s23 + $0x688] sm:$0xff] %vm488_vm0, %v356_v17  ;;  %v358_v19 = vld [vmem:[%s1362_s22 + $0x698] sm:$0xff]  ;;  %v359_v20 = vld [vmem:[%s1362_s22 + $0x6a0] sm:$0xff] }
  0x81   : > { %697 = vst [vmem:[%s1367_s23 + $0x690] sm:$0xff] %v357_v18  ;;  %698 = vst [vmem:[%s1367_s23 + $0x698] sm:$0xff] %v358_v19  ;;  %v360_v21 = vld [vmem:[%s1362_s22 + $0x6a8] sm:$0xff]  ;;  %v361_v22 = vld [vmem:[%s1362_s22 + $0x6b0] sm:$0xff] }
  0x82   : > { %699 = vst.msk [vmem:[%s1367_s23 + $0x6a0] sm:$0xff] %vm488_vm0, %v359_v20  ;;  %v362_v23 = vld [vmem:[%s1362_s22 + $0x6b8] sm:$0xff]  ;;  %700 = vst [vmem:[%s1367_s23 + $0x6a8] sm:$0xff] %v360_v21  ;;  %v363_v24 = vld [vmem:[%s1362_s22 + $0x6c0] sm:$0xff] }
  0x83   : > { %701 = vst [vmem:[%s1367_s23 + $0x6b0] sm:$0xff] %v361_v22  ;;  %702 = vst.msk [vmem:[%s1367_s23 + $0x6b8] sm:$0xff] %vm488_vm0, %v362_v23  ;;  %v364_v25 = vld [vmem:[%s1362_s22 + $0x6c8] sm:$0xff]  ;;  %v365_v26 = vld [vmem:[%s1362_s22 + $0x6d0] sm:$0xff] }
  0x84   : > { %703 = vst [vmem:[%s1367_s23 + $0x6c0] sm:$0xff] %v363_v24  ;;  %704 = vst [vmem:[%s1367_s23 + $0x6c8] sm:$0xff] %v364_v25  ;;  %v366_v27 = vld [vmem:[%s1362_s22 + $0x6d8] sm:$0xff]  ;;  %v367_v28 = vld [vmem:[%s1362_s22 + $0x6e0] sm:$0xff] }
  0x85   : > { %705 = vst.msk [vmem:[%s1367_s23 + $0x6d0] sm:$0xff] %vm488_vm0, %v365_v26  ;;  %v368_v29 = vld [vmem:[%s1362_s22 + $0x6e8] sm:$0xff]  ;;  %706 = vst [vmem:[%s1367_s23 + $0x6d8] sm:$0xff] %v366_v27  ;;  %v369_v30 = vld [vmem:[%s1362_s22 + $0x6f0] sm:$0xff] }
  0x86   : > { %707 = vst [vmem:[%s1367_s23 + $0x6e0] sm:$0xff] %v367_v28  ;;  %708 = vst.msk [vmem:[%s1367_s23 + $0x6e8] sm:$0xff] %vm488_vm0, %v368_v29  ;;  %v370_v31 = vld [vmem:[%s1362_s22 + $0x6f8] sm:$0xff]  ;;  %v371_v32 = vld [vmem:[%s1362_s22 + $0x700] sm:$0xff] }
  0x87   : > { %709 = vst [vmem:[%s1367_s23 + $0x6f0] sm:$0xff] %v369_v30  ;;  %710 = vst [vmem:[%s1367_s23 + $0x6f8] sm:$0xff] %v370_v31  ;;  %v372_v33 = vld [vmem:[%s1362_s22 + $0x708] sm:$0xff]  ;;  %v373_v34 = vld [vmem:[%s1362_s22 + $0x710] sm:$0xff] }
  0x88   : > { %711 = vst.msk [vmem:[%s1367_s23 + $0x700] sm:$0xff] %vm488_vm0, %v371_v32  ;;  %v374_v35 = vld [vmem:[%s1362_s22 + $0x718] sm:$0xff]  ;;  %712 = vst [vmem:[%s1367_s23 + $0x708] sm:$0xff] %v372_v33  ;;  %v375_v36 = vld [vmem:[%s1362_s22 + $0x720] sm:$0xff] }
  0x89   : > { %713 = vst [vmem:[%s1367_s23 + $0x710] sm:$0xff] %v373_v34  ;;  %714 = vst.msk [vmem:[%s1367_s23 + $0x718] sm:$0xff] %vm488_vm0, %v374_v35  ;;  %v376_v37 = vld [vmem:[%s1362_s22 + $0x728] sm:$0xff]  ;;  %v377_v38 = vld [vmem:[%s1362_s22 + $0x730] sm:$0xff] }
  0x8a   : > { %715 = vst [vmem:[%s1367_s23 + $0x720] sm:$0xff] %v375_v36  ;;  %716 = vst [vmem:[%s1367_s23 + $0x728] sm:$0xff] %v376_v37  ;;  %v378_v39 = vld [vmem:[%s1362_s22 + $0x738] sm:$0xff]  ;;  %v379_v40 = vld [vmem:[%s1362_s22 + $0x740] sm:$0xff] }
  0x8b   : > { %717 = vst.msk [vmem:[%s1367_s23 + $0x730] sm:$0xff] %vm488_vm0, %v377_v38  ;;  %v380_v41 = vld [vmem:[%s1362_s22 + $0x748] sm:$0xff]  ;;  %718 = vst [vmem:[%s1367_s23 + $0x738] sm:$0xff] %v378_v39  ;;  %v381_v42 = vld [vmem:[%s1362_s22 + $0x750] sm:$0xff] }
  0x8c   : > { %719 = vst [vmem:[%s1367_s23 + $0x740] sm:$0xff] %v379_v40  ;;  %720 = vst.msk [vmem:[%s1367_s23 + $0x748] sm:$0xff] %vm488_vm0, %v380_v41  ;;  %v382_v43 = vld [vmem:[%s1362_s22 + $0x758] sm:$0xff]  ;;  %v383_v44 = vld [vmem:[%s1362_s22 + $0x760] sm:$0xff] }
  0x8d   : > { %721 = vst [vmem:[%s1367_s23 + $0x750] sm:$0xff] %v381_v42  ;;  %722 = vst [vmem:[%s1367_s23 + $0x758] sm:$0xff] %v382_v43  ;;  %v384_v45 = vld [vmem:[%s1362_s22 + $0x768] sm:$0xff]  ;;  %v385_v46 = vld [vmem:[%s1362_s22 + $0x770] sm:$0xff] }
  0x8e   : > { %723 = vst.msk [vmem:[%s1367_s23 + $0x760] sm:$0xff] %vm488_vm0, %v383_v44  ;;  %v386_v47 = vld [vmem:[%s1362_s22 + $0x778] sm:$0xff]  ;;  %724 = vst [vmem:[%s1367_s23 + $0x768] sm:$0xff] %v384_v45  ;;  %v387_v48 = vld [vmem:[%s1362_s22 + $0x780] sm:$0xff] }
  0x8f   : > { %725 = vst [vmem:[%s1367_s23 + $0x770] sm:$0xff] %v385_v46  ;;  %726 = vst.msk [vmem:[%s1367_s23 + $0x778] sm:$0xff] %vm488_vm0, %v386_v47  ;;  %v388_v49 = vld [vmem:[%s1362_s22 + $0x788] sm:$0xff]  ;;  %v389_v50 = vld [vmem:[%s1362_s22 + $0x790] sm:$0xff] }
  0x90   : > { %727 = vst [vmem:[%s1367_s23 + $0x780] sm:$0xff] %v387_v48  ;;  %728 = vst [vmem:[%s1367_s23 + $0x788] sm:$0xff] %v388_v49  ;;  %v390_v51 = vld [vmem:[%s1362_s22 + $0x798] sm:$0xff]  ;;  %v391_v52 = vld [vmem:[%s1362_s22 + $0x7a0] sm:$0xff] }
  0x91   : > { %729 = vst.msk [vmem:[%s1367_s23 + $0x790] sm:$0xff] %vm488_vm0, %v389_v50  ;;  %v392_v53 = vld [vmem:[%s1362_s22 + $0x7a8] sm:$0xff]  ;;  %730 = vst [vmem:[%s1367_s23 + $0x798] sm:$0xff] %v390_v51  ;;  %v393_v54 = vld [vmem:[%s1362_s22 + $0x7b0] sm:$0xff] }
  0x92   : > { %731 = vst [vmem:[%s1367_s23 + $0x7a0] sm:$0xff] %v391_v52  ;;  %732 = vst.msk [vmem:[%s1367_s23 + $0x7a8] sm:$0xff] %vm488_vm0, %v392_v53  ;;  %v394_v55 = vld [vmem:[%s1362_s22 + $0x7b8] sm:$0xff]  ;;  %v395_v56 = vld [vmem:[%s1362_s22 + $0x7c0] sm:$0xff] }
  0x93   : > { %733 = vst [vmem:[%s1367_s23 + $0x7b0] sm:$0xff] %v393_v54  ;;  %734 = vst [vmem:[%s1367_s23 + $0x7b8] sm:$0xff] %v394_v55  ;;  %v396_v57 = vld [vmem:[%s1362_s22 + $0x7c8] sm:$0xff]  ;;  %v397_v58 = vld [vmem:[%s1362_s22 + $0x7d0] sm:$0xff] }
  0x94   : > { %735 = vst.msk [vmem:[%s1367_s23 + $0x7c0] sm:$0xff] %vm488_vm0, %v395_v56  ;;  %v398_v59 = vld [vmem:[%s1362_s22 + $0x7d8] sm:$0xff]  ;;  %736 = vst [vmem:[%s1367_s23 + $0x7c8] sm:$0xff] %v396_v57  ;;  %v399_v60 = vld [vmem:[%s1362_s22 + $0x7e0] sm:$0xff] }
  0x95   : > { %737 = vst [vmem:[%s1367_s23 + $0x7d0] sm:$0xff] %v397_v58  ;;  %738 = vst.msk [vmem:[%s1367_s23 + $0x7d8] sm:$0xff] %vm488_vm0, %v398_v59  ;;  %v400_v61 = vld [vmem:[%s1362_s22 + $0x7e8] sm:$0xff]  ;;  %v401_v62 = vld [vmem:[%s1362_s22 + $0x7f0] sm:$0xff] }
  0x96   : > { %739 = vst [vmem:[%s1367_s23 + $0x7e0] sm:$0xff] %v399_v60  ;;  %740 = vst [vmem:[%s1367_s23 + $0x7e8] sm:$0xff] %v400_v61  ;;  %v402_v63 = vld [vmem:[%s1362_s22 + $0x7f8] sm:$0xff]  ;;  %v403_v0 = vld [vmem:[%s1362_s22 + $0x800] sm:$0xff] }
  0x97   : > { %741 = vst.msk [vmem:[%s1367_s23 + $0x7f0] sm:$0xff] %vm488_vm0, %v401_v62  ;;  %v404_v1 = vld [vmem:[%s1362_s22 + $0x808] sm:$0xff]  ;;  %742 = vst [vmem:[%s1367_s23 + $0x7f8] sm:$0xff] %v402_v63  ;;  %v405_v2 = vld [vmem:[%s1362_s22 + $0x810] sm:$0xff] }
  0x98   : > { %743 = vst [vmem:[%s1367_s23 + $0x800] sm:$0xff] %v403_v0  ;;  %744 = vst.msk [vmem:[%s1367_s23 + $0x808] sm:$0xff] %vm488_vm0, %v404_v1  ;;  %v406_v3 = vld [vmem:[%s1362_s22 + $0x818] sm:$0xff]  ;;  %v407_v4 = vld [vmem:[%s1362_s22 + $0x820] sm:$0xff] }
  0x99   : > { %745 = vst [vmem:[%s1367_s23 + $0x810] sm:$0xff] %v405_v2  ;;  %746 = vst [vmem:[%s1367_s23 + $0x818] sm:$0xff] %v406_v3  ;;  %v408_v5 = vld [vmem:[%s1362_s22 + $0x828] sm:$0xff]  ;;  %v409_v6 = vld [vmem:[%s1362_s22 + $0x830] sm:$0xff] }
  0x9a   : > { %747 = vst.msk [vmem:[%s1367_s23 + $0x820] sm:$0xff] %vm488_vm0, %v407_v4  ;;  %v410_v7 = vld [vmem:[%s1362_s22 + $0x838] sm:$0xff]  ;;  %748 = vst [vmem:[%s1367_s23 + $0x828] sm:$0xff] %v408_v5  ;;  %v411_v8 = vld [vmem:[%s1362_s22 + $0x840] sm:$0xff] }
  0x9b   : > { %749 = vst [vmem:[%s1367_s23 + $0x830] sm:$0xff] %v409_v6  ;;  %750 = vst.msk [vmem:[%s1367_s23 + $0x838] sm:$0xff] %vm488_vm0, %v410_v7  ;;  %v412_v9 = vld [vmem:[%s1362_s22 + $0x848] sm:$0xff]  ;;  %v413_v10 = vld [vmem:[%s1362_s22 + $0x850] sm:$0xff] }
  0x9c   : > { %751 = vst [vmem:[%s1367_s23 + $0x840] sm:$0xff] %v411_v8  ;;  %752 = vst [vmem:[%s1367_s23 + $0x848] sm:$0xff] %v412_v9  ;;  %v414_v11 = vld [vmem:[%s1362_s22 + $0x858] sm:$0xff]  ;;  %v415_v12 = vld [vmem:[%s1362_s22 + $0x860] sm:$0xff] }
  0x9d   : > { %753 = vst.msk [vmem:[%s1367_s23 + $0x850] sm:$0xff] %vm488_vm0, %v413_v10  ;;  %v416_v13 = vld [vmem:[%s1362_s22 + $0x868] sm:$0xff]  ;;  %754 = vst [vmem:[%s1367_s23 + $0x858] sm:$0xff] %v414_v11  ;;  %v417_v14 = vld [vmem:[%s1362_s22 + $0x870] sm:$0xff] }
  0x9e   : > { %755 = vst [vmem:[%s1367_s23 + $0x860] sm:$0xff] %v415_v12  ;;  %756 = vst.msk [vmem:[%s1367_s23 + $0x868] sm:$0xff] %vm488_vm0, %v416_v13  ;;  %v418_v15 = vld [vmem:[%s1362_s22 + $0x878] sm:$0xff]  ;;  %v419_v16 = vld [vmem:[%s1362_s22 + $0x880] sm:$0xff] }
  0x9f   : > { %757 = vst [vmem:[%s1367_s23 + $0x870] sm:$0xff] %v417_v14  ;;  %758 = vst [vmem:[%s1367_s23 + $0x878] sm:$0xff] %v418_v15  ;;  %v420_v17 = vld [vmem:[%s1362_s22 + $0x888] sm:$0xff]  ;;  %v421_v18 = vld [vmem:[%s1362_s22 + $0x890] sm:$0xff] }
  0xa0   : > { %759 = vst.msk [vmem:[%s1367_s23 + $0x880] sm:$0xff] %vm488_vm0, %v419_v16  ;;  %v422_v19 = vld [vmem:[%s1362_s22 + $0x898] sm:$0xff]  ;;  %760 = vst [vmem:[%s1367_s23 + $0x888] sm:$0xff] %v420_v17  ;;  %v423_v20 = vld [vmem:[%s1362_s22 + $0x8a0] sm:$0xff] }
  0xa1   : > { %761 = vst [vmem:[%s1367_s23 + $0x890] sm:$0xff] %v421_v18  ;;  %762 = vst.msk [vmem:[%s1367_s23 + $0x898] sm:$0xff] %vm488_vm0, %v422_v19  ;;  %v424_v21 = vld [vmem:[%s1362_s22 + $0x8a8] sm:$0xff]  ;;  %v425_v22 = vld [vmem:[%s1362_s22 + $0x8b0] sm:$0xff] }
  0xa2   : > { %763 = vst [vmem:[%s1367_s23 + $0x8a0] sm:$0xff] %v423_v20  ;;  %764 = vst [vmem:[%s1367_s23 + $0x8a8] sm:$0xff] %v424_v21  ;;  %v426_v23 = vld [vmem:[%s1362_s22 + $0x8b8] sm:$0xff]  ;;  %v427_v24 = vld [vmem:[%s1362_s22 + $0x8c0] sm:$0xff] }
  0xa3   : > { %765 = vst.msk [vmem:[%s1367_s23 + $0x8b0] sm:$0xff] %vm488_vm0, %v425_v22  ;;  %v428_v25 = vld [vmem:[%s1362_s22 + $0x8c8] sm:$0xff]  ;;  %766 = vst [vmem:[%s1367_s23 + $0x8b8] sm:$0xff] %v426_v23  ;;  %v429_v26 = vld [vmem:[%s1362_s22 + $0x8d0] sm:$0xff] }
  0xa4   : > { %767 = vst [vmem:[%s1367_s23 + $0x8c0] sm:$0xff] %v427_v24  ;;  %768 = vst.msk [vmem:[%s1367_s23 + $0x8c8] sm:$0xff] %vm488_vm0, %v428_v25  ;;  %v430_v27 = vld [vmem:[%s1362_s22 + $0x8d8] sm:$0xff]  ;;  %v431_v28 = vld [vmem:[%s1362_s22 + $0x8e0] sm:$0xff] }
  0xa5   : > { %769 = vst [vmem:[%s1367_s23 + $0x8d0] sm:$0xff] %v429_v26  ;;  %770 = vst [vmem:[%s1367_s23 + $0x8d8] sm:$0xff] %v430_v27  ;;  %v432_v29 = vld [vmem:[%s1362_s22 + $0x8e8] sm:$0xff]  ;;  %v433_v30 = vld [vmem:[%s1362_s22 + $0x8f0] sm:$0xff] }
  0xa6   : > { %771 = vst.msk [vmem:[%s1367_s23 + $0x8e0] sm:$0xff] %vm488_vm0, %v431_v28  ;;  %v434_v31 = vld [vmem:[%s1362_s22 + $0x8f8] sm:$0xff]  ;;  %772 = vst [vmem:[%s1367_s23 + $0x8e8] sm:$0xff] %v432_v29  ;;  %v435_v32 = vld [vmem:[%s1362_s22 + $0x900] sm:$0xff] }
  0xa7   : > { %773 = vst [vmem:[%s1367_s23 + $0x8f0] sm:$0xff] %v433_v30  ;;  %774 = vst.msk [vmem:[%s1367_s23 + $0x8f8] sm:$0xff] %vm488_vm0, %v434_v31  ;;  %v436_v33 = vld [vmem:[%s1362_s22 + $0x908] sm:$0xff]  ;;  %v437_v34 = vld [vmem:[%s1362_s22 + $0x910] sm:$0xff] }
  0xa8   : > { %775 = vst [vmem:[%s1367_s23 + $0x900] sm:$0xff] %v435_v32  ;;  %776 = vst [vmem:[%s1367_s23 + $0x908] sm:$0xff] %v436_v33  ;;  %v438_v35 = vld [vmem:[%s1362_s22 + $0x918] sm:$0xff]  ;;  %v439_v36 = vld [vmem:[%s1362_s22 + $0x920] sm:$0xff] }
  0xa9   : > { %777 = vst.msk [vmem:[%s1367_s23 + $0x910] sm:$0xff] %vm488_vm0, %v437_v34  ;;  %v440_v37 = vld [vmem:[%s1362_s22 + $0x928] sm:$0xff]  ;;  %778 = vst [vmem:[%s1367_s23 + $0x918] sm:$0xff] %v438_v35  ;;  %v441_v38 = vld [vmem:[%s1362_s22 + $0x930] sm:$0xff] }
  0xaa   : > { %779 = vst [vmem:[%s1367_s23 + $0x920] sm:$0xff] %v439_v36  ;;  %780 = vst.msk [vmem:[%s1367_s23 + $0x928] sm:$0xff] %vm488_vm0, %v440_v37  ;;  %v442_v39 = vld [vmem:[%s1362_s22 + $0x938] sm:$0xff]  ;;  %v443_v40 = vld [vmem:[%s1362_s22 + $0x940] sm:$0xff] }
  0xab   : > { %781 = vst [vmem:[%s1367_s23 + $0x930] sm:$0xff] %v441_v38  ;;  %782 = vst [vmem:[%s1367_s23 + $0x938] sm:$0xff] %v442_v39  ;;  %v444_v41 = vld [vmem:[%s1362_s22 + $0x948] sm:$0xff]  ;;  %v445_v42 = vld [vmem:[%s1362_s22 + $0x950] sm:$0xff] }
  0xac   : > { %783 = vst.msk [vmem:[%s1367_s23 + $0x940] sm:$0xff] %vm488_vm0, %v443_v40  ;;  %v446_v43 = vld [vmem:[%s1362_s22 + $0x958] sm:$0xff]  ;;  %784 = vst [vmem:[%s1367_s23 + $0x948] sm:$0xff] %v444_v41  ;;  %v447_v44 = vld [vmem:[%s1362_s22 + $0x960] sm:$0xff] }
  0xad   : > { %785 = vst [vmem:[%s1367_s23 + $0x950] sm:$0xff] %v445_v42  ;;  %786 = vst.msk [vmem:[%s1367_s23 + $0x958] sm:$0xff] %vm488_vm0, %v446_v43  ;;  %v448_v45 = vld [vmem:[%s1362_s22 + $0x968] sm:$0xff]  ;;  %v449_v46 = vld [vmem:[%s1362_s22 + $0x970] sm:$0xff] }
  0xae   : > { %787 = vst [vmem:[%s1367_s23 + $0x960] sm:$0xff] %v447_v44  ;;  %788 = vst [vmem:[%s1367_s23 + $0x968] sm:$0xff] %v448_v45  ;;  %v450_v47 = vld [vmem:[%s1362_s22 + $0x978] sm:$0xff]  ;;  %v451_v48 = vld [vmem:[%s1362_s22 + $0x980] sm:$0xff] }
  0xaf   : > { %789 = vst.msk [vmem:[%s1367_s23 + $0x970] sm:$0xff] %vm488_vm0, %v449_v46  ;;  %v452_v49 = vld [vmem:[%s1362_s22 + $0x988] sm:$0xff]  ;;  %790 = vst [vmem:[%s1367_s23 + $0x978] sm:$0xff] %v450_v47  ;;  %v453_v50 = vld [vmem:[%s1362_s22 + $0x990] sm:$0xff] }
  0xb0   : > { %791 = vst [vmem:[%s1367_s23 + $0x980] sm:$0xff] %v451_v48  ;;  %792 = vst.msk [vmem:[%s1367_s23 + $0x988] sm:$0xff] %vm488_vm0, %v452_v49  ;;  %v454_v51 = vld [vmem:[%s1362_s22 + $0x998] sm:$0xff]  ;;  %v455_v52 = vld [vmem:[%s1362_s22 + $0x9a0] sm:$0xff] }
  0xb1   : > { %793 = vst [vmem:[%s1367_s23 + $0x990] sm:$0xff] %v453_v50  ;;  %794 = vst [vmem:[%s1367_s23 + $0x998] sm:$0xff] %v454_v51  ;;  %v456_v53 = vld [vmem:[%s1362_s22 + $0x9a8] sm:$0xff]  ;;  %v457_v54 = vld [vmem:[%s1362_s22 + $0x9b0] sm:$0xff] }
  0xb2   : > { %795 = vst.msk [vmem:[%s1367_s23 + $0x9a0] sm:$0xff] %vm488_vm0, %v455_v52  ;;  %v458_v55 = vld [vmem:[%s1362_s22 + $0x9b8] sm:$0xff]  ;;  %796 = vst [vmem:[%s1367_s23 + $0x9a8] sm:$0xff] %v456_v53  ;;  %v459_v56 = vld [vmem:[%s1362_s22 + $0x9c0] sm:$0xff] }
  0xb3   : > { %797 = vst [vmem:[%s1367_s23 + $0x9b0] sm:$0xff] %v457_v54  ;;  %798 = vst.msk [vmem:[%s1367_s23 + $0x9b8] sm:$0xff] %vm488_vm0, %v458_v55  ;;  %v460_v57 = vld [vmem:[%s1362_s22 + $0x9c8] sm:$0xff]  ;;  %v461_v58 = vld [vmem:[%s1362_s22 + $0x9d0] sm:$0xff] }
  0xb4   : > { %799 = vst [vmem:[%s1367_s23 + $0x9c0] sm:$0xff] %v459_v56  ;;  %800 = vst [vmem:[%s1367_s23 + $0x9c8] sm:$0xff] %v460_v57  ;;  %v462_v59 = vld [vmem:[%s1362_s22 + $0x9d8] sm:$0xff]  ;;  %v463_v60 = vld [vmem:[%s1362_s22 + $0x9e0] sm:$0xff] }
  0xb5   : > { %801 = vst.msk [vmem:[%s1367_s23 + $0x9d0] sm:$0xff] %vm488_vm0, %v461_v58  ;;  %v464_v61 = vld [vmem:[%s1362_s22 + $0x9e8] sm:$0xff]  ;;  %802 = vst [vmem:[%s1367_s23 + $0x9d8] sm:$0xff] %v462_v59  ;;  %v465_v62 = vld [vmem:[%s1362_s22 + $0x9f0] sm:$0xff] }
  0xb6   : > { %803 = vst [vmem:[%s1367_s23 + $0x9e0] sm:$0xff] %v463_v60  ;;  %804 = vst.msk [vmem:[%s1367_s23 + $0x9e8] sm:$0xff] %vm488_vm0, %v464_v61  ;;  %v466_v63 = vld [vmem:[%s1362_s22 + $0x9f8] sm:$0xff]  ;;  %v467_v0 = vld [vmem:[%s1362_s22 + $0xa00] sm:$0xff] }
  0xb7   : > { %805 = vst [vmem:[%s1367_s23 + $0x9f0] sm:$0xff] %v465_v62  ;;  %806 = vst [vmem:[%s1367_s23 + $0x9f8] sm:$0xff] %v466_v63  ;;  %v468_v1 = vld [vmem:[%s1362_s22 + $0xa08] sm:$0xff]  ;;  %v469_v2 = vld [vmem:[%s1362_s22 + $0xa10] sm:$0xff] }
  0xb8   : > { %807 = vst.msk [vmem:[%s1367_s23 + $0xa00] sm:$0xff] %vm488_vm0, %v467_v0  ;;  %v470_v3 = vld [vmem:[%s1362_s22 + $0xa18] sm:$0xff]  ;;  %808 = vst [vmem:[%s1367_s23 + $0xa08] sm:$0xff] %v468_v1  ;;  %v471_v4 = vld [vmem:[%s1362_s22 + $0xa20] sm:$0xff] }
  0xb9   : > { %809 = vst [vmem:[%s1367_s23 + $0xa10] sm:$0xff] %v469_v2  ;;  %810 = vst.msk [vmem:[%s1367_s23 + $0xa18] sm:$0xff] %vm488_vm0, %v470_v3  ;;  %v472_v5 = vld [vmem:[%s1362_s22 + $0xa28] sm:$0xff]  ;;  %v473_v6 = vld [vmem:[%s1362_s22 + $0xa30] sm:$0xff] }
  0xba   : > { %811 = vst [vmem:[%s1367_s23 + $0xa20] sm:$0xff] %v471_v4  ;;  %812 = vst [vmem:[%s1367_s23 + $0xa28] sm:$0xff] %v472_v5  ;;  %v474_v7 = vld [vmem:[%s1362_s22 + $0xa38] sm:$0xff]  ;;  %v475_v8 = vld [vmem:[%s1362_s22 + $0xa40] sm:$0xff] }
  0xbb   : > { %813 = vst.msk [vmem:[%s1367_s23 + $0xa30] sm:$0xff] %vm488_vm0, %v473_v6  ;;  %v476_v9 = vld [vmem:[%s1362_s22 + $0xa48] sm:$0xff]  ;;  %814 = vst [vmem:[%s1367_s23 + $0xa38] sm:$0xff] %v474_v7  ;;  %v477_v10 = vld [vmem:[%s1362_s22 + $0xa50] sm:$0xff]  ;;  %832 = sbr.rel (!%p1350_p4) target bundleno = 280 (0x118), region = 28 }
  0xbc   : > { %815 = vst [vmem:[%s1367_s23 + $0xa40] sm:$0xff] %v475_v8  ;;  %816 = vst.msk [vmem:[%s1367_s23 + $0xa48] sm:$0xff] %vm488_vm0, %v476_v9  ;;  %v478_v11 = vld [vmem:[%s1362_s22 + $0xa58] sm:$0xff]  ;;  %v479_v12 = vld [vmem:[%s1362_s22 + $0xa60] sm:$0xff] }
  0xbd   : > { %817 = vst [vmem:[%s1367_s23 + $0xa50] sm:$0xff] %v477_v10  ;;  %818 = vst [vmem:[%s1367_s23 + $0xa58] sm:$0xff] %v478_v11  ;;  %v480_v13 = vld [vmem:[%s1362_s22 + $0xa68] sm:$0xff]  ;;  %v481_v14 = vld [vmem:[%s1362_s22 + $0xa70] sm:$0xff] }
  0xbe   : > { %819 = vst.msk [vmem:[%s1367_s23 + $0xa60] sm:$0xff] %vm488_vm0, %v479_v12  ;;  %v482_v15 = vld [vmem:[%s1362_s22 + $0xa78] sm:$0xff]  ;;  %820 = vst [vmem:[%s1367_s23 + $0xa68] sm:$0xff] %v480_v13  ;;  %v483_v16 = vld [vmem:[%s1362_s22 + $0xa80] sm:$0xff] }
  0xbf   : > { %821 = vst [vmem:[%s1367_s23 + $0xa70] sm:$0xff] %v481_v14  ;;  %822 = vst.msk [vmem:[%s1367_s23 + $0xa78] sm:$0xff] %vm488_vm0, %v482_v15  ;;  %v484_v17 = vld [vmem:[%s1362_s22 + $0xa88] sm:$0xff]  ;;  %v485_v18 = vld [vmem:[%s1362_s22 + $0xa90] sm:$0xff] }
  0xc0   : > { %823 = vst [vmem:[%s1367_s23 + $0xa80] sm:$0xff] %v483_v16  ;;  %824 = vst [vmem:[%s1367_s23 + $0xa88] sm:$0xff] %v484_v17 }
  0xc1   : > { %825 = vst.msk [vmem:[%s1367_s23 + $0xa90] sm:$0xff] %vm488_vm0, %v485_v18 }
  0xc2   : > { %s2393_s24 = smov (!%p835_p8, %s834_s24), 113 }
  0xc3   : > { %s1123_s29 = smul.u32 384, %s2393_s24 }
  0xc5   : > { %p1126_p9 = scmp.eq.s32.totalorder %s1123_s29, 0 }
  0xc6   : > { %1226 = sdivrem.u32 (!%p1126_p9), %s2393_s24, 22 }
  0xc7   : > { %845 = sbr.rel (%p1126_p9) target bundleno = 280 (0x118), region = 32 }
  0xcf   : > { %s2170_s30 = spop.drf %1226 }
  0xd0   : > { %p1127_p10 = scmp.le.s32.totalorder %s2170_s30, 0 }
  0xd1   : > { %s2383_s2 = smov (!%p1127_p10), %s2164_s28  ;;  %s2384_s3 = smov (!%p1127_p10), %s1367_s23 }
  0xd2   : > { %1073 = sbr.rel (%p1127_p10) target bundleno = 251 (0xfb), region = 80  ;;  %s2179_s4 = smov (!%p1127_p10), 0  }
  0xd3   : > { %s2181_s5 = smov (!%p1127_p10), 0  }
  0xd9 LB: >> { %v859_v19 = vld [vmem:[%s1292_s3] sm:$0xff]  ;;  %v861_v20 = vld [vmem:[%s1292_s3 + $0x18] sm:$0xff]  ;;  %v863_v21 = vld [vmem:[%s1292_s3 + $0x30] sm:$0xff]  ;;  %s991_s6 = sadd.s32 1, %s1296_s4  ;;  %s853_s5 = sadd.s32 1, %s1300_s5   ;;  %s1300_s5 = sphi %s2181_s5, %s853_s5   ;;  %s1296_s4 = sphi %s2179_s4, %s2387_s4   ;;  %s1292_s3 = sphi %s2384_s3, %s2386_s3   ;;  %s1288_s2 = sphi %s2383_s2, %s2385_s2  }
  0xda   : >> { %860 = vst [vmem:[%s1288_s2] sm:$0xff] %v859_v19  ;;  %862 = vst [vmem:[%s1288_s2 + $0x18] sm:$0xff] %v861_v20  ;;  %v865_v22 = vld [vmem:[%s1292_s3 + $0x48] sm:$0xff]  ;;  %v867_v23 = vld [vmem:[%s1292_s3 + $0x60] sm:$0xff]  ;;  %p992_p11 = scmp.ge.s32.totalorder %s991_s6, %s2170_s30  ;;  %p852_p12 = scmp.ge.s32.totalorder %s853_s5, %s2170_s30 }
  0xdb   : >> { %864 = vst [vmem:[%s1288_s2 + $0x30] sm:$0xff] %v863_v21  ;;  %v869_v24 = vld [vmem:[%s1292_s3 + $0x78] sm:$0xff]  ;;  %866 = vst [vmem:[%s1288_s2 + $0x48] sm:$0xff] %v865_v22  ;;  %v871_v25 = vld [vmem:[%s1292_s3 + $0x90] sm:$0xff] }
  0xdc   : >> { %868 = vst [vmem:[%s1288_s2 + $0x60] sm:$0xff] %v867_v23  ;;  %870 = vst [vmem:[%s1288_s2 + $0x78] sm:$0xff] %v869_v24  ;;  %v873_v26 = vld [vmem:[%s1292_s3 + $0xa8] sm:$0xff]  ;;  %v875_v27 = vld [vmem:[%s1292_s3 + $0xc0] sm:$0xff]  ;;  %s2395_s6 = smov (%p992_p11, %s991_s6), 0 }
  0xdd   : >> { %872 = vst [vmem:[%s1288_s2 + $0x90] sm:$0xff] %v871_v25  ;;  %874 = vst [vmem:[%s1288_s2 + $0xa8] sm:$0xff] %v873_v26  ;;  %v877_v28 = vld [vmem:[%s1292_s3 + $0xd8] sm:$0xff]  ;;  %v879_v29 = vld [vmem:[%s1292_s3 + $0xf0] sm:$0xff]  ;;  %s994_s8 = smul.u32 528, %s2395_s6  ;;  %s2387_s4 = smov %s2395_s6 }
  0xde   : >> { %876 = vst [vmem:[%s1288_s2 + $0xc0] sm:$0xff] %v875_v27  ;;  %v881_v30 = vld [vmem:[%s1292_s3 + $0x108] sm:$0xff]  ;;  %878 = vst [vmem:[%s1288_s2 + $0xd8] sm:$0xff] %v877_v28  ;;  %v883_v31 = vld [vmem:[%s1292_s3 + $0x120] sm:$0xff] }
  0xdf   : >> { %880 = vst [vmem:[%s1288_s2 + $0xf0] sm:$0xff] %v879_v29  ;;  %882 = vst [vmem:[%s1288_s2 + $0x108] sm:$0xff] %v881_v30  ;;  %v885_v32 = vld [vmem:[%s1292_s3 + $0x138] sm:$0xff]  ;;  %v887_v33 = vld [vmem:[%s1292_s3 + $0x150] sm:$0xff]  ;;  %s2243_s9 = scalar_lea.vmem %s1367_s23, %s994_s8 [#allocation2]   ;;  %s2246_s11 = scalar_lea.vmem %s2164_s28, %s994_s8  }
  0xe0   : >> { %884 = vst [vmem:[%s1288_s2 + $0x120] sm:$0xff] %v883_v31  ;;  %886 = vst [vmem:[%s1288_s2 + $0x138] sm:$0xff] %v885_v32  ;;  %v889_v34 = vld [vmem:[%s1292_s3 + $0x168] sm:$0xff]  ;;  %v891_v35 = vld [vmem:[%s1292_s3 + $0x180] sm:$0xff] }
  0xe1   : >> { %888 = vst [vmem:[%s1288_s2 + $0x150] sm:$0xff] %v887_v33  ;;  %v893_v36 = vld [vmem:[%s1292_s3 + $0x198] sm:$0xff]  ;;  %890 = vst [vmem:[%s1288_s2 + $0x168] sm:$0xff] %v889_v34  ;;  %v895_v37 = vld [vmem:[%s1292_s3 + $0x1b0] sm:$0xff] }
  0xe2   : >> { %892 = vst [vmem:[%s1288_s2 + $0x180] sm:$0xff] %v891_v35  ;;  %894 = vst [vmem:[%s1288_s2 + $0x198] sm:$0xff] %v893_v36  ;;  %v897_v38 = vld [vmem:[%s1292_s3 + $0x1c8] sm:$0xff]  ;;  %v899_v39 = vld [vmem:[%s1292_s3 + $0x1e0] sm:$0xff] }
  0xe3   : >> { %896 = vst [vmem:[%s1288_s2 + $0x1b0] sm:$0xff] %v895_v37  ;;  %898 = vst [vmem:[%s1288_s2 + $0x1c8] sm:$0xff] %v897_v38  ;;  %v901_v40 = vld [vmem:[%s1292_s3 + $0x1f8] sm:$0xff]  ;;  %v903_v41 = vld [vmem:[%s1292_s3 + $0x8] sm:$0xff] }
  0xe4   : >> { %900 = vst [vmem:[%s1288_s2 + $0x1e0] sm:$0xff] %v899_v39  ;;  %v905_v42 = vld [vmem:[%s1292_s3 + $0x20] sm:$0xff]  ;;  %902 = vst [vmem:[%s1288_s2 + $0x1f8] sm:$0xff] %v901_v40  ;;  %v907_v43 = vld [vmem:[%s1292_s3 + $0x38] sm:$0xff] }
  0xe5   : >> { %904 = vst [vmem:[%s1288_s2 + $0x8] sm:$0xff] %v903_v41  ;;  %906 = vst [vmem:[%s1288_s2 + $0x20] sm:$0xff] %v905_v42  ;;  %v909_v44 = vld [vmem:[%s1292_s3 + $0x50] sm:$0xff]  ;;  %v911_v45 = vld [vmem:[%s1292_s3 + $0x68] sm:$0xff] }
  0xe6   : >> { %908 = vst [vmem:[%s1288_s2 + $0x38] sm:$0xff] %v907_v43  ;;  %910 = vst [vmem:[%s1288_s2 + $0x50] sm:$0xff] %v909_v44  ;;  %v913_v46 = vld [vmem:[%s1292_s3 + $0x80] sm:$0xff]  ;;  %v915_v47 = vld [vmem:[%s1292_s3 + $0x98] sm:$0xff] }
  0xe7   : >> { %912 = vst [vmem:[%s1288_s2 + $0x68] sm:$0xff] %v911_v45  ;;  %v917_v48 = vld [vmem:[%s1292_s3 + $0xb0] sm:$0xff]  ;;  %914 = vst [vmem:[%s1288_s2 + $0x80] sm:$0xff] %v913_v46  ;;  %v919_v49 = vld [vmem:[%s1292_s3 + $0xc8] sm:$0xff] }
  0xe8   : >> { %916 = vst [vmem:[%s1288_s2 + $0x98] sm:$0xff] %v915_v47  ;;  %918 = vst [vmem:[%s1288_s2 + $0xb0] sm:$0xff] %v917_v48  ;;  %v921_v50 = vld [vmem:[%s1292_s3 + $0xe0] sm:$0xff]  ;;  %v923_v51 = vld [vmem:[%s1292_s3 + $0xf8] sm:$0xff] }
  0xe9   : >> { %920 = vst [vmem:[%s1288_s2 + $0xc8] sm:$0xff] %v919_v49  ;;  %922 = vst [vmem:[%s1288_s2 + $0xe0] sm:$0xff] %v921_v50  ;;  %v925_v52 = vld [vmem:[%s1292_s3 + $0x110] sm:$0xff]  ;;  %v927_v53 = vld [vmem:[%s1292_s3 + $0x128] sm:$0xff] }
  0xea   : >> { %924 = vst [vmem:[%s1288_s2 + $0xf8] sm:$0xff] %v923_v51  ;;  %v929_v54 = vld [vmem:[%s1292_s3 + $0x140] sm:$0xff]  ;;  %926 = vst [vmem:[%s1288_s2 + $0x110] sm:$0xff] %v925_v52  ;;  %v931_v55 = vld [vmem:[%s1292_s3 + $0x158] sm:$0xff] }
  0xeb   : >> { %928 = vst [vmem:[%s1288_s2 + $0x128] sm:$0xff] %v927_v53  ;;  %930 = vst [vmem:[%s1288_s2 + $0x140] sm:$0xff] %v929_v54  ;;  %v933_v56 = vld [vmem:[%s1292_s3 + $0x170] sm:$0xff]  ;;  %v935_v57 = vld [vmem:[%s1292_s3 + $0x188] sm:$0xff] }
  0xec   : >> { %932 = vst [vmem:[%s1288_s2 + $0x158] sm:$0xff] %v931_v55  ;;  %934 = vst [vmem:[%s1288_s2 + $0x170] sm:$0xff] %v933_v56  ;;  %v937_v58 = vld [vmem:[%s1292_s3 + $0x1a0] sm:$0xff]  ;;  %v939_v59 = vld [vmem:[%s1292_s3 + $0x1b8] sm:$0xff] }
  0xed   : >> { %936 = vst [vmem:[%s1288_s2 + $0x188] sm:$0xff] %v935_v57  ;;  %v941_v60 = vld [vmem:[%s1292_s3 + $0x1d0] sm:$0xff]  ;;  %938 = vst [vmem:[%s1288_s2 + $0x1a0] sm:$0xff] %v937_v58  ;;  %v943_v61 = vld [vmem:[%s1292_s3 + $0x1e8] sm:$0xff] }
  0xee   : >> { %940 = vst [vmem:[%s1288_s2 + $0x1b8] sm:$0xff] %v939_v59  ;;  %942 = vst [vmem:[%s1288_s2 + $0x1d0] sm:$0xff] %v941_v60  ;;  %v945_v62 = vld [vmem:[%s1292_s3 + $0x200] sm:$0xff]  ;;  %v947_v63 = vld [vmem:[%s1292_s3 + $0x10] sm:$0xff] }
  0xef   : >> { %944 = vst [vmem:[%s1288_s2 + $0x1e8] sm:$0xff] %v943_v61  ;;  %946 = vst [vmem:[%s1288_s2 + $0x200] sm:$0xff] %v945_v62  ;;  %v949_v0 = vld [vmem:[%s1292_s3 + $0x28] sm:$0xff]  ;;  %v951_v1 = vld [vmem:[%s1292_s3 + $0x40] sm:$0xff] }
  0xf0   : >> { %948 = vst [vmem:[%s1288_s2 + $0x10] sm:$0xff] %v947_v63  ;;  %v953_v2 = vld [vmem:[%s1292_s3 + $0x58] sm:$0xff]  ;;  %950 = vst [vmem:[%s1288_s2 + $0x28] sm:$0xff] %v949_v0  ;;  %v955_v3 = vld [vmem:[%s1292_s3 + $0x70] sm:$0xff] }
  0xf1   : >> { %952 = vst [vmem:[%s1288_s2 + $0x40] sm:$0xff] %v951_v1  ;;  %954 = vst [vmem:[%s1288_s2 + $0x58] sm:$0xff] %v953_v2  ;;  %v957_v4 = vld [vmem:[%s1292_s3 + $0x88] sm:$0xff]  ;;  %v959_v5 = vld [vmem:[%s1292_s3 + $0xa0] sm:$0xff] }
  0xf2   : >> { %956 = vst [vmem:[%s1288_s2 + $0x70] sm:$0xff] %v955_v3  ;;  %958 = vst [vmem:[%s1288_s2 + $0x88] sm:$0xff] %v957_v4  ;;  %v961_v6 = vld [vmem:[%s1292_s3 + $0xb8] sm:$0xff]  ;;  %v963_v7 = vld [vmem:[%s1292_s3 + $0xd0] sm:$0xff] }
  0xf3   : >> { %960 = vst [vmem:[%s1288_s2 + $0xa0] sm:$0xff] %v959_v5  ;;  %v965_v8 = vld [vmem:[%s1292_s3 + $0xe8] sm:$0xff]  ;;  %962 = vst [vmem:[%s1288_s2 + $0xb8] sm:$0xff] %v961_v6  ;;  %v967_v9 = vld [vmem:[%s1292_s3 + $0x100] sm:$0xff] }
  0xf4   : >> { %964 = vst [vmem:[%s1288_s2 + $0xd0] sm:$0xff] %v963_v7  ;;  %966 = vst [vmem:[%s1288_s2 + $0xe8] sm:$0xff] %v965_v8  ;;  %v969_v10 = vld [vmem:[%s1292_s3 + $0x118] sm:$0xff]  ;;  %v971_v11 = vld [vmem:[%s1292_s3 + $0x130] sm:$0xff]  ;;  %855 = sbr.rel (!%p852_p12) target bundleno = 217 (0xd9), region = 86 }
  0xf5   : >> { %968 = vst [vmem:[%s1288_s2 + $0x100] sm:$0xff] %v967_v9  ;;  %970 = vst [vmem:[%s1288_s2 + $0x118] sm:$0xff] %v969_v10  ;;  %v973_v12 = vld [vmem:[%s1292_s3 + $0x148] sm:$0xff]  ;;  %v975_v13 = vld [vmem:[%s1292_s3 + $0x160] sm:$0xff] }
  0xf6   : >> { %972 = vst [vmem:[%s1288_s2 + $0x130] sm:$0xff] %v971_v11  ;;  %v977_v14 = vld [vmem:[%s1292_s3 + $0x178] sm:$0xff]  ;;  %974 = vst [vmem:[%s1288_s2 + $0x148] sm:$0xff] %v973_v12  ;;  %v979_v15 = vld [vmem:[%s1292_s3 + $0x190] sm:$0xff] }
  0xf7   : >> { %976 = vst [vmem:[%s1288_s2 + $0x160] sm:$0xff] %v975_v13  ;;  %978 = vst [vmem:[%s1288_s2 + $0x178] sm:$0xff] %v977_v14  ;;  %v981_v16 = vld [vmem:[%s1292_s3 + $0x1a8] sm:$0xff]  ;;  %v983_v17 = vld [vmem:[%s1292_s3 + $0x1c0] sm:$0xff] }
  0xf8   : >> { %980 = vst [vmem:[%s1288_s2 + $0x190] sm:$0xff] %v979_v15  ;;  %982 = vst [vmem:[%s1288_s2 + $0x1a8] sm:$0xff] %v981_v16  ;;  %v985_v18 = vld [vmem:[%s1292_s3 + $0x1d8] sm:$0xff]  ;;  %v987_v19 = vld [vmem:[%s1292_s3 + $0x1f0] sm:$0xff] }
  0xf9   : >> { %984 = vst [vmem:[%s1288_s2 + $0x1c0] sm:$0xff] %v983_v17  ;;  %v989_v20 = vld [vmem:[%s1292_s3 + $0x208] sm:$0xff]  ;;  %986 = vst [vmem:[%s1288_s2 + $0x1d8] sm:$0xff] %v985_v18  ;;  %s2386_s3 = smov %s2243_s9 }
  0xfa   : >> { %988 = vst [vmem:[%s1288_s2 + $0x1f0] sm:$0xff] %v987_v19  ;;  %990 = vst [vmem:[%s1288_s2 + $0x208] sm:$0xff] %v989_v20  ;;  %s2385_s2 = smov %s2246_s11 }
  0xfb PF: > { %1228 = sdivrem.u32 %s2393_s24, 22 }
  0xfc   : > { %s1128_s12 = smul.u32 528, %s2170_s30 }
  0xfe   : > { %s2351_s14 = scalar_lea.vmem %s1367_s23, %s1128_s12 [#allocation2]   ;;  %s2354_s15 = scalar_lea.vmem %s2164_s28, %s1128_s12  }
 0x104   : > { %s2356_s16 = spop.drf %1228 }
 0x105   : > { %p1130_p13 = scmp.le.s32.totalorder %s2356_s16, 0 }
 0x106   : > { %s2388_s17 = smov (!%p1130_p13), %s2354_s15  ;;  %s1306_s18 = smov (!%p1130_p13), %s2351_s14  }
 0x107   : > { %1087 = sbr.rel (%p1130_p13) target bundleno = 280 (0x118), region = 91  ;;  %s1310_s19 = smov (!%p1130_p13), 0  }
 0x108   : > { %s1314_s20 = smov (!%p1130_p13), 0  }
 0x10e LB: >> { %v1014_v21 = vld [vmem:[%s1308_s18] sm:$0xff]  ;;  %v1016_v22 = vld [vmem:[%s1308_s18 + $0x8] sm:$0xff]  ;;  %v1018_v23 = vld [vmem:[%s1308_s18 + $0x10] sm:$0xff]  ;;  %s1020_s21 = sadd.s32 1, %s1312_s19  ;;  %s1008_s20 = sadd.s32 1, %s1316_s20   ;;  %s1316_s20 = sphi %s1314_s20, %s1008_s20   ;;  %s1312_s19 = sphi %s1310_s19, %s1311_s19   ;;  %s1308_s18 = sphi %s1306_s18, %s1025_s18   ;;  %s1304_s17 = sphi %s2388_s17, %s1026_s17  }
 0x10f   : >> { %1015 = vst [vmem:[%s1304_s17] sm:$0xff] %v1014_v21  ;;  %1017 = vst [vmem:[%s1304_s17 + $0x8] sm:$0xff] %v1016_v22  ;;  %p1021_p0 = scmp.ge.s32.totalorder %s1020_s21, %s2356_s16  ;;  %p1007_p1 = scmp.ge.s32.totalorder %s1008_s20, %s2356_s16 }
 0x110   : >> { %1019 = vst [vmem:[%s1304_s17 + $0x10] sm:$0xff] %v1018_v23 }
 0x111   : >> { %s2397_s21 = smov (%p1021_p0, %s1020_s21), 0  ;;  %1010 = sbr.rel (!%p1007_p1) target bundleno = 270 (0x10e), region = 97 }
 0x112   : >> { %s1023_s22 = smul.u32 24, %s2397_s21  ;;  %s1311_s19 = smov %s2397_s21  }
 0x114   : >> { %s1025_s18 = scalar_lea.vmem %s2351_s14, %s1023_s22 [#allocation2]   ;;  %s1026_s17 = scalar_lea.vmem %s2354_s15, %s1023_s22  }
 0x118 PF: > { %p8_p2 = scmp.ge.s32.totalorder %s1341_s10, 4   ;;  %s2389_s6 = smov %s1280_s7 }
 0x119   : > { %s2390_s7 = smov %s1348_s13  ;;  %s2391_s8 = smov %s1341_s10 }
 0x11a   :  { %10 = sbr.rel (!%p8_p2) target bundleno = 2 (0x2), region = 108 }

// kernel: _any_identity_impl.5
= control target key start
LH: loop header
LB: loop body
LE: loop exit
PB: predicated region body
PF: predicated region fallthrough
CT: control target
= control target key end

     0   :  { %s736_s6 = smov 0   ;;  %s1269_s0 = inlined_call_operand.vmem [shape: bf16[512,2048], index: 0, kind: input, shape index: {}]   ;;  %s1270_s1 = inlined_call_operand.vmem [shape: bf16[512,2048], index: 1, kind: output, shape index: {}]  }
   0x1 LB: > { %s695_s7 = sadd.s32 4294967295, %s724_s6   ;;  %p699_p0 = scmp.ge.s32.totalorder %s724_s6, 1  ;;  %s724_s6 = sphi %s736_s6, %s11_s6  }
   0x2   : > { %p89_p1 = scmp.lt.s32.totalorder %s724_s6, 3 }
   0x4   : > { %p90_p2 = pnand %p699_p0, %p89_p1 }
   0x5   : > { %s700_s8 = sshll.u32 (!%p90_p2), %s695_s7, 5 }
   0x6   : > { %93 = sbr.rel (%p90_p2) target bundleno = 145 (0x91), region = 24  ;;  %p112_p3 = scmp.lt.s32.totalorder (!%p90_p2), %s700_s8, 63 }
   0xd   : > { %s1272_s8 = smov (!%p112_p3, %s700_s8), 63 }
   0xe   : > { %s708_s9 = sshll.u32 %s1272_s8, 6 }
   0xf   : > { %s747_s12 = scalar_lea.vmem %s1269_s0, %s708_s9  ;;  %s752_s15 = scalar_lea.vmem %s1270_s1, %s708_s9 }
  0x10   : > { %v125_v0 = vld [vmem:[%s747_s12] sm:$0xff]  ;;  %v126_v1 = vld [vmem:[%s747_s12 + $0x8] sm:$0xff]  ;;  %v127_v2 = vld [vmem:[%s747_s12 + $0x10] sm:$0xff] }
  0x11   : > { %381 = vst [vmem:[%s752_s15] sm:$0xff] %v125_v0  ;;  %382 = vst [vmem:[%s752_s15 + $0x8] sm:$0xff] %v126_v1  ;;  %v128_v3 = vld [vmem:[%s747_s12 + $0x18] sm:$0xff]  ;;  %v129_v4 = vld [vmem:[%s747_s12 + $0x20] sm:$0xff] }
  0x12   : > { %383 = vst [vmem:[%s752_s15 + $0x10] sm:$0xff] %v127_v2  ;;  %v130_v5 = vld [vmem:[%s747_s12 + $0x28] sm:$0xff]  ;;  %384 = vst [vmem:[%s752_s15 + $0x18] sm:$0xff] %v128_v3  ;;  %v131_v6 = vld [vmem:[%s747_s12 + $0x30] sm:$0xff] }
  0x13   : > { %385 = vst [vmem:[%s752_s15 + $0x20] sm:$0xff] %v129_v4  ;;  %386 = vst [vmem:[%s752_s15 + $0x28] sm:$0xff] %v130_v5  ;;  %v132_v7 = vld [vmem:[%s747_s12 + $0x38] sm:$0xff]  ;;  %v133_v8 = vld [vmem:[%s747_s12 + $0x40] sm:$0xff] }
  0x14   : > { %387 = vst [vmem:[%s752_s15 + $0x30] sm:$0xff] %v131_v6  ;;  %388 = vst [vmem:[%s752_s15 + $0x38] sm:$0xff] %v132_v7  ;;  %v134_v9 = vld [vmem:[%s747_s12 + $0x48] sm:$0xff]  ;;  %v135_v10 = vld [vmem:[%s747_s12 + $0x50] sm:$0xff] }
  0x15   : > { %389 = vst [vmem:[%s752_s15 + $0x40] sm:$0xff] %v133_v8  ;;  %v136_v11 = vld [vmem:[%s747_s12 + $0x58] sm:$0xff]  ;;  %390 = vst [vmem:[%s752_s15 + $0x48] sm:$0xff] %v134_v9  ;;  %v137_v12 = vld [vmem:[%s747_s12 + $0x60] sm:$0xff] }
  0x16   : > { %391 = vst [vmem:[%s752_s15 + $0x50] sm:$0xff] %v135_v10  ;;  %392 = vst [vmem:[%s752_s15 + $0x58] sm:$0xff] %v136_v11  ;;  %v138_v13 = vld [vmem:[%s747_s12 + $0x68] sm:$0xff]  ;;  %v139_v14 = vld [vmem:[%s747_s12 + $0x70] sm:$0xff] }
  0x17   : > { %393 = vst [vmem:[%s752_s15 + $0x60] sm:$0xff] %v137_v12  ;;  %394 = vst [vmem:[%s752_s15 + $0x68] sm:$0xff] %v138_v13  ;;  %v140_v15 = vld [vmem:[%s747_s12 + $0x78] sm:$0xff]  ;;  %v141_v16 = vld [vmem:[%s747_s12 + $0x80] sm:$0xff] }
  0x18   : > { %395 = vst [vmem:[%s752_s15 + $0x70] sm:$0xff] %v139_v14  ;;  %v142_v17 = vld [vmem:[%s747_s12 + $0x88] sm:$0xff]  ;;  %396 = vst [vmem:[%s752_s15 + $0x78] sm:$0xff] %v140_v15  ;;  %v143_v18 = vld [vmem:[%s747_s12 + $0x90] sm:$0xff] }
  0x19   : > { %397 = vst [vmem:[%s752_s15 + $0x80] sm:$0xff] %v141_v16  ;;  %398 = vst [vmem:[%s752_s15 + $0x88] sm:$0xff] %v142_v17  ;;  %v144_v19 = vld [vmem:[%s747_s12 + $0x98] sm:$0xff]  ;;  %v145_v20 = vld [vmem:[%s747_s12 + $0xa0] sm:$0xff] }
  0x1a   : > { %399 = vst [vmem:[%s752_s15 + $0x90] sm:$0xff] %v143_v18  ;;  %400 = vst [vmem:[%s752_s15 + $0x98] sm:$0xff] %v144_v19  ;;  %v146_v21 = vld [vmem:[%s747_s12 + $0xa8] sm:$0xff]  ;;  %v147_v22 = vld [vmem:[%s747_s12 + $0xb0] sm:$0xff] }
  0x1b   : > { %401 = vst [vmem:[%s752_s15 + $0xa0] sm:$0xff] %v145_v20  ;;  %v148_v23 = vld [vmem:[%s747_s12 + $0xb8] sm:$0xff]  ;;  %402 = vst [vmem:[%s752_s15 + $0xa8] sm:$0xff] %v146_v21  ;;  %v149_v24 = vld [vmem:[%s747_s12 + $0xc0] sm:$0xff] }
  0x1c   : > { %403 = vst [vmem:[%s752_s15 + $0xb0] sm:$0xff] %v147_v22  ;;  %404 = vst [vmem:[%s752_s15 + $0xb8] sm:$0xff] %v148_v23  ;;  %v150_v25 = vld [vmem:[%s747_s12 + $0xc8] sm:$0xff]  ;;  %v151_v26 = vld [vmem:[%s747_s12 + $0xd0] sm:$0xff] }
  0x1d   : > { %405 = vst [vmem:[%s752_s15 + $0xc0] sm:$0xff] %v149_v24  ;;  %406 = vst [vmem:[%s752_s15 + $0xc8] sm:$0xff] %v150_v25  ;;  %v152_v27 = vld [vmem:[%s747_s12 + $0xd8] sm:$0xff]  ;;  %v153_v28 = vld [vmem:[%s747_s12 + $0xe0] sm:$0xff] }
  0x1e   : > { %407 = vst [vmem:[%s752_s15 + $0xd0] sm:$0xff] %v151_v26  ;;  %v154_v29 = vld [vmem:[%s747_s12 + $0xe8] sm:$0xff]  ;;  %408 = vst [vmem:[%s752_s15 + $0xd8] sm:$0xff] %v152_v27  ;;  %v155_v30 = vld [vmem:[%s747_s12 + $0xf0] sm:$0xff] }
  0x1f   : > { %409 = vst [vmem:[%s752_s15 + $0xe0] sm:$0xff] %v153_v28  ;;  %410 = vst [vmem:[%s752_s15 + $0xe8] sm:$0xff] %v154_v29  ;;  %v156_v31 = vld [vmem:[%s747_s12 + $0xf8] sm:$0xff]  ;;  %v157_v32 = vld [vmem:[%s747_s12 + $0x100] sm:$0xff] }
  0x20   : > { %411 = vst [vmem:[%s752_s15 + $0xf0] sm:$0xff] %v155_v30  ;;  %412 = vst [vmem:[%s752_s15 + $0xf8] sm:$0xff] %v156_v31  ;;  %v158_v33 = vld [vmem:[%s747_s12 + $0x108] sm:$0xff]  ;;  %v159_v34 = vld [vmem:[%s747_s12 + $0x110] sm:$0xff] }
  0x21   : > { %413 = vst [vmem:[%s752_s15 + $0x100] sm:$0xff] %v157_v32  ;;  %v160_v35 = vld [vmem:[%s747_s12 + $0x118] sm:$0xff]  ;;  %414 = vst [vmem:[%s752_s15 + $0x108] sm:$0xff] %v158_v33  ;;  %v161_v36 = vld [vmem:[%s747_s12 + $0x120] sm:$0xff] }
  0x22   : > { %415 = vst [vmem:[%s752_s15 + $0x110] sm:$0xff] %v159_v34  ;;  %416 = vst [vmem:[%s752_s15 + $0x118] sm:$0xff] %v160_v35  ;;  %v162_v37 = vld [vmem:[%s747_s12 + $0x128] sm:$0xff]  ;;  %v163_v38 = vld [vmem:[%s747_s12 + $0x130] sm:$0xff] }
  0x23   : > { %417 = vst [vmem:[%s752_s15 + $0x120] sm:$0xff] %v161_v36  ;;  %418 = vst [vmem:[%s752_s15 + $0x128] sm:$0xff] %v162_v37  ;;  %v164_v39 = vld [vmem:[%s747_s12 + $0x138] sm:$0xff]  ;;  %v165_v40 = vld [vmem:[%s747_s12 + $0x140] sm:$0xff] }
  0x24   : > { %419 = vst [vmem:[%s752_s15 + $0x130] sm:$0xff] %v163_v38  ;;  %v166_v41 = vld [vmem:[%s747_s12 + $0x148] sm:$0xff]  ;;  %420 = vst [vmem:[%s752_s15 + $0x138] sm:$0xff] %v164_v39  ;;  %v167_v42 = vld [vmem:[%s747_s12 + $0x150] sm:$0xff] }
  0x25   : > { %421 = vst [vmem:[%s752_s15 + $0x140] sm:$0xff] %v165_v40  ;;  %422 = vst [vmem:[%s752_s15 + $0x148] sm:$0xff] %v166_v41  ;;  %v168_v43 = vld [vmem:[%s747_s12 + $0x158] sm:$0xff]  ;;  %v169_v44 = vld [vmem:[%s747_s12 + $0x160] sm:$0xff] }
  0x26   : > { %423 = vst [vmem:[%s752_s15 + $0x150] sm:$0xff] %v167_v42  ;;  %424 = vst [vmem:[%s752_s15 + $0x158] sm:$0xff] %v168_v43  ;;  %v170_v45 = vld [vmem:[%s747_s12 + $0x168] sm:$0xff]  ;;  %v171_v46 = vld [vmem:[%s747_s12 + $0x170] sm:$0xff] }
  0x27   : > { %425 = vst [vmem:[%s752_s15 + $0x160] sm:$0xff] %v169_v44  ;;  %v172_v47 = vld [vmem:[%s747_s12 + $0x178] sm:$0xff]  ;;  %426 = vst [vmem:[%s752_s15 + $0x168] sm:$0xff] %v170_v45  ;;  %v173_v48 = vld [vmem:[%s747_s12 + $0x180] sm:$0xff] }
  0x28   : > { %427 = vst [vmem:[%s752_s15 + $0x170] sm:$0xff] %v171_v46  ;;  %428 = vst [vmem:[%s752_s15 + $0x178] sm:$0xff] %v172_v47  ;;  %v174_v49 = vld [vmem:[%s747_s12 + $0x188] sm:$0xff]  ;;  %v175_v50 = vld [vmem:[%s747_s12 + $0x190] sm:$0xff] }
  0x29   : > { %429 = vst [vmem:[%s752_s15 + $0x180] sm:$0xff] %v173_v48  ;;  %430 = vst [vmem:[%s752_s15 + $0x188] sm:$0xff] %v174_v49  ;;  %v176_v51 = vld [vmem:[%s747_s12 + $0x198] sm:$0xff]  ;;  %v177_v52 = vld [vmem:[%s747_s12 + $0x1a0] sm:$0xff] }
  0x2a   : > { %431 = vst [vmem:[%s752_s15 + $0x190] sm:$0xff] %v175_v50  ;;  %v178_v53 = vld [vmem:[%s747_s12 + $0x1a8] sm:$0xff]  ;;  %432 = vst [vmem:[%s752_s15 + $0x198] sm:$0xff] %v176_v51  ;;  %v179_v54 = vld [vmem:[%s747_s12 + $0x1b0] sm:$0xff] }
  0x2b   : > { %433 = vst [vmem:[%s752_s15 + $0x1a0] sm:$0xff] %v177_v52  ;;  %434 = vst [vmem:[%s752_s15 + $0x1a8] sm:$0xff] %v178_v53  ;;  %v180_v55 = vld [vmem:[%s747_s12 + $0x1b8] sm:$0xff]  ;;  %v181_v56 = vld [vmem:[%s747_s12 + $0x1c0] sm:$0xff] }
  0x2c   : > { %435 = vst [vmem:[%s752_s15 + $0x1b0] sm:$0xff] %v179_v54  ;;  %436 = vst [vmem:[%s752_s15 + $0x1b8] sm:$0xff] %v180_v55  ;;  %v182_v57 = vld [vmem:[%s747_s12 + $0x1c8] sm:$0xff]  ;;  %v183_v58 = vld [vmem:[%s747_s12 + $0x1d0] sm:$0xff] }
  0x2d   : > { %437 = vst [vmem:[%s752_s15 + $0x1c0] sm:$0xff] %v181_v56  ;;  %v184_v59 = vld [vmem:[%s747_s12 + $0x1d8] sm:$0xff]  ;;  %438 = vst [vmem:[%s752_s15 + $0x1c8] sm:$0xff] %v182_v57  ;;  %v185_v60 = vld [vmem:[%s747_s12 + $0x1e0] sm:$0xff] }
  0x2e   : > { %439 = vst [vmem:[%s752_s15 + $0x1d0] sm:$0xff] %v183_v58  ;;  %440 = vst [vmem:[%s752_s15 + $0x1d8] sm:$0xff] %v184_v59  ;;  %v186_v61 = vld [vmem:[%s747_s12 + $0x1e8] sm:$0xff]  ;;  %v187_v62 = vld [vmem:[%s747_s12 + $0x1f0] sm:$0xff] }
  0x2f   : > { %441 = vst [vmem:[%s752_s15 + $0x1e0] sm:$0xff] %v185_v60  ;;  %442 = vst [vmem:[%s752_s15 + $0x1e8] sm:$0xff] %v186_v61  ;;  %v188_v63 = vld [vmem:[%s747_s12 + $0x1f8] sm:$0xff]  ;;  %v189_v0 = vld [vmem:[%s747_s12 + $0x200] sm:$0xff] }
  0x30   : > { %443 = vst [vmem:[%s752_s15 + $0x1f0] sm:$0xff] %v187_v62  ;;  %v190_v1 = vld [vmem:[%s747_s12 + $0x208] sm:$0xff]  ;;  %444 = vst [vmem:[%s752_s15 + $0x1f8] sm:$0xff] %v188_v63  ;;  %v191_v2 = vld [vmem:[%s747_s12 + $0x210] sm:$0xff] }
  0x31   : > { %445 = vst [vmem:[%s752_s15 + $0x200] sm:$0xff] %v189_v0  ;;  %446 = vst [vmem:[%s752_s15 + $0x208] sm:$0xff] %v190_v1  ;;  %v192_v3 = vld [vmem:[%s747_s12 + $0x218] sm:$0xff]  ;;  %v193_v4 = vld [vmem:[%s747_s12 + $0x220] sm:$0xff] }
  0x32   : > { %447 = vst [vmem:[%s752_s15 + $0x210] sm:$0xff] %v191_v2  ;;  %448 = vst [vmem:[%s752_s15 + $0x218] sm:$0xff] %v192_v3  ;;  %v194_v5 = vld [vmem:[%s747_s12 + $0x228] sm:$0xff]  ;;  %v195_v6 = vld [vmem:[%s747_s12 + $0x230] sm:$0xff] }
  0x33   : > { %449 = vst [vmem:[%s752_s15 + $0x220] sm:$0xff] %v193_v4  ;;  %v196_v7 = vld [vmem:[%s747_s12 + $0x238] sm:$0xff]  ;;  %450 = vst [vmem:[%s752_s15 + $0x228] sm:$0xff] %v194_v5  ;;  %v197_v8 = vld [vmem:[%s747_s12 + $0x240] sm:$0xff] }
  0x34   : > { %451 = vst [vmem:[%s752_s15 + $0x230] sm:$0xff] %v195_v6  ;;  %452 = vst [vmem:[%s752_s15 + $0x238] sm:$0xff] %v196_v7  ;;  %v198_v9 = vld [vmem:[%s747_s12 + $0x248] sm:$0xff]  ;;  %v199_v10 = vld [vmem:[%s747_s12 + $0x250] sm:$0xff] }
  0x35   : > { %453 = vst [vmem:[%s752_s15 + $0x240] sm:$0xff] %v197_v8  ;;  %454 = vst [vmem:[%s752_s15 + $0x248] sm:$0xff] %v198_v9  ;;  %v200_v11 = vld [vmem:[%s747_s12 + $0x258] sm:$0xff]  ;;  %v201_v12 = vld [vmem:[%s747_s12 + $0x260] sm:$0xff] }
  0x36   : > { %455 = vst [vmem:[%s752_s15 + $0x250] sm:$0xff] %v199_v10  ;;  %v202_v13 = vld [vmem:[%s747_s12 + $0x268] sm:$0xff]  ;;  %456 = vst [vmem:[%s752_s15 + $0x258] sm:$0xff] %v200_v11  ;;  %v203_v14 = vld [vmem:[%s747_s12 + $0x270] sm:$0xff] }
  0x37   : > { %457 = vst [vmem:[%s752_s15 + $0x260] sm:$0xff] %v201_v12  ;;  %458 = vst [vmem:[%s752_s15 + $0x268] sm:$0xff] %v202_v13  ;;  %v204_v15 = vld [vmem:[%s747_s12 + $0x278] sm:$0xff]  ;;  %v205_v16 = vld [vmem:[%s747_s12 + $0x280] sm:$0xff] }
  0x38   : > { %459 = vst [vmem:[%s752_s15 + $0x270] sm:$0xff] %v203_v14  ;;  %460 = vst [vmem:[%s752_s15 + $0x278] sm:$0xff] %v204_v15  ;;  %v206_v17 = vld [vmem:[%s747_s12 + $0x288] sm:$0xff]  ;;  %v207_v18 = vld [vmem:[%s747_s12 + $0x290] sm:$0xff] }
  0x39   : > { %461 = vst [vmem:[%s752_s15 + $0x280] sm:$0xff] %v205_v16  ;;  %v208_v19 = vld [vmem:[%s747_s12 + $0x298] sm:$0xff]  ;;  %462 = vst [vmem:[%s752_s15 + $0x288] sm:$0xff] %v206_v17  ;;  %v209_v20 = vld [vmem:[%s747_s12 + $0x2a0] sm:$0xff] }
  0x3a   : > { %463 = vst [vmem:[%s752_s15 + $0x290] sm:$0xff] %v207_v18  ;;  %464 = vst [vmem:[%s752_s15 + $0x298] sm:$0xff] %v208_v19  ;;  %v210_v21 = vld [vmem:[%s747_s12 + $0x2a8] sm:$0xff]  ;;  %v211_v22 = vld [vmem:[%s747_s12 + $0x2b0] sm:$0xff] }
  0x3b   : > { %465 = vst [vmem:[%s752_s15 + $0x2a0] sm:$0xff] %v209_v20  ;;  %466 = vst [vmem:[%s752_s15 + $0x2a8] sm:$0xff] %v210_v21  ;;  %v212_v23 = vld [vmem:[%s747_s12 + $0x2b8] sm:$0xff]  ;;  %v213_v24 = vld [vmem:[%s747_s12 + $0x2c0] sm:$0xff] }
  0x3c   : > { %467 = vst [vmem:[%s752_s15 + $0x2b0] sm:$0xff] %v211_v22  ;;  %v214_v25 = vld [vmem:[%s747_s12 + $0x2c8] sm:$0xff]  ;;  %468 = vst [vmem:[%s752_s15 + $0x2b8] sm:$0xff] %v212_v23  ;;  %v215_v26 = vld [vmem:[%s747_s12 + $0x2d0] sm:$0xff] }
  0x3d   : > { %469 = vst [vmem:[%s752_s15 + $0x2c0] sm:$0xff] %v213_v24  ;;  %470 = vst [vmem:[%s752_s15 + $0x2c8] sm:$0xff] %v214_v25  ;;  %v216_v27 = vld [vmem:[%s747_s12 + $0x2d8] sm:$0xff]  ;;  %v217_v28 = vld [vmem:[%s747_s12 + $0x2e0] sm:$0xff] }
  0x3e   : > { %471 = vst [vmem:[%s752_s15 + $0x2d0] sm:$0xff] %v215_v26  ;;  %472 = vst [vmem:[%s752_s15 + $0x2d8] sm:$0xff] %v216_v27  ;;  %v218_v29 = vld [vmem:[%s747_s12 + $0x2e8] sm:$0xff]  ;;  %v219_v30 = vld [vmem:[%s747_s12 + $0x2f0] sm:$0xff] }
  0x3f   : > { %473 = vst [vmem:[%s752_s15 + $0x2e0] sm:$0xff] %v217_v28  ;;  %v220_v31 = vld [vmem:[%s747_s12 + $0x2f8] sm:$0xff]  ;;  %474 = vst [vmem:[%s752_s15 + $0x2e8] sm:$0xff] %v218_v29  ;;  %v221_v32 = vld [vmem:[%s747_s12 + $0x300] sm:$0xff] }
  0x40   : > { %475 = vst [vmem:[%s752_s15 + $0x2f0] sm:$0xff] %v219_v30  ;;  %476 = vst [vmem:[%s752_s15 + $0x2f8] sm:$0xff] %v220_v31  ;;  %v222_v33 = vld [vmem:[%s747_s12 + $0x308] sm:$0xff]  ;;  %v223_v34 = vld [vmem:[%s747_s12 + $0x310] sm:$0xff] }
  0x41   : > { %477 = vst [vmem:[%s752_s15 + $0x300] sm:$0xff] %v221_v32  ;;  %478 = vst [vmem:[%s752_s15 + $0x308] sm:$0xff] %v222_v33  ;;  %v224_v35 = vld [vmem:[%s747_s12 + $0x318] sm:$0xff]  ;;  %v225_v36 = vld [vmem:[%s747_s12 + $0x320] sm:$0xff] }
  0x42   : > { %479 = vst [vmem:[%s752_s15 + $0x310] sm:$0xff] %v223_v34  ;;  %v226_v37 = vld [vmem:[%s747_s12 + $0x328] sm:$0xff]  ;;  %480 = vst [vmem:[%s752_s15 + $0x318] sm:$0xff] %v224_v35  ;;  %v227_v38 = vld [vmem:[%s747_s12 + $0x330] sm:$0xff] }
  0x43   : > { %481 = vst [vmem:[%s752_s15 + $0x320] sm:$0xff] %v225_v36  ;;  %482 = vst [vmem:[%s752_s15 + $0x328] sm:$0xff] %v226_v37  ;;  %v228_v39 = vld [vmem:[%s747_s12 + $0x338] sm:$0xff]  ;;  %v229_v40 = vld [vmem:[%s747_s12 + $0x340] sm:$0xff] }
  0x44   : > { %483 = vst [vmem:[%s752_s15 + $0x330] sm:$0xff] %v227_v38  ;;  %484 = vst [vmem:[%s752_s15 + $0x338] sm:$0xff] %v228_v39  ;;  %v230_v41 = vld [vmem:[%s747_s12 + $0x348] sm:$0xff]  ;;  %v231_v42 = vld [vmem:[%s747_s12 + $0x350] sm:$0xff] }
  0x45   : > { %485 = vst [vmem:[%s752_s15 + $0x340] sm:$0xff] %v229_v40  ;;  %v232_v43 = vld [vmem:[%s747_s12 + $0x358] sm:$0xff]  ;;  %486 = vst [vmem:[%s752_s15 + $0x348] sm:$0xff] %v230_v41  ;;  %v233_v44 = vld [vmem:[%s747_s12 + $0x360] sm:$0xff] }
  0x46   : > { %487 = vst [vmem:[%s752_s15 + $0x350] sm:$0xff] %v231_v42  ;;  %488 = vst [vmem:[%s752_s15 + $0x358] sm:$0xff] %v232_v43  ;;  %v234_v45 = vld [vmem:[%s747_s12 + $0x368] sm:$0xff]  ;;  %v235_v46 = vld [vmem:[%s747_s12 + $0x370] sm:$0xff] }
  0x47   : > { %489 = vst [vmem:[%s752_s15 + $0x360] sm:$0xff] %v233_v44  ;;  %490 = vst [vmem:[%s752_s15 + $0x368] sm:$0xff] %v234_v45  ;;  %v236_v47 = vld [vmem:[%s747_s12 + $0x378] sm:$0xff]  ;;  %v237_v48 = vld [vmem:[%s747_s12 + $0x380] sm:$0xff] }
  0x48   : > { %491 = vst [vmem:[%s752_s15 + $0x370] sm:$0xff] %v235_v46  ;;  %v238_v49 = vld [vmem:[%s747_s12 + $0x388] sm:$0xff]  ;;  %492 = vst [vmem:[%s752_s15 + $0x378] sm:$0xff] %v236_v47  ;;  %v239_v50 = vld [vmem:[%s747_s12 + $0x390] sm:$0xff] }
  0x49   : > { %493 = vst [vmem:[%s752_s15 + $0x380] sm:$0xff] %v237_v48  ;;  %494 = vst [vmem:[%s752_s15 + $0x388] sm:$0xff] %v238_v49  ;;  %v240_v51 = vld [vmem:[%s747_s12 + $0x398] sm:$0xff]  ;;  %v241_v52 = vld [vmem:[%s747_s12 + $0x3a0] sm:$0xff] }
  0x4a   : > { %495 = vst [vmem:[%s752_s15 + $0x390] sm:$0xff] %v239_v50  ;;  %496 = vst [vmem:[%s752_s15 + $0x398] sm:$0xff] %v240_v51  ;;  %v242_v53 = vld [vmem:[%s747_s12 + $0x3a8] sm:$0xff]  ;;  %v243_v54 = vld [vmem:[%s747_s12 + $0x3b0] sm:$0xff] }
  0x4b   : > { %497 = vst [vmem:[%s752_s15 + $0x3a0] sm:$0xff] %v241_v52  ;;  %v244_v55 = vld [vmem:[%s747_s12 + $0x3b8] sm:$0xff]  ;;  %498 = vst [vmem:[%s752_s15 + $0x3a8] sm:$0xff] %v242_v53  ;;  %v245_v56 = vld [vmem:[%s747_s12 + $0x3c0] sm:$0xff] }
  0x4c   : > { %499 = vst [vmem:[%s752_s15 + $0x3b0] sm:$0xff] %v243_v54  ;;  %500 = vst [vmem:[%s752_s15 + $0x3b8] sm:$0xff] %v244_v55  ;;  %v246_v57 = vld [vmem:[%s747_s12 + $0x3c8] sm:$0xff]  ;;  %v247_v58 = vld [vmem:[%s747_s12 + $0x3d0] sm:$0xff] }
  0x4d   : > { %501 = vst [vmem:[%s752_s15 + $0x3c0] sm:$0xff] %v245_v56  ;;  %502 = vst [vmem:[%s752_s15 + $0x3c8] sm:$0xff] %v246_v57  ;;  %v248_v59 = vld [vmem:[%s747_s12 + $0x3d8] sm:$0xff]  ;;  %v249_v60 = vld [vmem:[%s747_s12 + $0x3e0] sm:$0xff] }
  0x4e   : > { %503 = vst [vmem:[%s752_s15 + $0x3d0] sm:$0xff] %v247_v58  ;;  %v250_v61 = vld [vmem:[%s747_s12 + $0x3e8] sm:$0xff]  ;;  %504 = vst [vmem:[%s752_s15 + $0x3d8] sm:$0xff] %v248_v59  ;;  %v251_v62 = vld [vmem:[%s747_s12 + $0x3f0] sm:$0xff] }
  0x4f   : > { %505 = vst [vmem:[%s752_s15 + $0x3e0] sm:$0xff] %v249_v60  ;;  %506 = vst [vmem:[%s752_s15 + $0x3e8] sm:$0xff] %v250_v61  ;;  %v252_v63 = vld [vmem:[%s747_s12 + $0x3f8] sm:$0xff]  ;;  %v253_v0 = vld [vmem:[%s747_s12 + $0x400] sm:$0xff] }
  0x50   : > { %507 = vst [vmem:[%s752_s15 + $0x3f0] sm:$0xff] %v251_v62  ;;  %508 = vst [vmem:[%s752_s15 + $0x3f8] sm:$0xff] %v252_v63  ;;  %v254_v1 = vld [vmem:[%s747_s12 + $0x408] sm:$0xff]  ;;  %v255_v2 = vld [vmem:[%s747_s12 + $0x410] sm:$0xff] }
  0x51   : > { %509 = vst [vmem:[%s752_s15 + $0x400] sm:$0xff] %v253_v0  ;;  %v256_v3 = vld [vmem:[%s747_s12 + $0x418] sm:$0xff]  ;;  %510 = vst [vmem:[%s752_s15 + $0x408] sm:$0xff] %v254_v1  ;;  %v257_v4 = vld [vmem:[%s747_s12 + $0x420] sm:$0xff] }
  0x52   : > { %511 = vst [vmem:[%s752_s15 + $0x410] sm:$0xff] %v255_v2  ;;  %512 = vst [vmem:[%s752_s15 + $0x418] sm:$0xff] %v256_v3  ;;  %v258_v5 = vld [vmem:[%s747_s12 + $0x428] sm:$0xff]  ;;  %v259_v6 = vld [vmem:[%s747_s12 + $0x430] sm:$0xff] }
  0x53   : > { %513 = vst [vmem:[%s752_s15 + $0x420] sm:$0xff] %v257_v4  ;;  %514 = vst [vmem:[%s752_s15 + $0x428] sm:$0xff] %v258_v5  ;;  %v260_v7 = vld [vmem:[%s747_s12 + $0x438] sm:$0xff]  ;;  %v261_v8 = vld [vmem:[%s747_s12 + $0x440] sm:$0xff] }
  0x54   : > { %515 = vst [vmem:[%s752_s15 + $0x430] sm:$0xff] %v259_v6  ;;  %v262_v9 = vld [vmem:[%s747_s12 + $0x448] sm:$0xff]  ;;  %516 = vst [vmem:[%s752_s15 + $0x438] sm:$0xff] %v260_v7  ;;  %v263_v10 = vld [vmem:[%s747_s12 + $0x450] sm:$0xff] }
  0x55   : > { %517 = vst [vmem:[%s752_s15 + $0x440] sm:$0xff] %v261_v8  ;;  %518 = vst [vmem:[%s752_s15 + $0x448] sm:$0xff] %v262_v9  ;;  %v264_v11 = vld [vmem:[%s747_s12 + $0x458] sm:$0xff]  ;;  %v265_v12 = vld [vmem:[%s747_s12 + $0x460] sm:$0xff] }
  0x56   : > { %519 = vst [vmem:[%s752_s15 + $0x450] sm:$0xff] %v263_v10  ;;  %520 = vst [vmem:[%s752_s15 + $0x458] sm:$0xff] %v264_v11  ;;  %v266_v13 = vld [vmem:[%s747_s12 + $0x468] sm:$0xff]  ;;  %v267_v14 = vld [vmem:[%s747_s12 + $0x470] sm:$0xff] }
  0x57   : > { %521 = vst [vmem:[%s752_s15 + $0x460] sm:$0xff] %v265_v12  ;;  %v268_v15 = vld [vmem:[%s747_s12 + $0x478] sm:$0xff]  ;;  %522 = vst [vmem:[%s752_s15 + $0x468] sm:$0xff] %v266_v13  ;;  %v269_v16 = vld [vmem:[%s747_s12 + $0x480] sm:$0xff] }
  0x58   : > { %523 = vst [vmem:[%s752_s15 + $0x470] sm:$0xff] %v267_v14  ;;  %524 = vst [vmem:[%s752_s15 + $0x478] sm:$0xff] %v268_v15  ;;  %v270_v17 = vld [vmem:[%s747_s12 + $0x488] sm:$0xff]  ;;  %v271_v18 = vld [vmem:[%s747_s12 + $0x490] sm:$0xff] }
  0x59   : > { %525 = vst [vmem:[%s752_s15 + $0x480] sm:$0xff] %v269_v16  ;;  %526 = vst [vmem:[%s752_s15 + $0x488] sm:$0xff] %v270_v17  ;;  %v272_v19 = vld [vmem:[%s747_s12 + $0x498] sm:$0xff]  ;;  %v273_v20 = vld [vmem:[%s747_s12 + $0x4a0] sm:$0xff] }
  0x5a   : > { %527 = vst [vmem:[%s752_s15 + $0x490] sm:$0xff] %v271_v18  ;;  %v274_v21 = vld [vmem:[%s747_s12 + $0x4a8] sm:$0xff]  ;;  %528 = vst [vmem:[%s752_s15 + $0x498] sm:$0xff] %v272_v19  ;;  %v275_v22 = vld [vmem:[%s747_s12 + $0x4b0] sm:$0xff] }
  0x5b   : > { %529 = vst [vmem:[%s752_s15 + $0x4a0] sm:$0xff] %v273_v20  ;;  %530 = vst [vmem:[%s752_s15 + $0x4a8] sm:$0xff] %v274_v21  ;;  %v276_v23 = vld [vmem:[%s747_s12 + $0x4b8] sm:$0xff]  ;;  %v277_v24 = vld [vmem:[%s747_s12 + $0x4c0] sm:$0xff] }
  0x5c   : > { %531 = vst [vmem:[%s752_s15 + $0x4b0] sm:$0xff] %v275_v22  ;;  %532 = vst [vmem:[%s752_s15 + $0x4b8] sm:$0xff] %v276_v23  ;;  %v278_v25 = vld [vmem:[%s747_s12 + $0x4c8] sm:$0xff]  ;;  %v279_v26 = vld [vmem:[%s747_s12 + $0x4d0] sm:$0xff] }
  0x5d   : > { %533 = vst [vmem:[%s752_s15 + $0x4c0] sm:$0xff] %v277_v24  ;;  %v280_v27 = vld [vmem:[%s747_s12 + $0x4d8] sm:$0xff]  ;;  %534 = vst [vmem:[%s752_s15 + $0x4c8] sm:$0xff] %v278_v25  ;;  %v281_v28 = vld [vmem:[%s747_s12 + $0x4e0] sm:$0xff] }
  0x5e   : > { %535 = vst [vmem:[%s752_s15 + $0x4d0] sm:$0xff] %v279_v26  ;;  %536 = vst [vmem:[%s752_s15 + $0x4d8] sm:$0xff] %v280_v27  ;;  %v282_v29 = vld [vmem:[%s747_s12 + $0x4e8] sm:$0xff]  ;;  %v283_v30 = vld [vmem:[%s747_s12 + $0x4f0] sm:$0xff] }
  0x5f   : > { %537 = vst [vmem:[%s752_s15 + $0x4e0] sm:$0xff] %v281_v28  ;;  %538 = vst [vmem:[%s752_s15 + $0x4e8] sm:$0xff] %v282_v29  ;;  %v284_v31 = vld [vmem:[%s747_s12 + $0x4f8] sm:$0xff]  ;;  %v285_v32 = vld [vmem:[%s747_s12 + $0x500] sm:$0xff] }
  0x60   : > { %539 = vst [vmem:[%s752_s15 + $0x4f0] sm:$0xff] %v283_v30  ;;  %v286_v33 = vld [vmem:[%s747_s12 + $0x508] sm:$0xff]  ;;  %540 = vst [vmem:[%s752_s15 + $0x4f8] sm:$0xff] %v284_v31  ;;  %v287_v34 = vld [vmem:[%s747_s12 + $0x510] sm:$0xff] }
  0x61   : > { %541 = vst [vmem:[%s752_s15 + $0x500] sm:$0xff] %v285_v32  ;;  %542 = vst [vmem:[%s752_s15 + $0x508] sm:$0xff] %v286_v33  ;;  %v288_v35 = vld [vmem:[%s747_s12 + $0x518] sm:$0xff]  ;;  %v289_v36 = vld [vmem:[%s747_s12 + $0x520] sm:$0xff] }
  0x62   : > { %543 = vst [vmem:[%s752_s15 + $0x510] sm:$0xff] %v287_v34  ;;  %544 = vst [vmem:[%s752_s15 + $0x518] sm:$0xff] %v288_v35  ;;  %v290_v37 = vld [vmem:[%s747_s12 + $0x528] sm:$0xff]  ;;  %v291_v38 = vld [vmem:[%s747_s12 + $0x530] sm:$0xff] }
  0x63   : > { %545 = vst [vmem:[%s752_s15 + $0x520] sm:$0xff] %v289_v36  ;;  %v292_v39 = vld [vmem:[%s747_s12 + $0x538] sm:$0xff]  ;;  %546 = vst [vmem:[%s752_s15 + $0x528] sm:$0xff] %v290_v37  ;;  %v293_v40 = vld [vmem:[%s747_s12 + $0x540] sm:$0xff] }
  0x64   : > { %547 = vst [vmem:[%s752_s15 + $0x530] sm:$0xff] %v291_v38  ;;  %548 = vst [vmem:[%s752_s15 + $0x538] sm:$0xff] %v292_v39  ;;  %v294_v41 = vld [vmem:[%s747_s12 + $0x548] sm:$0xff]  ;;  %v295_v42 = vld [vmem:[%s747_s12 + $0x550] sm:$0xff] }
  0x65   : > { %549 = vst [vmem:[%s752_s15 + $0x540] sm:$0xff] %v293_v40  ;;  %550 = vst [vmem:[%s752_s15 + $0x548] sm:$0xff] %v294_v41  ;;  %v296_v43 = vld [vmem:[%s747_s12 + $0x558] sm:$0xff]  ;;  %v297_v44 = vld [vmem:[%s747_s12 + $0x560] sm:$0xff] }
  0x66   : > { %551 = vst [vmem:[%s752_s15 + $0x550] sm:$0xff] %v295_v42  ;;  %v298_v45 = vld [vmem:[%s747_s12 + $0x568] sm:$0xff]  ;;  %552 = vst [vmem:[%s752_s15 + $0x558] sm:$0xff] %v296_v43  ;;  %v299_v46 = vld [vmem:[%s747_s12 + $0x570] sm:$0xff] }
  0x67   : > { %553 = vst [vmem:[%s752_s15 + $0x560] sm:$0xff] %v297_v44  ;;  %554 = vst [vmem:[%s752_s15 + $0x568] sm:$0xff] %v298_v45  ;;  %v300_v47 = vld [vmem:[%s747_s12 + $0x578] sm:$0xff]  ;;  %v301_v48 = vld [vmem:[%s747_s12 + $0x580] sm:$0xff] }
  0x68   : > { %555 = vst [vmem:[%s752_s15 + $0x570] sm:$0xff] %v299_v46  ;;  %556 = vst [vmem:[%s752_s15 + $0x578] sm:$0xff] %v300_v47  ;;  %v302_v49 = vld [vmem:[%s747_s12 + $0x588] sm:$0xff]  ;;  %v303_v50 = vld [vmem:[%s747_s12 + $0x590] sm:$0xff] }
  0x69   : > { %557 = vst [vmem:[%s752_s15 + $0x580] sm:$0xff] %v301_v48  ;;  %v304_v51 = vld [vmem:[%s747_s12 + $0x598] sm:$0xff]  ;;  %558 = vst [vmem:[%s752_s15 + $0x588] sm:$0xff] %v302_v49  ;;  %v305_v52 = vld [vmem:[%s747_s12 + $0x5a0] sm:$0xff] }
  0x6a   : > { %559 = vst [vmem:[%s752_s15 + $0x590] sm:$0xff] %v303_v50  ;;  %560 = vst [vmem:[%s752_s15 + $0x598] sm:$0xff] %v304_v51  ;;  %v306_v53 = vld [vmem:[%s747_s12 + $0x5a8] sm:$0xff]  ;;  %v307_v54 = vld [vmem:[%s747_s12 + $0x5b0] sm:$0xff] }
  0x6b   : > { %561 = vst [vmem:[%s752_s15 + $0x5a0] sm:$0xff] %v305_v52  ;;  %562 = vst [vmem:[%s752_s15 + $0x5a8] sm:$0xff] %v306_v53  ;;  %v308_v55 = vld [vmem:[%s747_s12 + $0x5b8] sm:$0xff]  ;;  %v309_v56 = vld [vmem:[%s747_s12 + $0x5c0] sm:$0xff] }
  0x6c   : > { %563 = vst [vmem:[%s752_s15 + $0x5b0] sm:$0xff] %v307_v54  ;;  %v310_v57 = vld [vmem:[%s747_s12 + $0x5c8] sm:$0xff]  ;;  %564 = vst [vmem:[%s752_s15 + $0x5b8] sm:$0xff] %v308_v55  ;;  %v311_v58 = vld [vmem:[%s747_s12 + $0x5d0] sm:$0xff] }
  0x6d   : > { %565 = vst [vmem:[%s752_s15 + $0x5c0] sm:$0xff] %v309_v56  ;;  %566 = vst [vmem:[%s752_s15 + $0x5c8] sm:$0xff] %v310_v57  ;;  %v312_v59 = vld [vmem:[%s747_s12 + $0x5d8] sm:$0xff]  ;;  %v313_v60 = vld [vmem:[%s747_s12 + $0x5e0] sm:$0xff] }
  0x6e   : > { %567 = vst [vmem:[%s752_s15 + $0x5d0] sm:$0xff] %v311_v58  ;;  %568 = vst [vmem:[%s752_s15 + $0x5d8] sm:$0xff] %v312_v59  ;;  %v314_v61 = vld [vmem:[%s747_s12 + $0x5e8] sm:$0xff]  ;;  %v315_v62 = vld [vmem:[%s747_s12 + $0x5f0] sm:$0xff] }
  0x6f   : > { %569 = vst [vmem:[%s752_s15 + $0x5e0] sm:$0xff] %v313_v60  ;;  %v316_v63 = vld [vmem:[%s747_s12 + $0x5f8] sm:$0xff]  ;;  %570 = vst [vmem:[%s752_s15 + $0x5e8] sm:$0xff] %v314_v61  ;;  %v317_v0 = vld [vmem:[%s747_s12 + $0x600] sm:$0xff] }
  0x70   : > { %571 = vst [vmem:[%s752_s15 + $0x5f0] sm:$0xff] %v315_v62  ;;  %572 = vst [vmem:[%s752_s15 + $0x5f8] sm:$0xff] %v316_v63  ;;  %v318_v1 = vld [vmem:[%s747_s12 + $0x608] sm:$0xff]  ;;  %v319_v2 = vld [vmem:[%s747_s12 + $0x610] sm:$0xff] }
  0x71   : > { %573 = vst [vmem:[%s752_s15 + $0x600] sm:$0xff] %v317_v0  ;;  %574 = vst [vmem:[%s752_s15 + $0x608] sm:$0xff] %v318_v1  ;;  %v320_v3 = vld [vmem:[%s747_s12 + $0x618] sm:$0xff]  ;;  %v321_v4 = vld [vmem:[%s747_s12 + $0x620] sm:$0xff] }
  0x72   : > { %575 = vst [vmem:[%s752_s15 + $0x610] sm:$0xff] %v319_v2  ;;  %v322_v5 = vld [vmem:[%s747_s12 + $0x628] sm:$0xff]  ;;  %576 = vst [vmem:[%s752_s15 + $0x618] sm:$0xff] %v320_v3  ;;  %v323_v6 = vld [vmem:[%s747_s12 + $0x630] sm:$0xff] }
  0x73   : > { %577 = vst [vmem:[%s752_s15 + $0x620] sm:$0xff] %v321_v4  ;;  %578 = vst [vmem:[%s752_s15 + $0x628] sm:$0xff] %v322_v5  ;;  %v324_v7 = vld [vmem:[%s747_s12 + $0x638] sm:$0xff]  ;;  %v325_v8 = vld [vmem:[%s747_s12 + $0x640] sm:$0xff] }
  0x74   : > { %579 = vst [vmem:[%s752_s15 + $0x630] sm:$0xff] %v323_v6  ;;  %580 = vst [vmem:[%s752_s15 + $0x638] sm:$0xff] %v324_v7  ;;  %v326_v9 = vld [vmem:[%s747_s12 + $0x648] sm:$0xff]  ;;  %v327_v10 = vld [vmem:[%s747_s12 + $0x650] sm:$0xff] }
  0x75   : > { %581 = vst [vmem:[%s752_s15 + $0x640] sm:$0xff] %v325_v8  ;;  %v328_v11 = vld [vmem:[%s747_s12 + $0x658] sm:$0xff]  ;;  %582 = vst [vmem:[%s752_s15 + $0x648] sm:$0xff] %v326_v9  ;;  %v329_v12 = vld [vmem:[%s747_s12 + $0x660] sm:$0xff] }
  0x76   : > { %583 = vst [vmem:[%s752_s15 + $0x650] sm:$0xff] %v327_v10  ;;  %584 = vst [vmem:[%s752_s15 + $0x658] sm:$0xff] %v328_v11  ;;  %v330_v13 = vld [vmem:[%s747_s12 + $0x668] sm:$0xff]  ;;  %v331_v14 = vld [vmem:[%s747_s12 + $0x670] sm:$0xff] }
  0x77   : > { %585 = vst [vmem:[%s752_s15 + $0x660] sm:$0xff] %v329_v12  ;;  %586 = vst [vmem:[%s752_s15 + $0x668] sm:$0xff] %v330_v13  ;;  %v332_v15 = vld [vmem:[%s747_s12 + $0x678] sm:$0xff]  ;;  %v333_v16 = vld [vmem:[%s747_s12 + $0x680] sm:$0xff] }
  0x78   : > { %587 = vst [vmem:[%s752_s15 + $0x670] sm:$0xff] %v331_v14  ;;  %v334_v17 = vld [vmem:[%s747_s12 + $0x688] sm:$0xff]  ;;  %588 = vst [vmem:[%s752_s15 + $0x678] sm:$0xff] %v332_v15  ;;  %v335_v18 = vld [vmem:[%s747_s12 + $0x690] sm:$0xff] }
  0x79   : > { %589 = vst [vmem:[%s752_s15 + $0x680] sm:$0xff] %v333_v16  ;;  %590 = vst [vmem:[%s752_s15 + $0x688] sm:$0xff] %v334_v17  ;;  %v336_v19 = vld [vmem:[%s747_s12 + $0x698] sm:$0xff]  ;;  %v337_v20 = vld [vmem:[%s747_s12 + $0x6a0] sm:$0xff] }
  0x7a   : > { %591 = vst [vmem:[%s752_s15 + $0x690] sm:$0xff] %v335_v18  ;;  %592 = vst [vmem:[%s752_s15 + $0x698] sm:$0xff] %v336_v19  ;;  %v338_v21 = vld [vmem:[%s747_s12 + $0x6a8] sm:$0xff]  ;;  %v339_v22 = vld [vmem:[%s747_s12 + $0x6b0] sm:$0xff] }
  0x7b   : > { %593 = vst [vmem:[%s752_s15 + $0x6a0] sm:$0xff] %v337_v20  ;;  %v340_v23 = vld [vmem:[%s747_s12 + $0x6b8] sm:$0xff]  ;;  %594 = vst [vmem:[%s752_s15 + $0x6a8] sm:$0xff] %v338_v21  ;;  %v341_v24 = vld [vmem:[%s747_s12 + $0x6c0] sm:$0xff] }
  0x7c   : > { %595 = vst [vmem:[%s752_s15 + $0x6b0] sm:$0xff] %v339_v22  ;;  %596 = vst [vmem:[%s752_s15 + $0x6b8] sm:$0xff] %v340_v23  ;;  %v342_v25 = vld [vmem:[%s747_s12 + $0x6c8] sm:$0xff]  ;;  %v343_v26 = vld [vmem:[%s747_s12 + $0x6d0] sm:$0xff] }
  0x7d   : > { %597 = vst [vmem:[%s752_s15 + $0x6c0] sm:$0xff] %v341_v24  ;;  %598 = vst [vmem:[%s752_s15 + $0x6c8] sm:$0xff] %v342_v25  ;;  %v344_v27 = vld [vmem:[%s747_s12 + $0x6d8] sm:$0xff]  ;;  %v345_v28 = vld [vmem:[%s747_s12 + $0x6e0] sm:$0xff] }
  0x7e   : > { %599 = vst [vmem:[%s752_s15 + $0x6d0] sm:$0xff] %v343_v26  ;;  %v346_v29 = vld [vmem:[%s747_s12 + $0x6e8] sm:$0xff]  ;;  %600 = vst [vmem:[%s752_s15 + $0x6d8] sm:$0xff] %v344_v27  ;;  %v347_v30 = vld [vmem:[%s747_s12 + $0x6f0] sm:$0xff] }
  0x7f   : > { %601 = vst [vmem:[%s752_s15 + $0x6e0] sm:$0xff] %v345_v28  ;;  %602 = vst [vmem:[%s752_s15 + $0x6e8] sm:$0xff] %v346_v29  ;;  %v348_v31 = vld [vmem:[%s747_s12 + $0x6f8] sm:$0xff]  ;;  %v349_v32 = vld [vmem:[%s747_s12 + $0x700] sm:$0xff] }
  0x80   : > { %603 = vst [vmem:[%s752_s15 + $0x6f0] sm:$0xff] %v347_v30  ;;  %604 = vst [vmem:[%s752_s15 + $0x6f8] sm:$0xff] %v348_v31  ;;  %v350_v33 = vld [vmem:[%s747_s12 + $0x708] sm:$0xff]  ;;  %v351_v34 = vld [vmem:[%s747_s12 + $0x710] sm:$0xff] }
  0x81   : > { %605 = vst [vmem:[%s752_s15 + $0x700] sm:$0xff] %v349_v32  ;;  %v352_v35 = vld [vmem:[%s747_s12 + $0x718] sm:$0xff]  ;;  %606 = vst [vmem:[%s752_s15 + $0x708] sm:$0xff] %v350_v33  ;;  %v353_v36 = vld [vmem:[%s747_s12 + $0x720] sm:$0xff] }
  0x82   : > { %607 = vst [vmem:[%s752_s15 + $0x710] sm:$0xff] %v351_v34  ;;  %608 = vst [vmem:[%s752_s15 + $0x718] sm:$0xff] %v352_v35  ;;  %v354_v37 = vld [vmem:[%s747_s12 + $0x728] sm:$0xff]  ;;  %v355_v38 = vld [vmem:[%s747_s12 + $0x730] sm:$0xff] }
  0x83   : > { %609 = vst [vmem:[%s752_s15 + $0x720] sm:$0xff] %v353_v36  ;;  %610 = vst [vmem:[%s752_s15 + $0x728] sm:$0xff] %v354_v37  ;;  %v356_v39 = vld [vmem:[%s747_s12 + $0x738] sm:$0xff]  ;;  %v357_v40 = vld [vmem:[%s747_s12 + $0x740] sm:$0xff] }
  0x84   : > { %611 = vst [vmem:[%s752_s15 + $0x730] sm:$0xff] %v355_v38  ;;  %v358_v41 = vld [vmem:[%s747_s12 + $0x748] sm:$0xff]  ;;  %612 = vst [vmem:[%s752_s15 + $0x738] sm:$0xff] %v356_v39  ;;  %v359_v42 = vld [vmem:[%s747_s12 + $0x750] sm:$0xff] }
  0x85   : > { %613 = vst [vmem:[%s752_s15 + $0x740] sm:$0xff] %v357_v40  ;;  %614 = vst [vmem:[%s752_s15 + $0x748] sm:$0xff] %v358_v41  ;;  %v360_v43 = vld [vmem:[%s747_s12 + $0x758] sm:$0xff]  ;;  %v361_v44 = vld [vmem:[%s747_s12 + $0x760] sm:$0xff] }
  0x86   : > { %615 = vst [vmem:[%s752_s15 + $0x750] sm:$0xff] %v359_v42  ;;  %616 = vst [vmem:[%s752_s15 + $0x758] sm:$0xff] %v360_v43  ;;  %v362_v45 = vld [vmem:[%s747_s12 + $0x768] sm:$0xff]  ;;  %v363_v46 = vld [vmem:[%s747_s12 + $0x770] sm:$0xff] }
  0x87   : > { %617 = vst [vmem:[%s752_s15 + $0x760] sm:$0xff] %v361_v44  ;;  %v364_v47 = vld [vmem:[%s747_s12 + $0x778] sm:$0xff]  ;;  %618 = vst [vmem:[%s752_s15 + $0x768] sm:$0xff] %v362_v45  ;;  %v365_v48 = vld [vmem:[%s747_s12 + $0x780] sm:$0xff] }
  0x88   : > { %619 = vst [vmem:[%s752_s15 + $0x770] sm:$0xff] %v363_v46  ;;  %620 = vst [vmem:[%s752_s15 + $0x778] sm:$0xff] %v364_v47  ;;  %v366_v49 = vld [vmem:[%s747_s12 + $0x788] sm:$0xff]  ;;  %v367_v50 = vld [vmem:[%s747_s12 + $0x790] sm:$0xff] }
  0x89   : > { %621 = vst [vmem:[%s752_s15 + $0x780] sm:$0xff] %v365_v48  ;;  %622 = vst [vmem:[%s752_s15 + $0x788] sm:$0xff] %v366_v49  ;;  %v368_v51 = vld [vmem:[%s747_s12 + $0x798] sm:$0xff]  ;;  %v369_v52 = vld [vmem:[%s747_s12 + $0x7a0] sm:$0xff] }
  0x8a   : > { %623 = vst [vmem:[%s752_s15 + $0x790] sm:$0xff] %v367_v50  ;;  %v370_v53 = vld [vmem:[%s747_s12 + $0x7a8] sm:$0xff]  ;;  %624 = vst [vmem:[%s752_s15 + $0x798] sm:$0xff] %v368_v51  ;;  %v371_v54 = vld [vmem:[%s747_s12 + $0x7b0] sm:$0xff] }
  0x8b   : > { %625 = vst [vmem:[%s752_s15 + $0x7a0] sm:$0xff] %v369_v52  ;;  %626 = vst [vmem:[%s752_s15 + $0x7a8] sm:$0xff] %v370_v53  ;;  %v372_v55 = vld [vmem:[%s747_s12 + $0x7b8] sm:$0xff]  ;;  %v373_v56 = vld [vmem:[%s747_s12 + $0x7c0] sm:$0xff] }
  0x8c   : > { %627 = vst [vmem:[%s752_s15 + $0x7b0] sm:$0xff] %v371_v54  ;;  %628 = vst [vmem:[%s752_s15 + $0x7b8] sm:$0xff] %v372_v55  ;;  %v374_v57 = vld [vmem:[%s747_s12 + $0x7c8] sm:$0xff]  ;;  %v375_v58 = vld [vmem:[%s747_s12 + $0x7d0] sm:$0xff] }
  0x8d   : > { %629 = vst [vmem:[%s752_s15 + $0x7c0] sm:$0xff] %v373_v56  ;;  %v376_v59 = vld [vmem:[%s747_s12 + $0x7d8] sm:$0xff]  ;;  %630 = vst [vmem:[%s752_s15 + $0x7c8] sm:$0xff] %v374_v57  ;;  %v377_v60 = vld [vmem:[%s747_s12 + $0x7e0] sm:$0xff] }
  0x8e   : > { %631 = vst [vmem:[%s752_s15 + $0x7d0] sm:$0xff] %v375_v58  ;;  %632 = vst [vmem:[%s752_s15 + $0x7d8] sm:$0xff] %v376_v59  ;;  %v378_v61 = vld [vmem:[%s747_s12 + $0x7e8] sm:$0xff]  ;;  %v379_v62 = vld [vmem:[%s747_s12 + $0x7f0] sm:$0xff] }
  0x8f   : > { %633 = vst [vmem:[%s752_s15 + $0x7e0] sm:$0xff] %v377_v60  ;;  %634 = vst [vmem:[%s752_s15 + $0x7e8] sm:$0xff] %v378_v61  ;;  %v380_v63 = vld [vmem:[%s747_s12 + $0x7f8] sm:$0xff] }
  0x90   : > { %635 = vst [vmem:[%s752_s15 + $0x7f0] sm:$0xff] %v379_v62  ;;  %636 = vst [vmem:[%s752_s15 + $0x7f8] sm:$0xff] %v380_v63 }
  0x91 PF: > { %s11_s6 = sadd.s32 1, %s724_s6  }
  0x92   : > { %p8_p4 = scmp.ge.s32.totalorder %s11_s6, 4  }
  0x94   :  { %10 = sbr.rel (!%p8_p4) target bundleno = 1 (0x1), region = 54 }

// kernel: _any_identity_impl.3
= control target key start
LH: loop header
LB: loop body
LE: loop exit
PB: predicated region body
PF: predicated region fallthrough
CT: control target
= control target key end

     0   :  { %s736_s6 = smov 0   ;;  %s1269_s0 = inlined_call_operand.vmem [shape: f32[256,2048], index: 0, kind: input, shape index: {}]   ;;  %s1270_s1 = inlined_call_operand.vmem [shape: f32[256,2048], index: 1, kind: output, shape index: {}]  }
   0x1 LB: > { %s695_s7 = sadd.s32 4294967295, %s724_s6   ;;  %p699_p0 = scmp.ge.s32.totalorder %s724_s6, 1  ;;  %s724_s6 = sphi %s736_s6, %s11_s6  }
   0x2   : > { %p89_p1 = scmp.lt.s32.totalorder %s724_s6, 3 }
   0x4   : > { %p90_p2 = pnand %p699_p0, %p89_p1 }
   0x5   : > { %s700_s8 = sshll.u32 (!%p90_p2), %s695_s7, 4 }
   0x6   : > { %93 = sbr.rel (%p90_p2) target bundleno = 145 (0x91), region = 24  ;;  %p112_p3 = scmp.lt.s32.totalorder (!%p90_p2), %s700_s8, 31 }
   0xd   : > { %s1272_s8 = smov (!%p112_p3, %s700_s8), 31 }
   0xe   : > { %s708_s9 = sshll.u32 %s1272_s8, 7 }
   0xf   : > { %s747_s12 = scalar_lea.vmem %s1269_s0, %s708_s9  ;;  %s752_s15 = scalar_lea.vmem %s1270_s1, %s708_s9 }
  0x10   : > { %v125_v0 = vld [vmem:[%s747_s12] sm:$0xff]  ;;  %v126_v1 = vld [vmem:[%s747_s12 + $0x8] sm:$0xff]  ;;  %v127_v2 = vld [vmem:[%s747_s12 + $0x10] sm:$0xff] }
  0x11   : > { %381 = vst [vmem:[%s752_s15] sm:$0xff] %v125_v0  ;;  %382 = vst [vmem:[%s752_s15 + $0x8] sm:$0xff] %v126_v1  ;;  %v128_v3 = vld [vmem:[%s747_s12 + $0x18] sm:$0xff]  ;;  %v129_v4 = vld [vmem:[%s747_s12 + $0x20] sm:$0xff] }
  0x12   : > { %383 = vst [vmem:[%s752_s15 + $0x10] sm:$0xff] %v127_v2  ;;  %v130_v5 = vld [vmem:[%s747_s12 + $0x28] sm:$0xff]  ;;  %384 = vst [vmem:[%s752_s15 + $0x18] sm:$0xff] %v128_v3  ;;  %v131_v6 = vld [vmem:[%s747_s12 + $0x30] sm:$0xff] }
  0x13   : > { %385 = vst [vmem:[%s752_s15 + $0x20] sm:$0xff] %v129_v4  ;;  %386 = vst [vmem:[%s752_s15 + $0x28] sm:$0xff] %v130_v5  ;;  %v132_v7 = vld [vmem:[%s747_s12 + $0x38] sm:$0xff]  ;;  %v133_v8 = vld [vmem:[%s747_s12 + $0x40] sm:$0xff] }
  0x14   : > { %387 = vst [vmem:[%s752_s15 + $0x30] sm:$0xff] %v131_v6  ;;  %388 = vst [vmem:[%s752_s15 + $0x38] sm:$0xff] %v132_v7  ;;  %v134_v9 = vld [vmem:[%s747_s12 + $0x48] sm:$0xff]  ;;  %v135_v10 = vld [vmem:[%s747_s12 + $0x50] sm:$0xff] }
  0x15   : > { %389 = vst [vmem:[%s752_s15 + $0x40] sm:$0xff] %v133_v8  ;;  %v136_v11 = vld [vmem:[%s747_s12 + $0x58] sm:$0xff]  ;;  %390 = vst [vmem:[%s752_s15 + $0x48] sm:$0xff] %v134_v9  ;;  %v137_v12 = vld [vmem:[%s747_s12 + $0x60] sm:$0xff] }
  0x16   : > { %391 = vst [vmem:[%s752_s15 + $0x50] sm:$0xff] %v135_v10  ;;  %392 = vst [vmem:[%s752_s15 + $0x58] sm:$0xff] %v136_v11  ;;  %v138_v13 = vld [vmem:[%s747_s12 + $0x68] sm:$0xff]  ;;  %v139_v14 = vld [vmem:[%s747_s12 + $0x70] sm:$0xff] }
  0x17   : > { %393 = vst [vmem:[%s752_s15 + $0x60] sm:$0xff] %v137_v12  ;;  %394 = vst [vmem:[%s752_s15 + $0x68] sm:$0xff] %v138_v13  ;;  %v140_v15 = vld [vmem:[%s747_s12 + $0x78] sm:$0xff]  ;;  %v141_v16 = vld [vmem:[%s747_s12 + $0x80] sm:$0xff] }
  0x18   : > { %395 = vst [vmem:[%s752_s15 + $0x70] sm:$0xff] %v139_v14  ;;  %v142_v17 = vld [vmem:[%s747_s12 + $0x88] sm:$0xff]  ;;  %396 = vst [vmem:[%s752_s15 + $0x78] sm:$0xff] %v140_v15  ;;  %v143_v18 = vld [vmem:[%s747_s12 + $0x90] sm:$0xff] }
  0x19   : > { %397 = vst [vmem:[%s752_s15 + $0x80] sm:$0xff] %v141_v16  ;;  %398 = vst [vmem:[%s752_s15 + $0x88] sm:$0xff] %v142_v17  ;;  %v144_v19 = vld [vmem:[%s747_s12 + $0x98] sm:$0xff]  ;;  %v145_v20 = vld [vmem:[%s747_s12 + $0xa0] sm:$0xff] }
  0x1a   : > { %399 = vst [vmem:[%s752_s15 + $0x90] sm:$0xff] %v143_v18  ;;  %400 = vst [vmem:[%s752_s15 + $0x98] sm:$0xff] %v144_v19  ;;  %v146_v21 = vld [vmem:[%s747_s12 + $0xa8] sm:$0xff]  ;;  %v147_v22 = vld [vmem:[%s747_s12 + $0xb0] sm:$0xff] }
  0x1b   : > { %401 = vst [vmem:[%s752_s15 + $0xa0] sm:$0xff] %v145_v20  ;;  %v148_v23 = vld [vmem:[%s747_s12 + $0xb8] sm:$0xff]  ;;  %402 = vst [vmem:[%s752_s15 + $0xa8] sm:$0xff] %v146_v21  ;;  %v149_v24 = vld [vmem:[%s747_s12 + $0xc0] sm:$0xff] }
  0x1c   : > { %403 = vst [vmem:[%s752_s15 + $0xb0] sm:$0xff] %v147_v22  ;;  %404 = vst [vmem:[%s752_s15 + $0xb8] sm:$0xff] %v148_v23  ;;  %v150_v25 = vld [vmem:[%s747_s12 + $0xc8] sm:$0xff]  ;;  %v151_v26 = vld [vmem:[%s747_s12 + $0xd0] sm:$0xff] }
  0x1d   : > { %405 = vst [vmem:[%s752_s15 + $0xc0] sm:$0xff] %v149_v24  ;;  %406 = vst [vmem:[%s752_s15 + $0xc8] sm:$0xff] %v150_v25  ;;  %v152_v27 = vld [vmem:[%s747_s12 + $0xd8] sm:$0xff]  ;;  %v153_v28 = vld [vmem:[%s747_s12 + $0xe0] sm:$0xff] }
  0x1e   : > { %407 = vst [vmem:[%s752_s15 + $0xd0] sm:$0xff] %v151_v26  ;;  %v154_v29 = vld [vmem:[%s747_s12 + $0xe8] sm:$0xff]  ;;  %408 = vst [vmem:[%s752_s15 + $0xd8] sm:$0xff] %v152_v27  ;;  %v155_v30 = vld [vmem:[%s747_s12 + $0xf0] sm:$0xff] }
  0x1f   : > { %409 = vst [vmem:[%s752_s15 + $0xe0] sm:$0xff] %v153_v28  ;;  %410 = vst [vmem:[%s752_s15 + $0xe8] sm:$0xff] %v154_v29  ;;  %v156_v31 = vld [vmem:[%s747_s12 + $0xf8] sm:$0xff]  ;;  %v157_v32 = vld [vmem:[%s747_s12 + $0x100] sm:$0xff] }
  0x20   : > { %411 = vst [vmem:[%s752_s15 + $0xf0] sm:$0xff] %v155_v30  ;;  %412 = vst [vmem:[%s752_s15 + $0xf8] sm:$0xff] %v156_v31  ;;  %v158_v33 = vld [vmem:[%s747_s12 + $0x108] sm:$0xff]  ;;  %v159_v34 = vld [vmem:[%s747_s12 + $0x110] sm:$0xff] }
  0x21   : > { %413 = vst [vmem:[%s752_s15 + $0x100] sm:$0xff] %v157_v32  ;;  %v160_v35 = vld [vmem:[%s747_s12 + $0x118] sm:$0xff]  ;;  %414 = vst [vmem:[%s752_s15 + $0x108] sm:$0xff] %v158_v33  ;;  %v161_v36 = vld [vmem:[%s747_s12 + $0x120] sm:$0xff] }
  0x22   : > { %415 = vst [vmem:[%s752_s15 + $0x110] sm:$0xff] %v159_v34  ;;  %416 = vst [vmem:[%s752_s15 + $0x118] sm:$0xff] %v160_v35  ;;  %v162_v37 = vld [vmem:[%s747_s12 + $0x128] sm:$0xff]  ;;  %v163_v38 = vld [vmem:[%s747_s12 + $0x130] sm:$0xff] }
  0x23   : > { %417 = vst [vmem:[%s752_s15 + $0x120] sm:$0xff] %v161_v36  ;;  %418 = vst [vmem:[%s752_s15 + $0x128] sm:$0xff] %v162_v37  ;;  %v164_v39 = vld [vmem:[%s747_s12 + $0x138] sm:$0xff]  ;;  %v165_v40 = vld [vmem:[%s747_s12 + $0x140] sm:$0xff] }
  0x24   : > { %419 = vst [vmem:[%s752_s15 + $0x130] sm:$0xff] %v163_v38  ;;  %v166_v41 = vld [vmem:[%s747_s12 + $0x148] sm:$0xff]  ;;  %420 = vst [vmem:[%s752_s15 + $0x138] sm:$0xff] %v164_v39  ;;  %v167_v42 = vld [vmem:[%s747_s12 + $0x150] sm:$0xff] }
  0x25   : > { %421 = vst [vmem:[%s752_s15 + $0x140] sm:$0xff] %v165_v40  ;;  %422 = vst [vmem:[%s752_s15 + $0x148] sm:$0xff] %v166_v41  ;;  %v168_v43 = vld [vmem:[%s747_s12 + $0x158] sm:$0xff]  ;;  %v169_v44 = vld [vmem:[%s747_s12 + $0x160] sm:$0xff] }
  0x26   : > { %423 = vst [vmem:[%s752_s15 + $0x150] sm:$0xff] %v167_v42  ;;  %424 = vst [vmem:[%s752_s15 + $0x158] sm:$0xff] %v168_v43  ;;  %v170_v45 = vld [vmem:[%s747_s12 + $0x168] sm:$0xff]  ;;  %v171_v46 = vld [vmem:[%s747_s12 + $0x170] sm:$0xff] }
  0x27   : > { %425 = vst [vmem:[%s752_s15 + $0x160] sm:$0xff] %v169_v44  ;;  %v172_v47 = vld [vmem:[%s747_s12 + $0x178] sm:$0xff]  ;;  %426 = vst [vmem:[%s752_s15 + $0x168] sm:$0xff] %v170_v45  ;;  %v173_v48 = vld [vmem:[%s747_s12 + $0x180] sm:$0xff] }
  0x28   : > { %427 = vst [vmem:[%s752_s15 + $0x170] sm:$0xff] %v171_v46  ;;  %428 = vst [vmem:[%s752_s15 + $0x178] sm:$0xff] %v172_v47  ;;  %v174_v49 = vld [vmem:[%s747_s12 + $0x188] sm:$0xff]  ;;  %v175_v50 = vld [vmem:[%s747_s12 + $0x190] sm:$0xff] }
  0x29   : > { %429 = vst [vmem:[%s752_s15 + $0x180] sm:$0xff] %v173_v48  ;;  %430 = vst [vmem:[%s752_s15 + $0x188] sm:$0xff] %v174_v49  ;;  %v176_v51 = vld [vmem:[%s747_s12 + $0x198] sm:$0xff]  ;;  %v177_v52 = vld [vmem:[%s747_s12 + $0x1a0] sm:$0xff] }
  0x2a   : > { %431 = vst [vmem:[%s752_s15 + $0x190] sm:$0xff] %v175_v50  ;;  %v178_v53 = vld [vmem:[%s747_s12 + $0x1a8] sm:$0xff]  ;;  %432 = vst [vmem:[%s752_s15 + $0x198] sm:$0xff] %v176_v51  ;;  %v179_v54 = vld [vmem:[%s747_s12 + $0x1b0] sm:$0xff] }
  0x2b   : > { %433 = vst [vmem:[%s752_s15 + $0x1a0] sm:$0xff] %v177_v52  ;;  %434 = vst [vmem:[%s752_s15 + $0x1a8] sm:$0xff] %v178_v53  ;;  %v180_v55 = vld [vmem:[%s747_s12 + $0x1b8] sm:$0xff]  ;;  %v181_v56 = vld [vmem:[%s747_s12 + $0x1c0] sm:$0xff] }
  0x2c   : > { %435 = vst [vmem:[%s752_s15 + $0x1b0] sm:$0xff] %v179_v54  ;;  %436 = vst [vmem:[%s752_s15 + $0x1b8] sm:$0xff] %v180_v55  ;;  %v182_v57 = vld [vmem:[%s747_s12 + $0x1c8] sm:$0xff]  ;;  %v183_v58 = vld [vmem:[%s747_s12 + $0x1d0] sm:$0xff] }
  0x2d   : > { %437 = vst [vmem:[%s752_s15 + $0x1c0] sm:$0xff] %v181_v56  ;;  %v184_v59 = vld [vmem:[%s747_s12 + $0x1d8] sm:$0xff]  ;;  %438 = vst [vmem:[%s752_s15 + $0x1c8] sm:$0xff] %v182_v57  ;;  %v185_v60 = vld [vmem:[%s747_s12 + $0x1e0] sm:$0xff] }
  0x2e   : > { %439 = vst [vmem:[%s752_s15 + $0x1d0] sm:$0xff] %v183_v58  ;;  %440 = vst [vmem:[%s752_s15 + $0x1d8] sm:$0xff] %v184_v59  ;;  %v186_v61 = vld [vmem:[%s747_s12 + $0x1e8] sm:$0xff]  ;;  %v187_v62 = vld [vmem:[%s747_s12 + $0x1f0] sm:$0xff] }
  0x2f   : > { %441 = vst [vmem:[%s752_s15 + $0x1e0] sm:$0xff] %v185_v60  ;;  %442 = vst [vmem:[%s752_s15 + $0x1e8] sm:$0xff] %v186_v61  ;;  %v188_v63 = vld [vmem:[%s747_s12 + $0x1f8] sm:$0xff]  ;;  %v189_v0 = vld [vmem:[%s747_s12 + $0x200] sm:$0xff] }
  0x30   : > { %443 = vst [vmem:[%s752_s15 + $0x1f0] sm:$0xff] %v187_v62  ;;  %v190_v1 = vld [vmem:[%s747_s12 + $0x208] sm:$0xff]  ;;  %444 = vst [vmem:[%s752_s15 + $0x1f8] sm:$0xff] %v188_v63  ;;  %v191_v2 = vld [vmem:[%s747_s12 + $0x210] sm:$0xff] }
  0x31   : > { %445 = vst [vmem:[%s752_s15 + $0x200] sm:$0xff] %v189_v0  ;;  %446 = vst [vmem:[%s752_s15 + $0x208] sm:$0xff] %v190_v1  ;;  %v192_v3 = vld [vmem:[%s747_s12 + $0x218] sm:$0xff]  ;;  %v193_v4 = vld [vmem:[%s747_s12 + $0x220] sm:$0xff] }
  0x32   : > { %447 = vst [vmem:[%s752_s15 + $0x210] sm:$0xff] %v191_v2  ;;  %448 = vst [vmem:[%s752_s15 + $0x218] sm:$0xff] %v192_v3  ;;  %v194_v5 = vld [vmem:[%s747_s12 + $0x228] sm:$0xff]  ;;  %v195_v6 = vld [vmem:[%s747_s12 + $0x230] sm:$0xff] }
  0x33   : > { %449 = vst [vmem:[%s752_s15 + $0x220] sm:$0xff] %v193_v4  ;;  %v196_v7 = vld [vmem:[%s747_s12 + $0x238] sm:$0xff]  ;;  %450 = vst [vmem:[%s752_s15 + $0x228] sm:$0xff] %v194_v5  ;;  %v197_v8 = vld [vmem:[%s747_s12 + $0x240] sm:$0xff] }
  0x34   : > { %451 = vst [vmem:[%s752_s15 + $0x230] sm:$0xff] %v195_v6  ;;  %452 = vst [vmem:[%s752_s15 + $0x238] sm:$0xff] %v196_v7  ;;  %v198_v9 = vld [vmem:[%s747_s12 + $0x248] sm:$0xff]  ;;  %v199_v10 = vld [vmem:[%s747_s12 + $0x250] sm:$0xff] }
  0x35   : > { %453 = vst [vmem:[%s752_s15 + $0x240] sm:$0xff] %v197_v8  ;;  %454 = vst [vmem:[%s752_s15 + $0x248] sm:$0xff] %v198_v9  ;;  %v200_v11 = vld [vmem:[%s747_s12 + $0x258] sm:$0xff]  ;;  %v201_v12 = vld [vmem:[%s747_s12 + $0x260] sm:$0xff] }
  0x36   : > { %455 = vst [vmem:[%s752_s15 + $0x250] sm:$0xff] %v199_v10  ;;  %v202_v13 = vld [vmem:[%s747_s12 + $0x268] sm:$0xff]  ;;  %456 = vst [vmem:[%s752_s15 + $0x258] sm:$0xff] %v200_v11  ;;  %v203_v14 = vld [vmem:[%s747_s12 + $0x270] sm:$0xff] }
  0x37   : > { %457 = vst [vmem:[%s752_s15 + $0x260] sm:$0xff] %v201_v12  ;;  %458 = vst [vmem:[%s752_s15 + $0x268] sm:$0xff] %v202_v13  ;;  %v204_v15 = vld [vmem:[%s747_s12 + $0x278] sm:$0xff]  ;;  %v205_v16 = vld [vmem:[%s747_s12 + $0x280] sm:$0xff] }
  0x38   : > { %459 = vst [vmem:[%s752_s15 + $0x270] sm:$0xff] %v203_v14  ;;  %460 = vst [vmem:[%s752_s15 + $0x278] sm:$0xff] %v204_v15  ;;  %v206_v17 = vld [vmem:[%s747_s12 + $0x288] sm:$0xff]  ;;  %v207_v18 = vld [vmem:[%s747_s12 + $0x290] sm:$0xff] }
  0x39   : > { %461 = vst [vmem:[%s752_s15 + $0x280] sm:$0xff] %v205_v16  ;;  %v208_v19 = vld [vmem:[%s747_s12 + $0x298] sm:$0xff]  ;;  %462 = vst [vmem:[%s752_s15 + $0x288] sm:$0xff] %v206_v17  ;;  %v209_v20 = vld [vmem:[%s747_s12 + $0x2a0] sm:$0xff] }
  0x3a   : > { %463 = vst [vmem:[%s752_s15 + $0x290] sm:$0xff] %v207_v18  ;;  %464 = vst [vmem:[%s752_s15 + $0x298] sm:$0xff] %v208_v19  ;;  %v210_v21 = vld [vmem:[%s747_s12 + $0x2a8] sm:$0xff]  ;;  %v211_v22 = vld [vmem:[%s747_s12 + $0x2b0] sm:$0xff] }
  0x3b   : > { %465 = vst [vmem:[%s752_s15 + $0x2a0] sm:$0xff] %v209_v20  ;;  %466 = vst [vmem:[%s752_s15 + $0x2a8] sm:$0xff] %v210_v21  ;;  %v212_v23 = vld [vmem:[%s747_s12 + $0x2b8] sm:$0xff]  ;;  %v213_v24 = vld [vmem:[%s747_s12 + $0x2c0] sm:$0xff] }
  0x3c   : > { %467 = vst [vmem:[%s752_s15 + $0x2b0] sm:$0xff] %v211_v22  ;;  %v214_v25 = vld [vmem:[%s747_s12 + $0x2c8] sm:$0xff]  ;;  %468 = vst [vmem:[%s752_s15 + $0x2b8] sm:$0xff] %v212_v23  ;;  %v215_v26 = vld [vmem:[%s747_s12 + $0x2d0] sm:$0xff] }
  0x3d   : > { %469 = vst [vmem:[%s752_s15 + $0x2c0] sm:$0xff] %v213_v24  ;;  %470 = vst [vmem:[%s752_s15 + $0x2c8] sm:$0xff] %v214_v25  ;;  %v216_v27 = vld [vmem:[%s747_s12 + $0x2d8] sm:$0xff]  ;;  %v217_v28 = vld [vmem:[%s747_s12 + $0x2e0] sm:$0xff] }
  0x3e   : > { %471 = vst [vmem:[%s752_s15 + $0x2d0] sm:$0xff] %v215_v26  ;;  %472 = vst [vmem:[%s752_s15 + $0x2d8] sm:$0xff] %v216_v27  ;;  %v218_v29 = vld [vmem:[%s747_s12 + $0x2e8] sm:$0xff]  ;;  %v219_v30 = vld [vmem:[%s747_s12 + $0x2f0] sm:$0xff] }
  0x3f   : > { %473 = vst [vmem:[%s752_s15 + $0x2e0] sm:$0xff] %v217_v28  ;;  %v220_v31 = vld [vmem:[%s747_s12 + $0x2f8] sm:$0xff]  ;;  %474 = vst [vmem:[%s752_s15 + $0x2e8] sm:$0xff] %v218_v29  ;;  %v221_v32 = vld [vmem:[%s747_s12 + $0x300] sm:$0xff] }
  0x40   : > { %475 = vst [vmem:[%s752_s15 + $0x2f0] sm:$0xff] %v219_v30  ;;  %476 = vst [vmem:[%s752_s15 + $0x2f8] sm:$0xff] %v220_v31  ;;  %v222_v33 = vld [vmem:[%s747_s12 + $0x308] sm:$0xff]  ;;  %v223_v34 = vld [vmem:[%s747_s12 + $0x310] sm:$0xff] }
  0x41   : > { %477 = vst [vmem:[%s752_s15 + $0x300] sm:$0xff] %v221_v32  ;;  %478 = vst [vmem:[%s752_s15 + $0x308] sm:$0xff] %v222_v33  ;;  %v224_v35 = vld [vmem:[%s747_s12 + $0x318] sm:$0xff]  ;;  %v225_v36 = vld [vmem:[%s747_s12 + $0x320] sm:$0xff] }
  0x42   : > { %479 = vst [vmem:[%s752_s15 + $0x310] sm:$0xff] %v223_v34  ;;  %v226_v37 = vld [vmem:[%s747_s12 + $0x328] sm:$0xff]  ;;  %480 = vst [vmem:[%s752_s15 + $0x318] sm:$0xff] %v224_v35  ;;  %v227_v38 = vld [vmem:[%s747_s12 + $0x330] sm:$0xff] }
  0x43   : > { %481 = vst [vmem:[%s752_s15 + $0x320] sm:$0xff] %v225_v36  ;;  %482 = vst [vmem:[%s752_s15 + $0x328] sm:$0xff] %v226_v37  ;;  %v228_v39 = vld [vmem:[%s747_s12 + $0x338] sm:$0xff]  ;;  %v229_v40 = vld [vmem:[%s747_s12 + $0x340] sm:$0xff] }
  0x44   : > { %483 = vst [vmem:[%s752_s15 + $0x330] sm:$0xff] %v227_v38  ;;  %484 = vst [vmem:[%s752_s15 + $0x338] sm:$0xff] %v228_v39  ;;  %v230_v41 = vld [vmem:[%s747_s12 + $0x348] sm:$0xff]  ;;  %v231_v42 = vld [vmem:[%s747_s12 + $0x350] sm:$0xff] }
  0x45   : > { %485 = vst [vmem:[%s752_s15 + $0x340] sm:$0xff] %v229_v40  ;;  %v232_v43 = vld [vmem:[%s747_s12 + $0x358] sm:$0xff]  ;;  %486 = vst [vmem:[%s752_s15 + $0x348] sm:$0xff] %v230_v41  ;;  %v233_v44 = vld [vmem:[%s747_s12 + $0x360] sm:$0xff] }
  0x46   : > { %487 = vst [vmem:[%s752_s15 + $0x350] sm:$0xff] %v231_v42  ;;  %488 = vst [vmem:[%s752_s15 + $0x358] sm:$0xff] %v232_v43  ;;  %v234_v45 = vld [vmem:[%s747_s12 + $0x368] sm:$0xff]  ;;  %v235_v46 = vld [vmem:[%s747_s12 + $0x370] sm:$0xff] }
  0x47   : > { %489 = vst [vmem:[%s752_s15 + $0x360] sm:$0xff] %v233_v44  ;;  %490 = vst [vmem:[%s752_s15 + $0x368] sm:$0xff] %v234_v45  ;;  %v236_v47 = vld [vmem:[%s747_s12 + $0x378] sm:$0xff]  ;;  %v237_v48 = vld [vmem:[%s747_s12 + $0x380] sm:$0xff] }
  0x48   : > { %491 = vst [vmem:[%s752_s15 + $0x370] sm:$0xff] %v235_v46  ;;  %v238_v49 = vld [vmem:[%s747_s12 + $0x388] sm:$0xff]  ;;  %492 = vst [vmem:[%s752_s15 + $0x378] sm:$0xff] %v236_v47  ;;  %v239_v50 = vld [vmem:[%s747_s12 + $0x390] sm:$0xff] }
  0x49   : > { %493 = vst [vmem:[%s752_s15 + $0x380] sm:$0xff] %v237_v48  ;;  %494 = vst [vmem:[%s752_s15 + $0x388] sm:$0xff] %v238_v49  ;;  %v240_v51 = vld [vmem:[%s747_s12 + $0x398] sm:$0xff]  ;;  %v241_v52 = vld [vmem:[%s747_s12 + $0x3a0] sm:$0xff] }
  0x4a   : > { %495 = vst [vmem:[%s752_s15 + $0x390] sm:$0xff] %v239_v50  ;;  %496 = vst [vmem:[%s752_s15 + $0x398] sm:$0xff] %v240_v51  ;;  %v242_v53 = vld [vmem:[%s747_s12 + $0x3a8] sm:$0xff]  ;;  %v243_v54 = vld [vmem:[%s747_s12 + $0x3b0] sm:$0xff] }
  0x4b   : > { %497 = vst [vmem:[%s752_s15 + $0x3a0] sm:$0xff] %v241_v52  ;;  %v244_v55 = vld [vmem:[%s747_s12 + $0x3b8] sm:$0xff]  ;;  %498 = vst [vmem:[%s752_s15 + $0x3a8] sm:$0xff] %v242_v53  ;;  %v245_v56 = vld [vmem:[%s747_s12 + $0x3c0] sm:$0xff] }
  0x4c   : > { %499 = vst [vmem:[%s752_s15 + $0x3b0] sm:$0xff] %v243_v54  ;;  %500 = vst [vmem:[%s752_s15 + $0x3b8] sm:$0xff] %v244_v55  ;;  %v246_v57 = vld [vmem:[%s747_s12 + $0x3c8] sm:$0xff]  ;;  %v247_v58 = vld [vmem:[%s747_s12 + $0x3d0] sm:$0xff] }
  0x4d   : > { %501 = vst [vmem:[%s752_s15 + $0x3c0] sm:$0xff] %v245_v56  ;;  %502 = vst [vmem:[%s752_s15 + $0x3c8] sm:$0xff] %v246_v57  ;;  %v248_v59 = vld [vmem:[%s747_s12 + $0x3d8] sm:$0xff]  ;;  %v249_v60 = vld [vmem:[%s747_s12 + $0x3e0] sm:$0xff] }
  0x4e   : > { %503 = vst [vmem:[%s752_s15 + $0x3d0] sm:$0xff] %v247_v58  ;;  %v250_v61 = vld [vmem:[%s747_s12 + $0x3e8] sm:$0xff]  ;;  %504 = vst [vmem:[%s752_s15 + $0x3d8] sm:$0xff] %v248_v59  ;;  %v251_v62 = vld [vmem:[%s747_s12 + $0x3f0] sm:$0xff] }
  0x4f   : > { %505 = vst [vmem:[%s752_s15 + $0x3e0] sm:$0xff] %v249_v60  ;;  %506 = vst [vmem:[%s752_s15 + $0x3e8] sm:$0xff] %v250_v61  ;;  %v252_v63 = vld [vmem:[%s747_s12 + $0x3f8] sm:$0xff]  ;;  %v253_v0 = vld [vmem:[%s747_s12 + $0x400] sm:$0xff] }
  0x50   : > { %507 = vst [vmem:[%s752_s15 + $0x3f0] sm:$0xff] %v251_v62  ;;  %508 = vst [vmem:[%s752_s15 + $0x3f8] sm:$0xff] %v252_v63  ;;  %v254_v1 = vld [vmem:[%s747_s12 + $0x408] sm:$0xff]  ;;  %v255_v2 = vld [vmem:[%s747_s12 + $0x410] sm:$0xff] }
  0x51   : > { %509 = vst [vmem:[%s752_s15 + $0x400] sm:$0xff] %v253_v0  ;;  %v256_v3 = vld [vmem:[%s747_s12 + $0x418] sm:$0xff]  ;;  %510 = vst [vmem:[%s752_s15 + $0x408] sm:$0xff] %v254_v1  ;;  %v257_v4 = vld [vmem:[%s747_s12 + $0x420] sm:$0xff] }
  0x52   : > { %511 = vst [vmem:[%s752_s15 + $0x410] sm:$0xff] %v255_v2  ;;  %512 = vst [vmem:[%s752_s15 + $0x418] sm:$0xff] %v256_v3  ;;  %v258_v5 = vld [vmem:[%s747_s12 + $0x428] sm:$0xff]  ;;  %v259_v6 = vld [vmem:[%s747_s12 + $0x430] sm:$0xff] }
  0x53   : > { %513 = vst [vmem:[%s752_s15 + $0x420] sm:$0xff] %v257_v4  ;;  %514 = vst [vmem:[%s752_s15 + $0x428] sm:$0xff] %v258_v5  ;;  %v260_v7 = vld [vmem:[%s747_s12 + $0x438] sm:$0xff]  ;;  %v261_v8 = vld [vmem:[%s747_s12 + $0x440] sm:$0xff] }
  0x54   : > { %515 = vst [vmem:[%s752_s15 + $0x430] sm:$0xff] %v259_v6  ;;  %v262_v9 = vld [vmem:[%s747_s12 + $0x448] sm:$0xff]  ;;  %516 = vst [vmem:[%s752_s15 + $0x438] sm:$0xff] %v260_v7  ;;  %v263_v10 = vld [vmem:[%s747_s12 + $0x450] sm:$0xff] }
  0x55   : > { %517 = vst [vmem:[%s752_s15 + $0x440] sm:$0xff] %v261_v8  ;;  %518 = vst [vmem:[%s752_s15 + $0x448] sm:$0xff] %v262_v9  ;;  %v264_v11 = vld [vmem:[%s747_s12 + $0x458] sm:$0xff]  ;;  %v265_v12 = vld [vmem:[%s747_s12 + $0x460] sm:$0xff] }
  0x56   : > { %519 = vst [vmem:[%s752_s15 + $0x450] sm:$0xff] %v263_v10  ;;  %520 = vst [vmem:[%s752_s15 + $0x458] sm:$0xff] %v264_v11  ;;  %v266_v13 = vld [vmem:[%s747_s12 + $0x468] sm:$0xff]  ;;  %v267_v14 = vld [vmem:[%s747_s12 + $0x470] sm:$0xff] }
  0x57   : > { %521 = vst [vmem:[%s752_s15 + $0x460] sm:$0xff] %v265_v12  ;;  %v268_v15 = vld [vmem:[%s747_s12 + $0x478] sm:$0xff]  ;;  %522 = vst [vmem:[%s752_s15 + $0x468] sm:$0xff] %v266_v13  ;;  %v269_v16 = vld [vmem:[%s747_s12 + $0x480] sm:$0xff] }
  0x58   : > { %523 = vst [vmem:[%s752_s15 + $0x470] sm:$0xff] %v267_v14  ;;  %524 = vst [vmem:[%s752_s15 + $0x478] sm:$0xff] %v268_v15  ;;  %v270_v17 = vld [vmem:[%s747_s12 + $0x488] sm:$0xff]  ;;  %v271_v18 = vld [vmem:[%s747_s12 + $0x490] sm:$0xff] }
  0x59   : > { %525 = vst [vmem:[%s752_s15 + $0x480] sm:$0xff] %v269_v16  ;;  %526 = vst [vmem:[%s752_s15 + $0x488] sm:$0xff] %v270_v17  ;;  %v272_v19 = vld [vmem:[%s747_s12 + $0x498] sm:$0xff]  ;;  %v273_v20 = vld [vmem:[%s747_s12 + $0x4a0] sm:$0xff] }
  0x5a   : > { %527 = vst [vmem:[%s752_s15 + $0x490] sm:$0xff] %v271_v18  ;;  %v274_v21 = vld [vmem:[%s747_s12 + $0x4a8] sm:$0xff]  ;;  %528 = vst [vmem:[%s752_s15 + $0x498] sm:$0xff] %v272_v19  ;;  %v275_v22 = vld [vmem:[%s747_s12 + $0x4b0] sm:$0xff] }
  0x5b   : > { %529 = vst [vmem:[%s752_s15 + $0x4a0] sm:$0xff] %v273_v20  ;;  %530 = vst [vmem:[%s752_s15 + $0x4a8] sm:$0xff] %v274_v21  ;;  %v276_v23 = vld [vmem:[%s747_s12 + $0x4b8] sm:$0xff]  ;;  %v277_v24 = vld [vmem:[%s747_s12 + $0x4c0] sm:$0xff] }
  0x5c   : > { %531 = vst [vmem:[%s752_s15 + $0x4b0] sm:$0xff] %v275_v22  ;;  %532 = vst [vmem:[%s752_s15 + $0x4b8] sm:$0xff] %v276_v23  ;;  %v278_v25 = vld [vmem:[%s747_s12 + $0x4c8] sm:$0xff]  ;;  %v279_v26 = vld [vmem:[%s747_s12 + $0x4d0] sm:$0xff] }
  0x5d   : > { %533 = vst [vmem:[%s752_s15 + $0x4c0] sm:$0xff] %v277_v24  ;;  %v280_v27 = vld [vmem:[%s747_s12 + $0x4d8] sm:$0xff]  ;;  %534 = vst [vmem:[%s752_s15 + $0x4c8] sm:$0xff] %v278_v25  ;;  %v281_v28 = vld [vmem:[%s747_s12 + $0x4e0] sm:$0xff] }
  0x5e   : > { %535 = vst [vmem:[%s752_s15 + $0x4d0] sm:$0xff] %v279_v26  ;;  %536 = vst [vmem:[%s752_s15 + $0x4d8] sm:$0xff] %v280_v27  ;;  %v282_v29 = vld [vmem:[%s747_s12 + $0x4e8] sm:$0xff]  ;;  %v283_v30 = vld [vmem:[%s747_s12 + $0x4f0] sm:$0xff] }
  0x5f   : > { %537 = vst [vmem:[%s752_s15 + $0x4e0] sm:$0xff] %v281_v28  ;;  %538 = vst [vmem:[%s752_s15 + $0x4e8] sm:$0xff] %v282_v29  ;;  %v284_v31 = vld [vmem:[%s747_s12 + $0x4f8] sm:$0xff]  ;;  %v285_v32 = vld [vmem:[%s747_s12 + $0x500] sm:$0xff] }
  0x60   : > { %539 = vst [vmem:[%s752_s15 + $0x4f0] sm:$0xff] %v283_v30  ;;  %v286_v33 = vld [vmem:[%s747_s12 + $0x508] sm:$0xff]  ;;  %540 = vst [vmem:[%s752_s15 + $0x4f8] sm:$0xff] %v284_v31  ;;  %v287_v34 = vld [vmem:[%s747_s12 + $0x510] sm:$0xff] }
  0x61   : > { %541 = vst [vmem:[%s752_s15 + $0x500] sm:$0xff] %v285_v32  ;;  %542 = vst [vmem:[%s752_s15 + $0x508] sm:$0xff] %v286_v33  ;;  %v288_v35 = vld [vmem:[%s747_s12 + $0x518] sm:$0xff]  ;;  %v289_v36 = vld [vmem:[%s747_s12 + $0x520] sm:$0xff] }
  0x62   : > { %543 = vst [vmem:[%s752_s15 + $0x510] sm:$0xff] %v287_v34  ;;  %544 = vst [vmem:[%s752_s15 + $0x518] sm:$0xff] %v288_v35  ;;  %v290_v37 = vld [vmem:[%s747_s12 + $0x528] sm:$0xff]  ;;  %v291_v38 = vld [vmem:[%s747_s12 + $0x530] sm:$0xff] }
  0x63   : > { %545 = vst [vmem:[%s752_s15 + $0x520] sm:$0xff] %v289_v36  ;;  %v292_v39 = vld [vmem:[%s747_s12 + $0x538] sm:$0xff]  ;;  %546 = vst [vmem:[%s752_s15 + $0x528] sm:$0xff] %v290_v37  ;;  %v293_v40 = vld [vmem:[%s747_s12 + $0x540] sm:$0xff] }
  0x64   : > { %547 = vst [vmem:[%s752_s15 + $0x530] sm:$0xff] %v291_v38  ;;  %548 = vst [vmem:[%s752_s15 + $0x538] sm:$0xff] %v292_v39  ;;  %v294_v41 = vld [vmem:[%s747_s12 + $0x548] sm:$0xff]  ;;  %v295_v42 = vld [vmem:[%s747_s12 + $0x550] sm:$0xff] }
  0x65   : > { %549 = vst [vmem:[%s752_s15 + $0x540] sm:$0xff] %v293_v40  ;;  %550 = vst [vmem:[%s752_s15 + $0x548] sm:$0xff] %v294_v41  ;;  %v296_v43 = vld [vmem:[%s747_s12 + $0x558] sm:$0xff]  ;;  %v297_v44 = vld [vmem:[%s747_s12 + $0x560] sm:$0xff] }
  0x66   : > { %551 = vst [vmem:[%s752_s15 + $0x550] sm:$0xff] %v295_v42  ;;  %v298_v45 = vld [vmem:[%s747_s12 + $0x568] sm:$0xff]  ;;  %552 = vst [vmem:[%s752_s15 + $0x558] sm:$0xff] %v296_v43  ;;  %v299_v46 = vld [vmem:[%s747_s12 + $0x570] sm:$0xff] }
  0x67   : > { %553 = vst [vmem:[%s752_s15 + $0x560] sm:$0xff] %v297_v44  ;;  %554 = vst [vmem:[%s752_s15 + $0x568] sm:$0xff] %v298_v45  ;;  %v300_v47 = vld [vmem:[%s747_s12 + $0x578] sm:$0xff]  ;;  %v301_v48 = vld [vmem:[%s747_s12 + $0x580] sm:$0xff] }
  0x68   : > { %555 = vst [vmem:[%s752_s15 + $0x570] sm:$0xff] %v299_v46  ;;  %556 = vst [vmem:[%s752_s15 + $0x578] sm:$0xff] %v300_v47  ;;  %v302_v49 = vld [vmem:[%s747_s12 + $0x588] sm:$0xff]  ;;  %v303_v50 = vld [vmem:[%s747_s12 + $0x590] sm:$0xff] }
  0x69   : > { %557 = vst [vmem:[%s752_s15 + $0x580] sm:$0xff] %v301_v48  ;;  %v304_v51 = vld [vmem:[%s747_s12 + $0x598] sm:$0xff]  ;;  %558 = vst [vmem:[%s752_s15 + $0x588] sm:$0xff] %v302_v49  ;;  %v305_v52 = vld [vmem:[%s747_s12 + $0x5a0] sm:$0xff] }
  0x6a   : > { %559 = vst [vmem:[%s752_s15 + $0x590] sm:$0xff] %v303_v50  ;;  %560 = vst [vmem:[%s752_s15 + $0x598] sm:$0xff] %v304_v51  ;;  %v306_v53 = vld [vmem:[%s747_s12 + $0x5a8] sm:$0xff]  ;;  %v307_v54 = vld [vmem:[%s747_s12 + $0x5b0] sm:$0xff] }
  0x6b   : > { %561 = vst [vmem:[%s752_s15 + $0x5a0] sm:$0xff] %v305_v52  ;;  %562 = vst [vmem:[%s752_s15 + $0x5a8] sm:$0xff] %v306_v53  ;;  %v308_v55 = vld [vmem:[%s747_s12 + $0x5b8] sm:$0xff]  ;;  %v309_v56 = vld [vmem:[%s747_s12 + $0x5c0] sm:$0xff] }
  0x6c   : > { %563 = vst [vmem:[%s752_s15 + $0x5b0] sm:$0xff] %v307_v54  ;;  %v310_v57 = vld [vmem:[%s747_s12 + $0x5c8] sm:$0xff]  ;;  %564 = vst [vmem:[%s752_s15 + $0x5b8] sm:$0xff] %v308_v55  ;;  %v311_v58 = vld [vmem:[%s747_s12 + $0x5d0] sm:$0xff] }
  0x6d   : > { %565 = vst [vmem:[%s752_s15 + $0x5c0] sm:$0xff] %v309_v56  ;;  %566 = vst [vmem:[%s752_s15 + $0x5c8] sm:$0xff] %v310_v57  ;;  %v312_v59 = vld [vmem:[%s747_s12 + $0x5d8] sm:$0xff]  ;;  %v313_v60 = vld [vmem:[%s747_s12 + $0x5e0] sm:$0xff] }
  0x6e   : > { %567 = vst [vmem:[%s752_s15 + $0x5d0] sm:$0xff] %v311_v58  ;;  %568 = vst [vmem:[%s752_s15 + $0x5d8] sm:$0xff] %v312_v59  ;;  %v314_v61 = vld [vmem:[%s747_s12 + $0x5e8] sm:$0xff]  ;;  %v315_v62 = vld [vmem:[%s747_s12 + $0x5f0] sm:$0xff] }
  0x6f   : > { %569 = vst [vmem:[%s752_s15 + $0x5e0] sm:$0xff] %v313_v60  ;;  %v316_v63 = vld [vmem:[%s747_s12 + $0x5f8] sm:$0xff]  ;;  %570 = vst [vmem:[%s752_s15 + $0x5e8] sm:$0xff] %v314_v61  ;;  %v317_v0 = vld [vmem:[%s747_s12 + $0x600] sm:$0xff] }
  0x70   : > { %571 = vst [vmem:[%s752_s15 + $0x5f0] sm:$0xff] %v315_v62  ;;  %572 = vst [vmem:[%s752_s15 + $0x5f8] sm:$0xff] %v316_v63  ;;  %v318_v1 = vld [vmem:[%s747_s12 + $0x608] sm:$0xff]  ;;  %v319_v2 = vld [vmem:[%s747_s12 + $0x610] sm:$0xff] }
  0x71   : > { %573 = vst [vmem:[%s752_s15 + $0x600] sm:$0xff] %v317_v0  ;;  %574 = vst [vmem:[%s752_s15 + $0x608] sm:$0xff] %v318_v1  ;;  %v320_v3 = vld [vmem:[%s747_s12 + $0x618] sm:$0xff]  ;;  %v321_v4 = vld [vmem:[%s747_s12 + $0x620] sm:$0xff] }
  0x72   : > { %575 = vst [vmem:[%s752_s15 + $0x610] sm:$0xff] %v319_v2  ;;  %v322_v5 = vld [vmem:[%s747_s12 + $0x628] sm:$0xff]  ;;  %576 = vst [vmem:[%s752_s15 + $0x618] sm:$0xff] %v320_v3  ;;  %v323_v6 = vld [vmem:[%s747_s12 + $0x630] sm:$0xff] }
  0x73   : > { %577 = vst [vmem:[%s752_s15 + $0x620] sm:$0xff] %v321_v4  ;;  %578 = vst [vmem:[%s752_s15 + $0x628] sm:$0xff] %v322_v5  ;;  %v324_v7 = vld [vmem:[%s747_s12 + $0x638] sm:$0xff]  ;;  %v325_v8 = vld [vmem:[%s747_s12 + $0x640] sm:$0xff] }
  0x74   : > { %579 = vst [vmem:[%s752_s15 + $0x630] sm:$0xff] %v323_v6  ;;  %580 = vst [vmem:[%s752_s15 + $0x638] sm:$0xff] %v324_v7  ;;  %v326_v9 = vld [vmem:[%s747_s12 + $0x648] sm:$0xff]  ;;  %v327_v10 = vld [vmem:[%s747_s12 + $0x650] sm:$0xff] }
  0x75   : > { %581 = vst [vmem:[%s752_s15 + $0x640] sm:$0xff] %v325_v8  ;;  %v328_v11 = vld [vmem:[%s747_s12 + $0x658] sm:$0xff]  ;;  %582 = vst [vmem:[%s752_s15 + $0x648] sm:$0xff] %v326_v9  ;;  %v329_v12 = vld [vmem:[%s747_s12 + $0x660] sm:$0xff] }
  0x76   : > { %583 = vst [vmem:[%s752_s15 + $0x650] sm:$0xff] %v327_v10  ;;  %584 = vst [vmem:[%s752_s15 + $0x658] sm:$0xff] %v328_v11  ;;  %v330_v13 = vld [vmem:[%s747_s12 + $0x668] sm:$0xff]  ;;  %v331_v14 = vld [vmem:[%s747_s12 + $0x670] sm:$0xff] }
  0x77   : > { %585 = vst [vmem:[%s752_s15 + $0x660] sm:$0xff] %v329_v12  ;;  %586 = vst [vmem:[%s752_s15 + $0x668] sm:$0xff] %v330_v13  ;;  %v332_v15 = vld [vmem:[%s747_s12 + $0x678] sm:$0xff]  ;;  %v333_v16 = vld [vmem:[%s747_s12 + $0x680] sm:$0xff] }
  0x78   : > { %587 = vst [vmem:[%s752_s15 + $0x670] sm:$0xff] %v331_v14  ;;  %v334_v17 = vld [vmem:[%s747_s12 + $0x688] sm:$0xff]  ;;  %588 = vst [vmem:[%s752_s15 + $0x678] sm:$0xff] %v332_v15  ;;  %v335_v18 = vld [vmem:[%s747_s12 + $0x690] sm:$0xff] }
  0x79   : > { %589 = vst [vmem:[%s752_s15 + $0x680] sm:$0xff] %v333_v16  ;;  %590 = vst [vmem:[%s752_s15 + $0x688] sm:$0xff] %v334_v17  ;;  %v336_v19 = vld [vmem:[%s747_s12 + $0x698] sm:$0xff]  ;;  %v337_v20 = vld [vmem:[%s747_s12 + $0x6a0] sm:$0xff] }
  0x7a   : > { %591 = vst [vmem:[%s752_s15 + $0x690] sm:$0xff] %v335_v18  ;;  %592 = vst [vmem:[%s752_s15 + $0x698] sm:$0xff] %v336_v19  ;;  %v338_v21 = vld [vmem:[%s747_s12 + $0x6a8] sm:$0xff]  ;;  %v339_v22 = vld [vmem:[%s747_s12 + $0x6b0] sm:$0xff] }
  0x7b   : > { %593 = vst [vmem:[%s752_s15 + $0x6a0] sm:$0xff] %v337_v20  ;;  %v340_v23 = vld [vmem:[%s747_s12 + $0x6b8] sm:$0xff]  ;;  %594 = vst [vmem:[%s752_s15 + $0x6a8] sm:$0xff] %v338_v21  ;;  %v341_v24 = vld [vmem:[%s747_s12 + $0x6c0] sm:$0xff] }
  0x7c   : > { %595 = vst [vmem:[%s752_s15 + $0x6b0] sm:$0xff] %v339_v22  ;;  %596 = vst [vmem:[%s752_s15 + $0x6b8] sm:$0xff] %v340_v23  ;;  %v342_v25 = vld [vmem:[%s747_s12 + $0x6c8] sm:$0xff]  ;;  %v343_v26 = vld [vmem:[%s747_s12 + $0x6d0] sm:$0xff] }
  0x7d   : > { %597 = vst [vmem:[%s752_s15 + $0x6c0] sm:$0xff] %v341_v24  ;;  %598 = vst [vmem:[%s752_s15 + $0x6c8] sm:$0xff] %v342_v25  ;;  %v344_v27 = vld [vmem:[%s747_s12 + $0x6d8] sm:$0xff]  ;;  %v345_v28 = vld [vmem:[%s747_s12 + $0x6e0] sm:$0xff] }
  0x7e   : > { %599 = vst [vmem:[%s752_s15 + $0x6d0] sm:$0xff] %v343_v26  ;;  %v346_v29 = vld [vmem:[%s747_s12 + $0x6e8] sm:$0xff]  ;;  %600 = vst [vmem:[%s752_s15 + $0x6d8] sm:$0xff] %v344_v27  ;;  %v347_v30 = vld [vmem:[%s747_s12 + $0x6f0] sm:$0xff] }
  0x7f   : > { %601 = vst [vmem:[%s752_s15 + $0x6e0] sm:$0xff] %v345_v28  ;;  %602 = vst [vmem:[%s752_s15 + $0x6e8] sm:$0xff] %v346_v29  ;;  %v348_v31 = vld [vmem:[%s747_s12 + $0x6f8] sm:$0xff]  ;;  %v349_v32 = vld [vmem:[%s747_s12 + $0x700] sm:$0xff] }
  0x80   : > { %603 = vst [vmem:[%s752_s15 + $0x6f0] sm:$0xff] %v347_v30  ;;  %604 = vst [vmem:[%s752_s15 + $0x6f8] sm:$0xff] %v348_v31  ;;  %v350_v33 = vld [vmem:[%s747_s12 + $0x708] sm:$0xff]  ;;  %v351_v34 = vld [vmem:[%s747_s12 + $0x710] sm:$0xff] }
  0x81   : > { %605 = vst [vmem:[%s752_s15 + $0x700] sm:$0xff] %v349_v32  ;;  %v352_v35 = vld [vmem:[%s747_s12 + $0x718] sm:$0xff]  ;;  %606 = vst [vmem:[%s752_s15 + $0x708] sm:$0xff] %v350_v33  ;;  %v353_v36 = vld [vmem:[%s747_s12 + $0x720] sm:$0xff] }
  0x82   : > { %607 = vst [vmem:[%s752_s15 + $0x710] sm:$0xff] %v351_v34  ;;  %608 = vst [vmem:[%s752_s15 + $0x718] sm:$0xff] %v352_v35  ;;  %v354_v37 = vld [vmem:[%s747_s12 + $0x728] sm:$0xff]  ;;  %v355_v38 = vld [vmem:[%s747_s12 + $0x730] sm:$0xff] }
  0x83   : > { %609 = vst [vmem:[%s752_s15 + $0x720] sm:$0xff] %v353_v36  ;;  %610 = vst [vmem:[%s752_s15 + $0x728] sm:$0xff] %v354_v37  ;;  %v356_v39 = vld [vmem:[%s747_s12 + $0x738] sm:$0xff]  ;;  %v357_v40 = vld [vmem:[%s747_s12 + $0x740] sm:$0xff] }
  0x84   : > { %611 = vst [vmem:[%s752_s15 + $0x730] sm:$0xff] %v355_v38  ;;  %v358_v41 = vld [vmem:[%s747_s12 + $0x748] sm:$0xff]  ;;  %612 = vst [vmem:[%s752_s15 + $0x738] sm:$0xff] %v356_v39  ;;  %v359_v42 = vld [vmem:[%s747_s12 + $0x750] sm:$0xff] }
  0x85   : > { %613 = vst [vmem:[%s752_s15 + $0x740] sm:$0xff] %v357_v40  ;;  %614 = vst [vmem:[%s752_s15 + $0x748] sm:$0xff] %v358_v41  ;;  %v360_v43 = vld [vmem:[%s747_s12 + $0x758] sm:$0xff]  ;;  %v361_v44 = vld [vmem:[%s747_s12 + $0x760] sm:$0xff] }
  0x86   : > { %615 = vst [vmem:[%s752_s15 + $0x750] sm:$0xff] %v359_v42  ;;  %616 = vst [vmem:[%s752_s15 + $0x758] sm:$0xff] %v360_v43  ;;  %v362_v45 = vld [vmem:[%s747_s12 + $0x768] sm:$0xff]  ;;  %v363_v46 = vld [vmem:[%s747_s12 + $0x770] sm:$0xff] }
  0x87   : > { %617 = vst [vmem:[%s752_s15 + $0x760] sm:$0xff] %v361_v44  ;;  %v364_v47 = vld [vmem:[%s747_s12 + $0x778] sm:$0xff]  ;;  %618 = vst [vmem:[%s752_s15 + $0x768] sm:$0xff] %v362_v45  ;;  %v365_v48 = vld [vmem:[%s747_s12 + $0x780] sm:$0xff] }
  0x88   : > { %619 = vst [vmem:[%s752_s15 + $0x770] sm:$0xff] %v363_v46  ;;  %620 = vst [vmem:[%s752_s15 + $0x778] sm:$0xff] %v364_v47  ;;  %v366_v49 = vld [vmem:[%s747_s12 + $0x788] sm:$0xff]  ;;  %v367_v50 = vld [vmem:[%s747_s12 + $0x790] sm:$0xff] }
  0x89   : > { %621 = vst [vmem:[%s752_s15 + $0x780] sm:$0xff] %v365_v48  ;;  %622 = vst [vmem:[%s752_s15 + $0x788] sm:$0xff] %v366_v49  ;;  %v368_v51 = vld [vmem:[%s747_s12 + $0x798] sm:$0xff]  ;;  %v369_v52 = vld [vmem:[%s747_s12 + $0x7a0] sm:$0xff] }
  0x8a   : > { %623 = vst [vmem:[%s752_s15 + $0x790] sm:$0xff] %v367_v50  ;;  %v370_v53 = vld [vmem:[%s747_s12 + $0x7a8] sm:$0xff]  ;;  %624 = vst [vmem:[%s752_s15 + $0x798] sm:$0xff] %v368_v51  ;;  %v371_v54 = vld [vmem:[%s747_s12 + $0x7b0] sm:$0xff] }
  0x8b   : > { %625 = vst [vmem:[%s752_s15 + $0x7a0] sm:$0xff] %v369_v52  ;;  %626 = vst [vmem:[%s752_s15 + $0x7a8] sm:$0xff] %v370_v53  ;;  %v372_v55 = vld [vmem:[%s747_s12 + $0x7b8] sm:$0xff]  ;;  %v373_v56 = vld [vmem:[%s747_s12 + $0x7c0] sm:$0xff] }
  0x8c   : > { %627 = vst [vmem:[%s752_s15 + $0x7b0] sm:$0xff] %v371_v54  ;;  %628 = vst [vmem:[%s752_s15 + $0x7b8] sm:$0xff] %v372_v55  ;;  %v374_v57 = vld [vmem:[%s747_s12 + $0x7c8] sm:$0xff]  ;;  %v375_v58 = vld [vmem:[%s747_s12 + $0x7d0] sm:$0xff] }
  0x8d   : > { %629 = vst [vmem:[%s752_s15 + $0x7c0] sm:$0xff] %v373_v56  ;;  %v376_v59 = vld [vmem:[%s747_s12 + $0x7d8] sm:$0xff]  ;;  %630 = vst [vmem:[%s752_s15 + $0x7c8] sm:$0xff] %v374_v57  ;;  %v377_v60 = vld [vmem:[%s747_s12 + $0x7e0] sm:$0xff] }
  0x8e   : > { %631 = vst [vmem:[%s752_s15 + $0x7d0] sm:$0xff] %v375_v58  ;;  %632 = vst [vmem:[%s752_s15 + $0x7d8] sm:$0xff] %v376_v59  ;;  %v378_v61 = vld [vmem:[%s747_s12 + $0x7e8] sm:$0xff]  ;;  %v379_v62 = vld [vmem:[%s747_s12 + $0x7f0] sm:$0xff] }
  0x8f   : > { %633 = vst [vmem:[%s752_s15 + $0x7e0] sm:$0xff] %v377_v60  ;;  %634 = vst [vmem:[%s752_s15 + $0x7e8] sm:$0xff] %v378_v61  ;;  %v380_v63 = vld [vmem:[%s747_s12 + $0x7f8] sm:$0xff] }
  0x90   : > { %635 = vst [vmem:[%s752_s15 + $0x7f0] sm:$0xff] %v379_v62  ;;  %636 = vst [vmem:[%s752_s15 + $0x7f8] sm:$0xff] %v380_v63 }
  0x91 PF: > { %s11_s6 = sadd.s32 1, %s724_s6  }
  0x92   : > { %p8_p4 = scmp.ge.s32.totalorder %s11_s6, 4  }
  0x94   :  { %10 = sbr.rel (!%p8_p4) target bundleno = 1 (0x1), region = 54 }

</bundles_post_ra>
